<compile_context>
chip_gen: v7x
topology: tpu7x:2x2x1
jax: 0.10.0
libtpu: 0.0.40
codegen_flags: <defaults>
</compile_context>

<pallas_src>
import jax
import jax.numpy as jnp
from jax.experimental import pallas as pl
from jax.experimental.pallas import tpu as pltpu

VOCAB = 64              # input_size (vocabulary), small for the demo
HIDDEN = 256            # hidden_size (matches the PyTorch script)
SEQ = 8                 # number of encoder steps fused into one kernel call
PARAM_DTYPE = jnp.bfloat16   # MXU-native weights; gate math stays f32


def encoder_gru_kernel(x_ref, wih_ref, whh_ref, bgi_ref, bhn_ref, h0_ref,
                       out_ref, gi_ref):
    """Fused T-step GRU (embedding rows already gathered).

    x_ref   : VMEM (T, H)  bf16 -- embedded tokens E[tokens]
    wih_ref : VMEM (H, 3H) bf16 -- input->gates weights (transposed, [r|z|n])
    whh_ref : VMEM (H, 3H) bf16 -- hidden->gates weights (transposed, [r|z|n])
    bgi_ref : VMEM (1, 3H) f32  -- [b_ir+b_hr | b_iz+b_hz | b_in] (fused bias)
    bhn_ref : VMEM (1, H)  f32  -- b_hn (stays inside the r-gated term)
    h0_ref  : VMEM (1, H)  f32  -- initial hidden state
    out_ref : VMEM (T, H)  f32  -- per-step output (== hidden for 1 layer)
    gi_ref  : VMEM (T, 3H) f32  -- scratch: precomputed input projections
    """
    H = h0_ref.shape[-1]
    T = x_ref.shape[0]

    # Prologue: one MXU matmul with M=T covers the input projection for every
    # timestep. The r/z biases of b_hh are pre-folded into bgi, so the
    # recurrent loop only adds b_hn (inside the r-gated term).
    gi_ref[...] = (
        jnp.dot(x_ref[...], wih_ref[...], preferred_element_type=jnp.float32)
        + bgi_ref[...])

    # Hoist loop-invariant loads out of the recurrence (explicit, no reliance
    # on CSE): recurrent weights and the n-gate hidden bias.
    whh = whh_ref[...]
    bhn = bhn_ref[...]

    def step(t, h):
        # Recurrent projection: (1,H) @ (H,3H), bf16 operands, f32 accumulate.
        # TODO(synk): on v5e this RHS could be held in MXU weight regs across
        # steps via pltpu.matmul_push_rhs/acc_lhs/pop.
        gh = jnp.dot(h.astype(whh.dtype), whh,
                     preferred_element_type=jnp.float32)
        gi = gi_ref[pl.ds(t, 1), :]                       # (1, 3H)
        g = gi + gh                                        # (1, 3H) f32
        # PyTorch nn.GRU semantics, gate order [r | z | n]; slice boundaries
        # (0, H, 2H) are multiples of 128 since H == 256 -> lane-aligned.
        rz = jax.nn.sigmoid(g[:, 0:2 * H])                 # one EUP pass
        r = rz[:, 0:H]
        z = rz[:, H:2 * H]
        n = jnp.tanh(gi[:, 2 * H:] + r * (gh[:, 2 * H:] + bhn))
        h_new = (1.0 - z) * n + z * h
        out_ref[pl.ds(t, 1), :] = h_new
        return h_new

    jax.lax.fori_loop(0, T, step, h0_ref[...], unroll=True)


def encoder_gru_forward(tokens, hidden, params):
    """Pallas equivalent of running EncoderGRU.forward over `tokens`.

    tokens : (T,) int32        -- token ids (T == 1 reproduces one module call)
    hidden : (1, 1, H) float32 -- previous hidden state (initHidden() style)
    returns (outputs (T, 1, H) f32, hidden (1, 1, H) f32)
    """
    emb, wih_t, whh_t, b_gi, b_hn = params
    T = tokens.shape[0]
    H = emb.shape[1]

    # Gather only the needed embedding rows in the wrapper; the full table is
    # never DMA'd into VMEM (important for real vocabs / v7x's 64 MiB VMEM).
    # mode="clip" clamps out-of-range ids -> no OOB hazard inside the kernel.
    x_all = jnp.take(emb, tokens, axis=0, mode="clip")        # (T, H) bf16
    h0 = hidden.reshape(1, H).astype(jnp.float32)

    vmem = pl.BlockSpec(memory_space=pltpu.MemorySpace.VMEM)
    out = pl.pallas_call(
        encoder_gru_kernel,
        out_shape=jax.ShapeDtypeStruct((T, H), jnp.float32),
        in_specs=[vmem] * 6,
        out_specs=vmem,
        scratch_shapes=[pltpu.VMEM((T, 3 * H), jnp.float32)],
    )(x_all, wih_t, whh_t, b_gi, b_hn, h0)

    # Match PyTorch shapes: per-step output (T, batch=1, H); for a 1-layer GRU
    # the new hidden equals the last output row (no duplicated kernel output).
    return out.reshape(T, 1, H), out[T - 1].reshape(1, 1, H)


def pack_params(emb, w_ih, w_hh, b_ih, b_hh, param_dtype=PARAM_DTYPE):
    """PyTorch-layout GRU params -> kernel layout.

    Weights transposed to (H, 3H) in param_dtype; r/z halves of b_hh are fused
    into the input-projection bias (those gates always sum both biases); b_hn
    stays separate because it sits inside the r-gated term.
    """
    H = emb.shape[1]
    b_ih = b_ih.astype(jnp.float32)
    b_hh = b_hh.astype(jnp.float32)
    b_gi = jnp.concatenate([b_ih[:2 * H] + b_hh[:2 * H], b_ih[2 * H:]])
    return (emb.astype(param_dtype),
            w_ih.T.astype(param_dtype),
            w_hh.T.astype(param_dtype),
            b_gi.reshape(1, 3 * H),
            b_hh[2 * H:].reshape(1, H))


def init_params(key, vocab, hidden, param_dtype=PARAM_DTYPE):
    """Deterministic parameter init matching nn.Embedding + nn.GRU shapes."""
    k_emb, k_wih, k_whh, k_bih, k_bhh = jax.random.split(key, 5)
    bound = 1.0 / float(hidden) ** 0.5
    emb = jax.random.normal(k_emb, (vocab, hidden), jnp.float32)
    # PyTorch stores weight_ih_l0 / weight_hh_l0 as (3H, H), rows [r|z|n].
    w_ih = jax.random.uniform(k_wih, (3 * hidden, hidden), jnp.float32,
                              -bound, bound)
    w_hh = jax.random.uniform(k_whh, (3 * hidden, hidden), jnp.float32,
                              -bound, bound)
    b_ih = jax.random.uniform(k_bih, (3 * hidden,), jnp.float32, -bound, bound)
    b_hh = jax.random.uniform(k_bhh, (3 * hidden,), jnp.float32, -bound, bound)
    return pack_params(emb, w_ih, w_hh, b_ih, b_hh, param_dtype)


def reference_forward(tokens, hidden, params):
    """Pure-JAX reference mirroring torch Embedding + nn.GRU over T steps,
    using the same packed (bf16-quantized) parameter values as the kernel."""
    emb, wih_t, whh_t, b_gi, b_hn = params
    H = emb.shape[1]
    wih = wih_t.astype(jnp.float32)
    whh = whh_t.astype(jnp.float32)
    x_all = jnp.take(emb, tokens, axis=0, mode="clip").astype(jnp.float32)
    gi_all = x_all @ wih + b_gi
    h = hidden.reshape(1, H).astype(jnp.float32)
    outs = []
    for t in range(tokens.shape[0]):
        gh = h.astype(whh_t.dtype).astype(jnp.float32) @ whh
        gi = gi_all[t:t + 1]
        r = jax.nn.sigmoid(gi[:, 0:H] + gh[:, 0:H])
        z = jax.nn.sigmoid(gi[:, H:2 * H] + gh[:, H:2 * H])
        n = jnp.tanh(gi[:, 2 * H:] + r * (gh[:, 2 * H:] + b_hn))
        h = (1.0 - z) * n + z * h
        outs.append(h)
    return jnp.stack(outs, axis=0), h.reshape(1, 1, H)


if __name__ == "__main__":
    root = jax.random.PRNGKey(0)
    k_params, k_tokens = jax.random.split(root)
    params = init_params(k_params, VOCAB, HIDDEN)

    tokens = jax.random.randint(k_tokens, (SEQ,), 0, VOCAB, dtype=jnp.int32)
    hidden0 = jnp.zeros((1, 1, HIDDEN), dtype=jnp.float32)   # initHidden()

    out, hid = encoder_gru_forward(tokens, hidden0, params)
    out = jax.block_until_ready(out)
    hid = jax.block_until_ready(hid)

    ref_out, ref_hid = reference_forward(tokens, hidden0, params)
    assert out.shape == (SEQ, 1, HIDDEN) and hid.shape == (1, 1, HIDDEN)
    assert jnp.allclose(out, ref_out, atol=2e-3, rtol=2e-3), \
        float(jnp.max(jnp.abs(out - ref_out)))
    assert jnp.allclose(hid, ref_hid, atol=2e-3, rtol=2e-3)

    print("KERNEL_OK")
</pallas_src>

<mosaic_0001>
module attributes {stable_mosaic.version = 11 : i64} {
  func.func @encoder_gru_kernel(%arg0: memref<8x256xbf16, #tpu.memory_space<vmem>>, %arg1: memref<256x768xbf16, #tpu.memory_space<vmem>>, %arg2: memref<256x768xbf16, #tpu.memory_space<vmem>>, %arg3: memref<1x768xf32, #tpu.memory_space<vmem>>, %arg4: memref<1x256xf32, #tpu.memory_space<vmem>>, %arg5: memref<1x256xf32, #tpu.memory_space<vmem>>, %arg6: memref<8x256xf32, #tpu.memory_space<vmem>>, %arg7: memref<8x768xf32, #tpu.memory_space<vmem>>) attributes {dimension_semantics = [], scalar_prefetch = 0 : i64, scratch_operands = 1 : i64, tpu.core_type = #tpu.core_type<tc>} {
    %c0 = arith.constant 0 : index
    %c0_0 = arith.constant 0 : index
    %0 = vector.load %arg0[%c0, %c0_0] : memref<8x256xbf16, #tpu.memory_space<vmem>>, vector<8x256xbf16>
    %c0_1 = arith.constant 0 : index
    %c0_2 = arith.constant 0 : index
    %1 = vector.load %arg1[%c0_1, %c0_2] : memref<256x768xbf16, #tpu.memory_space<vmem>>, vector<256x768xbf16>
    %cst = arith.constant dense<0.000000e+00> : vector<8x768xf32>
    %2 = tpu.matmul %0, %1, %cst {dimension_numbers = #tpu.dot_dimension_numbers<[1], [0], [0], [1], [0, 0, 1, 1], [], []>} : vector<8x256xbf16>, vector<256x768xbf16>, vector<8x768xf32> -> vector<8x768xf32>
    %c0_3 = arith.constant 0 : index
    %c0_4 = arith.constant 0 : index
    %3 = vector.load %arg3[%c0_3, %c0_4] : memref<1x768xf32, #tpu.memory_space<vmem>>, vector<1x768xf32>
    %4 = vector.broadcast %3 : vector<1x768xf32> to vector<8x768xf32>
    %5 = arith.addf %2, %4 : vector<8x768xf32>
    %c0_5 = arith.constant 0 : index
    %c0_6 = arith.constant 0 : index
    %6 = vector.load %arg7[%c0_5, %c0_6] : memref<8x768xf32, #tpu.memory_space<vmem>>, vector<8x768xf32>
    tpu.vector_store %arg7[%c0_5, %c0_6], %5 {strides = array<i32>} : memref<8x768xf32, #tpu.memory_space<vmem>>, vector<8x768xf32>,
    %c0_7 = arith.constant 0 : index
    %c0_8 = arith.constant 0 : index
    %7 = vector.load %arg2[%c0_7, %c0_8] : memref<256x768xbf16, #tpu.memory_space<vmem>>, vector<256x768xbf16>
    %c0_9 = arith.constant 0 : index
    %c0_10 = arith.constant 0 : index
    %8 = vector.load %arg4[%c0_9, %c0_10] : memref<1x256xf32, #tpu.memory_space<vmem>>, vector<1x256xf32>
    %c0_11 = arith.constant 0 : index
    %c0_12 = arith.constant 0 : index
    %9 = vector.load %arg5[%c0_11, %c0_12] : memref<1x256xf32, #tpu.memory_space<vmem>>, vector<1x256xf32>
    %c0_i32 = arith.constant 0 : i32
    %10 = arith.truncf %9 : vector<1x256xf32> to vector<1x256xbf16>
    %cst_13 = arith.constant dense<0.000000e+00> : vector<1x768xf32>
    %11 = tpu.matmul %10, %7, %cst_13 {dimension_numbers = #tpu.dot_dimension_numbers<[1], [0], [0], [1], [0, 0, 1, 1], [], []>} : vector<1x256xbf16>, vector<256x768xbf16>, vector<1x768xf32> -> vector<1x768xf32>
    %12 = arith.index_cast %c0_i32 : i32 to index
    %c0_14 = arith.constant 0 : index
    %13 = vector.load %arg7[%12, %c0_14] : memref<8x768xf32, #tpu.memory_space<vmem>>, vector<1x768xf32>
    %14 = arith.addf %13, %11 : vector<1x768xf32>
    %15 = vector.extract_strided_slice %14 {offsets = [0, 0], sizes = [1, 512], strides = [1, 1]} : vector<1x768xf32> to vector<1x512xf32>
    %16 = arith.negf %15 : vector<1x512xf32>
    %17 = math.exp %16 : vector<1x512xf32>
    %cst_15 = arith.constant 1.000000e+00 : f32
    %18 = vector.broadcast %cst_15 : f32 to vector<1x512xf32>
    %19 = arith.addf %18, %17 : vector<1x512xf32>
    %20 = arith.divf %18, %19 : vector<1x512xf32>
    %21 = vector.extract_strided_slice %20 {offsets = [0, 0], sizes = [1, 256], strides = [1, 1]} : vector<1x512xf32> to vector<1x256xf32>
    %22 = vector.extract_strided_slice %20 {offsets = [0, 256], sizes = [1, 256], strides = [1, 1]} : vector<1x512xf32> to vector<1x256xf32>
    %23 = vector.extract_strided_slice %13 {offsets = [0, 512], sizes = [1, 256], strides = [1, 1]} : vector<1x768xf32> to vector<1x256xf32>
    %24 = vector.extract_strided_slice %11 {offsets = [0, 512], sizes = [1, 256], strides = [1, 1]} : vector<1x768xf32> to vector<1x256xf32>
    %25 = arith.addf %24, %8 : vector<1x256xf32>
    %26 = arith.mulf %21, %25 : vector<1x256xf32>
    %27 = arith.addf %23, %26 : vector<1x256xf32>
    %28 = math.tanh %27 : vector<1x256xf32>
    %cst_16 = arith.constant 1.000000e+00 : f32
    %29 = vector.broadcast %cst_16 : f32 to vector<1x256xf32>
    %30 = arith.subf %29, %22 : vector<1x256xf32>
    %31 = arith.mulf %30, %28 : vector<1x256xf32>
    %32 = arith.mulf %22, %9 : vector<1x256xf32>
    %33 = arith.addf %31, %32 : vector<1x256xf32>
    %34 = arith.index_cast %c0_i32 : i32 to index
    %c0_17 = arith.constant 0 : index
    %35 = vector.load %arg6[%34, %c0_17] : memref<8x256xf32, #tpu.memory_space<vmem>>, vector<1x256xf32>
    tpu.vector_store %arg6[%34, %c0_17], %33 {strides = array<i32>} : memref<8x256xf32, #tpu.memory_space<vmem>>, vector<1x256xf32>,
    %c1_i32 = arith.constant 1 : i32
    %36 = arith.truncf %33 : vector<1x256xf32> to vector<1x256xbf16>
    %cst_18 = arith.constant dense<0.000000e+00> : vector<1x768xf32>
    %37 = tpu.matmul %36, %7, %cst_18 {dimension_numbers = #tpu.dot_dimension_numbers<[1], [0], [0], [1], [0, 0, 1, 1], [], []>} : vector<1x256xbf16>, vector<256x768xbf16>, vector<1x768xf32> -> vector<1x768xf32>
    %38 = arith.index_cast %c1_i32 : i32 to index
    %c0_19 = arith.constant 0 : index
    %39 = vector.load %arg7[%38, %c0_19] : memref<8x768xf32, #tpu.memory_space<vmem>>, vector<1x768xf32>
    %40 = arith.addf %39, %37 : vector<1x768xf32>
    %41 = vector.extract_strided_slice %40 {offsets = [0, 0], sizes = [1, 512], strides = [1, 1]} : vector<1x768xf32> to vector<1x512xf32>
    %42 = arith.negf %41 : vector<1x512xf32>
    %43 = math.exp %42 : vector<1x512xf32>
    %cst_20 = arith.constant 1.000000e+00 : f32
    %44 = vector.broadcast %cst_20 : f32 to vector<1x512xf32>
    %45 = arith.addf %44, %43 : vector<1x512xf32>
    %46 = arith.divf %44, %45 : vector<1x512xf32>
    %47 = vector.extract_strided_slice %46 {offsets = [0, 0], sizes = [1, 256], strides = [1, 1]} : vector<1x512xf32> to vector<1x256xf32>
    %48 = vector.extract_strided_slice %46 {offsets = [0, 256], sizes = [1, 256], strides = [1, 1]} : vector<1x512xf32> to vector<1x256xf32>
    %49 = vector.extract_strided_slice %39 {offsets = [0, 512], sizes = [1, 256], strides = [1, 1]} : vector<1x768xf32> to vector<1x256xf32>
    %50 = vector.extract_strided_slice %37 {offsets = [0, 512], sizes = [1, 256], strides = [1, 1]} : vector<1x768xf32> to vector<1x256xf32>
    %51 = arith.addf %50, %8 : vector<1x256xf32>
    %52 = arith.mulf %47, %51 : vector<1x256xf32>
    %53 = arith.addf %49, %52 : vector<1x256xf32>
    %54 = math.tanh %53 : vector<1x256xf32>
    %cst_21 = arith.constant 1.000000e+00 : f32
    %55 = vector.broadcast %cst_21 : f32 to vector<1x256xf32>
    %56 = arith.subf %55, %48 : vector<1x256xf32>
    %57 = arith.mulf %56, %54 : vector<1x256xf32>
    %58 = arith.mulf %48, %33 : vector<1x256xf32>
    %59 = arith.addf %57, %58 : vector<1x256xf32>
    %60 = arith.index_cast %c1_i32 : i32 to index
    %c0_22 = arith.constant 0 : index
    %61 = vector.load %arg6[%60, %c0_22] : memref<8x256xf32, #tpu.memory_space<vmem>>, vector<1x256xf32>
    tpu.vector_store %arg6[%60, %c0_22], %59 {strides = array<i32>} : memref<8x256xf32, #tpu.memory_space<vmem>>, vector<1x256xf32>,
    %c2_i32 = arith.constant 2 : i32
    %62 = arith.truncf %59 : vector<1x256xf32> to vector<1x256xbf16>
    %cst_23 = arith.constant dense<0.000000e+00> : vector<1x768xf32>
    %63 = tpu.matmul %62, %7, %cst_23 {dimension_numbers = #tpu.dot_dimension_numbers<[1], [0], [0], [1], [0, 0, 1, 1], [], []>} : vector<1x256xbf16>, vector<256x768xbf16>, vector<1x768xf32> -> vector<1x768xf32>
    %64 = arith.index_cast %c2_i32 : i32 to index
    %c0_24 = arith.constant 0 : index
    %65 = vector.load %arg7[%64, %c0_24] : memref<8x768xf32, #tpu.memory_space<vmem>>, vector<1x768xf32>
    %66 = arith.addf %65, %63 : vector<1x768xf32>
    %67 = vector.extract_strided_slice %66 {offsets = [0, 0], sizes = [1, 512], strides = [1, 1]} : vector<1x768xf32> to vector<1x512xf32>
    %68 = arith.negf %67 : vector<1x512xf32>
    %69 = math.exp %68 : vector<1x512xf32>
    %cst_25 = arith.constant 1.000000e+00 : f32
    %70 = vector.broadcast %cst_25 : f32 to vector<1x512xf32>
    %71 = arith.addf %70, %69 : vector<1x512xf32>
    %72 = arith.divf %70, %71 : vector<1x512xf32>
    %73 = vector.extract_strided_slice %72 {offsets = [0, 0], sizes = [1, 256], strides = [1, 1]} : vector<1x512xf32> to vector<1x256xf32>
    %74 = vector.extract_strided_slice %72 {offsets = [0, 256], sizes = [1, 256], strides = [1, 1]} : vector<1x512xf32> to vector<1x256xf32>
    %75 = vector.extract_strided_slice %65 {offsets = [0, 512], sizes = [1, 256], strides = [1, 1]} : vector<1x768xf32> to vector<1x256xf32>
    %76 = vector.extract_strided_slice %63 {offsets = [0, 512], sizes = [1, 256], strides = [1, 1]} : vector<1x768xf32> to vector<1x256xf32>
    %77 = arith.addf %76, %8 : vector<1x256xf32>
    %78 = arith.mulf %73, %77 : vector<1x256xf32>
    %79 = arith.addf %75, %78 : vector<1x256xf32>
    %80 = math.tanh %79 : vector<1x256xf32>
    %cst_26 = arith.constant 1.000000e+00 : f32
    %81 = vector.broadcast %cst_26 : f32 to vector<1x256xf32>
    %82 = arith.subf %81, %74 : vector<1x256xf32>
    %83 = arith.mulf %82, %80 : vector<1x256xf32>
    %84 = arith.mulf %74, %59 : vector<1x256xf32>
    %85 = arith.addf %83, %84 : vector<1x256xf32>
    %86 = arith.index_cast %c2_i32 : i32 to index
    %c0_27 = arith.constant 0 : index
    %87 = vector.load %arg6[%86, %c0_27] : memref<8x256xf32, #tpu.memory_space<vmem>>, vector<1x256xf32>
    tpu.vector_store %arg6[%86, %c0_27], %85 {strides = array<i32>} : memref<8x256xf32, #tpu.memory_space<vmem>>, vector<1x256xf32>,
    %c3_i32 = arith.constant 3 : i32
    %88 = arith.truncf %85 : vector<1x256xf32> to vector<1x256xbf16>
    %cst_28 = arith.constant dense<0.000000e+00> : vector<1x768xf32>
    %89 = tpu.matmul %88, %7, %cst_28 {dimension_numbers = #tpu.dot_dimension_numbers<[1], [0], [0], [1], [0, 0, 1, 1], [], []>} : vector<1x256xbf16>, vector<256x768xbf16>, vector<1x768xf32> -> vector<1x768xf32>
    %90 = arith.index_cast %c3_i32 : i32 to index
    %c0_29 = arith.constant 0 : index
    %91 = vector.load %arg7[%90, %c0_29] : memref<8x768xf32, #tpu.memory_space<vmem>>, vector<1x768xf32>
    %92 = arith.addf %91, %89 : vector<1x768xf32>
    %93 = vector.extract_strided_slice %92 {offsets = [0, 0], sizes = [1, 512], strides = [1, 1]} : vector<1x768xf32> to vector<1x512xf32>
    %94 = arith.negf %93 : vector<1x512xf32>
    %95 = math.exp %94 : vector<1x512xf32>
    %cst_30 = arith.constant 1.000000e+00 : f32
    %96 = vector.broadcast %cst_30 : f32 to vector<1x512xf32>
    %97 = arith.addf %96, %95 : vector<1x512xf32>
    %98 = arith.divf %96, %97 : vector<1x512xf32>
    %99 = vector.extract_strided_slice %98 {offsets = [0, 0], sizes = [1, 256], strides = [1, 1]} : vector<1x512xf32> to vector<1x256xf32>
    %100 = vector.extract_strided_slice %98 {offsets = [0, 256], sizes = [1, 256], strides = [1, 1]} : vector<1x512xf32> to vector<1x256xf32>
    %101 = vector.extract_strided_slice %91 {offsets = [0, 512], sizes = [1, 256], strides = [1, 1]} : vector<1x768xf32> to vector<1x256xf32>
    %102 = vector.extract_strided_slice %89 {offsets = [0, 512], sizes = [1, 256], strides = [1, 1]} : vector<1x768xf32> to vector<1x256xf32>
    %103 = arith.addf %102, %8 : vector<1x256xf32>
    %104 = arith.mulf %99, %103 : vector<1x256xf32>
    %105 = arith.addf %101, %104 : vector<1x256xf32>
    %106 = math.tanh %105 : vector<1x256xf32>
    %cst_31 = arith.constant 1.000000e+00 : f32
    %107 = vector.broadcast %cst_31 : f32 to vector<1x256xf32>
    %108 = arith.subf %107, %100 : vector<1x256xf32>
    %109 = arith.mulf %108, %106 : vector<1x256xf32>
    %110 = arith.mulf %100, %85 : vector<1x256xf32>
    %111 = arith.addf %109, %110 : vector<1x256xf32>
    %112 = arith.index_cast %c3_i32 : i32 to index
    %c0_32 = arith.constant 0 : index
    %113 = vector.load %arg6[%112, %c0_32] : memref<8x256xf32, #tpu.memory_space<vmem>>, vector<1x256xf32>
    tpu.vector_store %arg6[%112, %c0_32], %111 {strides = array<i32>} : memref<8x256xf32, #tpu.memory_space<vmem>>, vector<1x256xf32>,
    %c4_i32 = arith.constant 4 : i32
    %114 = arith.truncf %111 : vector<1x256xf32> to vector<1x256xbf16>
    %cst_33 = arith.constant dense<0.000000e+00> : vector<1x768xf32>
    %115 = tpu.matmul %114, %7, %cst_33 {dimension_numbers = #tpu.dot_dimension_numbers<[1], [0], [0], [1], [0, 0, 1, 1], [], []>} : vector<1x256xbf16>, vector<256x768xbf16>, vector<1x768xf32> -> vector<1x768xf32>
    %116 = arith.index_cast %c4_i32 : i32 to index
    %c0_34 = arith.constant 0 : index
    %117 = vector.load %arg7[%116, %c0_34] : memref<8x768xf32, #tpu.memory_space<vmem>>, vector<1x768xf32>
    %118 = arith.addf %117, %115 : vector<1x768xf32>
    %119 = vector.extract_strided_slice %118 {offsets = [0, 0], sizes = [1, 512], strides = [1, 1]} : vector<1x768xf32> to vector<1x512xf32>
    %120 = arith.negf %119 : vector<1x512xf32>
    %121 = math.exp %120 : vector<1x512xf32>
    %cst_35 = arith.constant 1.000000e+00 : f32
    %122 = vector.broadcast %cst_35 : f32 to vector<1x512xf32>
    %123 = arith.addf %122, %121 : vector<1x512xf32>
    %124 = arith.divf %122, %123 : vector<1x512xf32>
    %125 = vector.extract_strided_slice %124 {offsets = [0, 0], sizes = [1, 256], strides = [1, 1]} : vector<1x512xf32> to vector<1x256xf32>
    %126 = vector.extract_strided_slice %124 {offsets = [0, 256], sizes = [1, 256], strides = [1, 1]} : vector<1x512xf32> to vector<1x256xf32>
    %127 = vector.extract_strided_slice %117 {offsets = [0, 512], sizes = [1, 256], strides = [1, 1]} : vector<1x768xf32> to vector<1x256xf32>
    %128 = vector.extract_strided_slice %115 {offsets = [0, 512], sizes = [1, 256], strides = [1, 1]} : vector<1x768xf32> to vector<1x256xf32>
    %129 = arith.addf %128, %8 : vector<1x256xf32>
    %130 = arith.mulf %125, %129 : vector<1x256xf32>
    %131 = arith.addf %127, %130 : vector<1x256xf32>
    %132 = math.tanh %131 : vector<1x256xf32>
    %cst_36 = arith.constant 1.000000e+00 : f32
    %133 = vector.broadcast %cst_36 : f32 to vector<1x256xf32>
    %134 = arith.subf %133, %126 : vector<1x256xf32>
    %135 = arith.mulf %134, %132 : vector<1x256xf32>
    %136 = arith.mulf %126, %111 : vector<1x256xf32>
    %137 = arith.addf %135, %136 : vector<1x256xf32>
    %138 = arith.index_cast %c4_i32 : i32 to index
    %c0_37 = arith.constant 0 : index
    %139 = vector.load %arg6[%138, %c0_37] : memref<8x256xf32, #tpu.memory_space<vmem>>, vector<1x256xf32>
    tpu.vector_store %arg6[%138, %c0_37], %137 {strides = array<i32>} : memref<8x256xf32, #tpu.memory_space<vmem>>, vector<1x256xf32>,
    %c5_i32 = arith.constant 5 : i32
    %140 = arith.truncf %137 : vector<1x256xf32> to vector<1x256xbf16>
    %cst_38 = arith.constant dense<0.000000e+00> : vector<1x768xf32>
    %141 = tpu.matmul %140, %7, %cst_38 {dimension_numbers = #tpu.dot_dimension_numbers<[1], [0], [0], [1], [0, 0, 1, 1], [], []>} : vector<1x256xbf16>, vector<256x768xbf16>, vector<1x768xf32> -> vector<1x768xf32>
    %142 = arith.index_cast %c5_i32 : i32 to index
    %c0_39 = arith.constant 0 : index
    %143 = vector.load %arg7[%142, %c0_39] : memref<8x768xf32, #tpu.memory_space<vmem>>, vector<1x768xf32>
    %144 = arith.addf %143, %141 : vector<1x768xf32>
    %145 = vector.extract_strided_slice %144 {offsets = [0, 0], sizes = [1, 512], strides = [1, 1]} : vector<1x768xf32> to vector<1x512xf32>
    %146 = arith.negf %145 : vector<1x512xf32>
    %147 = math.exp %146 : vector<1x512xf32>
    %cst_40 = arith.constant 1.000000e+00 : f32
    %148 = vector.broadcast %cst_40 : f32 to vector<1x512xf32>
    %149 = arith.addf %148, %147 : vector<1x512xf32>
    %150 = arith.divf %148, %149 : vector<1x512xf32>
    %151 = vector.extract_strided_slice %150 {offsets = [0, 0], sizes = [1, 256], strides = [1, 1]} : vector<1x512xf32> to vector<1x256xf32>
    %152 = vector.extract_strided_slice %150 {offsets = [0, 256], sizes = [1, 256], strides = [1, 1]} : vector<1x512xf32> to vector<1x256xf32>
    %153 = vector.extract_strided_slice %143 {offsets = [0, 512], sizes = [1, 256], strides = [1, 1]} : vector<1x768xf32> to vector<1x256xf32>
    %154 = vector.extract_strided_slice %141 {offsets = [0, 512], sizes = [1, 256], strides = [1, 1]} : vector<1x768xf32> to vector<1x256xf32>
    %155 = arith.addf %154, %8 : vector<1x256xf32>
    %156 = arith.mulf %151, %155 : vector<1x256xf32>
    %157 = arith.addf %153, %156 : vector<1x256xf32>
    %158 = math.tanh %157 : vector<1x256xf32>
    %cst_41 = arith.constant 1.000000e+00 : f32
    %159 = vector.broadcast %cst_41 : f32 to vector<1x256xf32>
    %160 = arith.subf %159, %152 : vector<1x256xf32>
    %161 = arith.mulf %160, %158 : vector<1x256xf32>
    %162 = arith.mulf %152, %137 : vector<1x256xf32>
    %163 = arith.addf %161, %162 : vector<1x256xf32>
    %164 = arith.index_cast %c5_i32 : i32 to index
    %c0_42 = arith.constant 0 : index
    %165 = vector.load %arg6[%164, %c0_42] : memref<8x256xf32, #tpu.memory_space<vmem>>, vector<1x256xf32>
    tpu.vector_store %arg6[%164, %c0_42], %163 {strides = array<i32>} : memref<8x256xf32, #tpu.memory_space<vmem>>, vector<1x256xf32>,
    %c6_i32 = arith.constant 6 : i32
    %166 = arith.truncf %163 : vector<1x256xf32> to vector<1x256xbf16>
    %cst_43 = arith.constant dense<0.000000e+00> : vector<1x768xf32>
    %167 = tpu.matmul %166, %7, %cst_43 {dimension_numbers = #tpu.dot_dimension_numbers<[1], [0], [0], [1], [0, 0, 1, 1], [], []>} : vector<1x256xbf16>, vector<256x768xbf16>, vector<1x768xf32> -> vector<1x768xf32>
    %168 = arith.index_cast %c6_i32 : i32 to index
    %c0_44 = arith.constant 0 : index
    %169 = vector.load %arg7[%168, %c0_44] : memref<8x768xf32, #tpu.memory_space<vmem>>, vector<1x768xf32>
    %170 = arith.addf %169, %167 : vector<1x768xf32>
    %171 = vector.extract_strided_slice %170 {offsets = [0, 0], sizes = [1, 512], strides = [1, 1]} : vector<1x768xf32> to vector<1x512xf32>
    %172 = arith.negf %171 : vector<1x512xf32>
    %173 = math.exp %172 : vector<1x512xf32>
    %cst_45 = arith.constant 1.000000e+00 : f32
    %174 = vector.broadcast %cst_45 : f32 to vector<1x512xf32>
    %175 = arith.addf %174, %173 : vector<1x512xf32>
    %176 = arith.divf %174, %175 : vector<1x512xf32>
    %177 = vector.extract_strided_slice %176 {offsets = [0, 0], sizes = [1, 256], strides = [1, 1]} : vector<1x512xf32> to vector<1x256xf32>
    %178 = vector.extract_strided_slice %176 {offsets = [0, 256], sizes = [1, 256], strides = [1, 1]} : vector<1x512xf32> to vector<1x256xf32>
    %179 = vector.extract_strided_slice %169 {offsets = [0, 512], sizes = [1, 256], strides = [1, 1]} : vector<1x768xf32> to vector<1x256xf32>
    %180 = vector.extract_strided_slice %167 {offsets = [0, 512], sizes = [1, 256], strides = [1, 1]} : vector<1x768xf32> to vector<1x256xf32>
    %181 = arith.addf %180, %8 : vector<1x256xf32>
    %182 = arith.mulf %177, %181 : vector<1x256xf32>
    %183 = arith.addf %179, %182 : vector<1x256xf32>
    %184 = math.tanh %183 : vector<1x256xf32>
    %cst_46 = arith.constant 1.000000e+00 : f32
    %185 = vector.broadcast %cst_46 : f32 to vector<1x256xf32>
    %186 = arith.subf %185, %178 : vector<1x256xf32>
    %187 = arith.mulf %186, %184 : vector<1x256xf32>
    %188 = arith.mulf %178, %163 : vector<1x256xf32>
    %189 = arith.addf %187, %188 : vector<1x256xf32>
    %190 = arith.index_cast %c6_i32 : i32 to index
    %c0_47 = arith.constant 0 : index
    %191 = vector.load %arg6[%190, %c0_47] : memref<8x256xf32, #tpu.memory_space<vmem>>, vector<1x256xf32>
    tpu.vector_store %arg6[%190, %c0_47], %189 {strides = array<i32>} : memref<8x256xf32, #tpu.memory_space<vmem>>, vector<1x256xf32>,
    %c7_i32 = arith.constant 7 : i32
    %192 = arith.truncf %189 : vector<1x256xf32> to vector<1x256xbf16>
    %cst_48 = arith.constant dense<0.000000e+00> : vector<1x768xf32>
    %193 = tpu.matmul %192, %7, %cst_48 {dimension_numbers = #tpu.dot_dimension_numbers<[1], [0], [0], [1], [0, 0, 1, 1], [], []>} : vector<1x256xbf16>, vector<256x768xbf16>, vector<1x768xf32> -> vector<1x768xf32>
    %194 = arith.index_cast %c7_i32 : i32 to index
    %c0_49 = arith.constant 0 : index
    %195 = vector.load %arg7[%194, %c0_49] : memref<8x768xf32, #tpu.memory_space<vmem>>, vector<1x768xf32>
    %196 = arith.addf %195, %193 : vector<1x768xf32>
    %197 = vector.extract_strided_slice %196 {offsets = [0, 0], sizes = [1, 512], strides = [1, 1]} : vector<1x768xf32> to vector<1x512xf32>
    %198 = arith.negf %197 : vector<1x512xf32>
    %199 = math.exp %198 : vector<1x512xf32>
    %cst_50 = arith.constant 1.000000e+00 : f32
    %200 = vector.broadcast %cst_50 : f32 to vector<1x512xf32>
    %201 = arith.addf %200, %199 : vector<1x512xf32>
    %202 = arith.divf %200, %201 : vector<1x512xf32>
    %203 = vector.extract_strided_slice %202 {offsets = [0, 0], sizes = [1, 256], strides = [1, 1]} : vector<1x512xf32> to vector<1x256xf32>
    %204 = vector.extract_strided_slice %202 {offsets = [0, 256], sizes = [1, 256], strides = [1, 1]} : vector<1x512xf32> to vector<1x256xf32>
    %205 = vector.extract_strided_slice %195 {offsets = [0, 512], sizes = [1, 256], strides = [1, 1]} : vector<1x768xf32> to vector<1x256xf32>
    %206 = vector.extract_strided_slice %193 {offsets = [0, 512], sizes = [1, 256], strides = [1, 1]} : vector<1x768xf32> to vector<1x256xf32>
    %207 = arith.addf %206, %8 : vector<1x256xf32>
    %208 = arith.mulf %203, %207 : vector<1x256xf32>
    %209 = arith.addf %205, %208 : vector<1x256xf32>
    %210 = math.tanh %209 : vector<1x256xf32>
    %cst_51 = arith.constant 1.000000e+00 : f32
    %211 = vector.broadcast %cst_51 : f32 to vector<1x256xf32>
    %212 = arith.subf %211, %204 : vector<1x256xf32>
    %213 = arith.mulf %212, %210 : vector<1x256xf32>
    %214 = arith.mulf %204, %189 : vector<1x256xf32>
    %215 = arith.addf %213, %214 : vector<1x256xf32>
    %216 = arith.index_cast %c7_i32 : i32 to index
    %c0_52 = arith.constant 0 : index
    %217 = vector.load %arg6[%216, %c0_52] : memref<8x256xf32, #tpu.memory_space<vmem>>, vector<1x256xf32>
    tpu.vector_store %arg6[%216, %c0_52], %215 {strides = array<i32>} : memref<8x256xf32, #tpu.memory_space<vmem>>, vector<1x256xf32>,
    %c8_i32 = arith.constant 8 : i32
    return
  }
}

</mosaic_0001>

<bundles_post_ra>
// kernel: tpu_custom_call.1
= control target key start
LH: loop header
LB: loop body
LE: loop exit
PB: predicated region body
PF: predicated region fallthrough
CT: control target
= control target key end

     0   :  { %11 = vsyncpa [#allocation4], 0  ;;  %s5494_s0 = inlined_call_operand.hbm [shape: bf16[8,256], index: 0, kind: input, shape index: {}]   ;;  %s5495_s1 = inlined_call_operand.hbm [shape: bf16[256,768], index: 1, kind: input, shape index: {}]   ;;  %s5496_s2 = inlined_call_operand.hbm [shape: bf16[256,768], index: 2, kind: input, shape index: {}]   ;;  %s5497_s3 = inlined_call_operand.vmem [shape: f32[1,768], index: 3, kind: input, shape index: {}]   ;;  %s5498_s4 = inlined_call_operand.vmem [shape: f32[1,256], index: 4, kind: input, shape index: {}]   ;;  %s5499_s5 = inlined_call_operand.vmem [shape: f32[1,256], index: 5, kind: input, shape index: {}]   ;;  %s5500_s6 = inlined_call_operand.hbm [shape: f32[8,256], index: 6, kind: output, shape index: {}]  }
   0x1   :  { %12 = vsyncpa [#allocation7], 0 }
   0x2   :  { %13 = vsyncpa [#allocation5], 0  ;;  %s4059_s21 = smov [#allocation6]   ;;  %s3965_s25 = scalar_lea.hbm %s5495_s1, 12288 }
   0x3   :  { %s29_s22 = sshll.u32 %s4059_s21, 4  ;;  %p3966_p0 = scmp.ne.s32.totalorder %s5495_s1, %s3965_s25  ;;  %s30_s22 = int_to_ptr.vmem [resolvable:$true] %s29_s22 }
   0x4   :  { %p3969_p1 = scmp.lt.u32.totalorder %s3965_s25, %s5495_s1 }
   0x6   :  { %p3971_p2 = pnand %p3969_p1, %p3966_p0 }
   0x8   :  { %3974 = shalt.err (!%p3971_p2)
}
   0x9   :  { %s3975_s30 = scalar_lea.vmem %s30_s22, 12288  ;;  %p3980_p4 = scmp.lt.s32.totalorder %s30_s22, %s30_s22 }
   0xa   :  { %p3976_p3 = scmp.ne.s32.totalorder %s30_s22, %s3975_s30  ;;  %p3981_p5 = scmp.lt.s32.totalorder %s3975_s30, %s3975_s30 }
   0xc   :  { %p3982_p6 = por %p3981_p5, %p3980_p4 }
   0xe   :  { %p3983_p7 = pnand %p3982_p6, %p3976_p3 }
  0x10   :  { %3986 = shalt.err (!%p3983_p7)
}
  0x11   :  { %s4060_s7 = smov 384   ;;  %s4061_s8 = smov 24  }
  0x12   :  { %35 = dma.hbm_to_vmem [thread:$0]  %s5495_s1, 12288, %s30_s22, [#allocation7], %s4060_s7, %s4060_s7, %s4061_s8  }
  0x13   :  { %s4062_s11 = smov [#allocation3]   ;;  %s4063_s13 = smov [#allocation8]  }
  0x14   :  { %s20_s12 = sshll.u32 %s4062_s11, 4  ;;  %s41_s14 = sshll.u32 %s4063_s13, 4  ;;  %s21_s12 = int_to_ptr.vmem [resolvable:$true] %s20_s12  ;;  %s42_s14 = int_to_ptr.vmem [resolvable:$true] %s41_s14 }
  0x15   :  { %s3987_s17 = scalar_lea.hbm %s5494_s0, 128 }
  0x16   :  { %p3988_p8 = scmp.ne.s32.totalorder %s5494_s0, %s3987_s17  ;;  %p3991_p9 = scmp.lt.u32.totalorder %s3987_s17, %s5494_s0 }
  0x18   :  { %p3993_p10 = pnand %p3991_p9, %p3988_p8 }
  0x1a   :  { %3996 = shalt.err (!%p3993_p10)
}
  0x1b   :  { %s3997_s1 = scalar_lea.vmem %s21_s12, 128  ;;  %p4002_p12 = scmp.lt.s32.totalorder %s21_s12, %s21_s12 }
  0x1c   :  { %p3998_p11 = scmp.ne.s32.totalorder %s21_s12, %s3997_s1  ;;  %p4003_p13 = scmp.lt.s32.totalorder %s3997_s1, %s3997_s1 }
  0x1e   :  { %p4004_p0 = por %p4003_p13, %p4002_p12 }
  0x20   :  { %p4005_p1 = pnand %p4004_p0, %p3998_p11 }
  0x22   :  { %4008 = shalt.err (!%p4005_p1)
}
  0x23   :  { %23 = dma.hbm_to_vmem [thread:$0]  %s5494_s0, 128, %s21_s12, [#allocation4]  }
  0x24   :  { %s4009_s26 = scalar_lea.hbm %s5496_s2, 12288 }
  0x25   :  { %p4010_p2 = scmp.ne.s32.totalorder %s5496_s2, %s4009_s26  ;;  %p4013_p3 = scmp.lt.u32.totalorder %s4009_s26, %s5496_s2 }
  0x27   :  { %p4015_p4 = pnand %p4013_p3, %p4010_p2 }
  0x29   :  { %4018 = shalt.err (!%p4015_p4)
}
  0x2a   :  { %s4019_s9 = scalar_lea.vmem %s42_s14, 12288  ;;  %p4024_p6 = scmp.lt.s32.totalorder %s42_s14, %s42_s14 }
  0x2b   :  { %p4020_p5 = scmp.ne.s32.totalorder %s42_s14, %s4019_s9  ;;  %p4025_p7 = scmp.lt.s32.totalorder %s4019_s9, %s4019_s9 }
  0x2d   :  { %p4026_p8 = por %p4025_p7, %p4024_p6 }
  0x2f   :  { %p4027_p9 = pnand %p4026_p8, %p4020_p5 }
  0x31   :  { %4030 = shalt.err (!%p4027_p9)
}
  0x32   :  { %47 = dma.hbm_to_vmem [thread:$0]  %s5496_s2, 12288, %s42_s14, [#allocation7], %s4060_s7, %s4060_s7, %s4061_s8  }
  0x33   :  { %4053 = dma.done.wait [#allocation4], 128  }
  0x34   :  { %4054 = vsyncadd [#allocation4], 4294967168 }
  0x35   :  { %4055 = dma.done.wait [#allocation7], 24576  }
  0x36   :  { %4056 = vsyncadd [#allocation7], 4294942720  ;;  %v3464_v0 = vld [vmem:[#allocation6 + $0x4] ss:$24 sps:$4 sm:$0xff]   ;;  %v3468_v2 = vld [vmem:[#allocation6] ss:$24 sps:$4 sm:$0xff]  }
  0x37   :  { %v3466_v1 = vld [vmem:[#allocation6 + $0xc] ss:$24 sps:$4 sm:$0xff]   ;;  %679 = vmatprep.subr.bf16.mxu0 %v3464_v0  ;;  %v3469_v3 = vld [vmem:[#allocation6 + $0x8] ss:$24 sps:$4 sm:$0xff]   ;;  %v3472_v5 = vld [vmem:[#allocation6 + $0x3c] ss:$24 sps:$4 sm:$0xff]  }
  0x38   :  { %720 = vmatprep.subr.bf16.mxu1 %v3466_v1  ;;  %v3470_v4 = vld [vmem:[#allocation6 + $0x34] ss:$24 sps:$4 sm:$0xff]   ;;  %680 = vmatpush1.bf16.msra.mxu0 %v3468_v2  ;;  %v3474_v6 = vld [vmem:[#allocation6 + $0x30] ss:$24 sps:$4 sm:$0xff]   ;;  %v3476_v8 = vld [vmem:[#allocation6 + $0x64] ss:$24 sps:$4 sm:$0xff]  }
  0x39   :  { %721 = vmatpush1.bf16.msra.mxu1 %v3469_v3  ;;  %681 = vmatprep.subr.bf16.mxu0 %v3470_v4  ;;  %v3475_v7 = vld [vmem:[#allocation6 + $0x38] ss:$24 sps:$4 sm:$0xff]   ;;  %v3478_v9 = vld [vmem:[#allocation6 + $0x6c] ss:$24 sps:$4 sm:$0xff]   ;;  %v3481_v11 = vld [vmem:[#allocation6 + $0x68] ss:$24 sps:$4 sm:$0xff]  }
  0x3a   :  { %722 = vmatprep.subr.bf16.mxu1 %v3472_v5  ;;  %v3480_v10 = vld [vmem:[#allocation6 + $0x60] ss:$24 sps:$4 sm:$0xff]   ;;  %v3482_v12 = vld [vmem:[#allocation6 + $0x94] ss:$24 sps:$4 sm:$0xff]   ;;  %v3486_v14 = vld [vmem:[#allocation6 + $0x90] ss:$24 sps:$4 sm:$0xff]  }
  0x3b   :  { %v3484_v13 = vld [vmem:[#allocation6 + $0x9c] ss:$24 sps:$4 sm:$0xff]   ;;  %v3487_v15 = vld [vmem:[#allocation6 + $0x98] ss:$24 sps:$4 sm:$0xff]   ;;  %v3490_v17 = vld [vmem:[#allocation6 + $0xcc] ss:$24 sps:$4 sm:$0xff]  }
  0x3c   :  { %682 = vmatpush1.bf16.msra.mxu0 %v3474_v6  ;;  %v3488_v16 = vld [vmem:[#allocation6 + $0xc4] ss:$24 sps:$4 sm:$0xff]   ;;  %v3492_v18 = vld [vmem:[#allocation6 + $0xc0] ss:$24 sps:$4 sm:$0xff]   ;;  %v3494_v20 = vld [vmem:[#allocation6 + $0xf4] ss:$24 sps:$4 sm:$0xff]  }
  0x3d   :  { %723 = vmatpush1.bf16.msra.mxu1 %v3475_v7  ;;  %683 = vmatprep.subr.bf16.mxu0 %v3476_v8  ;;  %v3493_v19 = vld [vmem:[#allocation6 + $0xc8] ss:$24 sps:$4 sm:$0xff]   ;;  %v3496_v21 = vld [vmem:[#allocation6 + $0xfc] ss:$24 sps:$4 sm:$0xff]   ;;  %v3499_v23 = vld [vmem:[#allocation6 + $0xf8] ss:$24 sps:$4 sm:$0xff]  }
  0x3e   :  { %724 = vmatprep.subr.bf16.mxu1 %v3478_v9  ;;  %v3498_v22 = vld [vmem:[#allocation6 + $0xf0] ss:$24 sps:$4 sm:$0xff]   ;;  %v3500_v24 = vld [vmem:[#allocation6 + $0x124] ss:$24 sps:$4 sm:$0xff]   ;;  %v3504_v26 = vld [vmem:[#allocation6 + $0x120] ss:$24 sps:$4 sm:$0xff]  }
  0x3f   :  { %v3502_v25 = vld [vmem:[#allocation6 + $0x12c] ss:$24 sps:$4 sm:$0xff]   ;;  %v3505_v27 = vld [vmem:[#allocation6 + $0x128] ss:$24 sps:$4 sm:$0xff]   ;;  %v3508_v29 = vld [vmem:[#allocation6 + $0x15c] ss:$24 sps:$4 sm:$0xff]  }
  0x40   :  { %684 = vmatpush1.bf16.msra.mxu0 %v3480_v10  ;;  %v3506_v28 = vld [vmem:[#allocation6 + $0x154] ss:$24 sps:$4 sm:$0xff]   ;;  %v3510_v30 = vld [vmem:[#allocation6 + $0x150] ss:$24 sps:$4 sm:$0xff]   ;;  %v3512_v32 = vld [vmem:[#allocation6 + $0x184] ss:$24 sps:$4 sm:$0xff]  }
  0x41   :  { %725 = vmatpush1.bf16.msra.mxu1 %v3481_v11  ;;  %685 = vmatprep.subr.bf16.mxu0 %v3482_v12  ;;  %v3511_v31 = vld [vmem:[#allocation6 + $0x158] ss:$24 sps:$4 sm:$0xff]   ;;  %v3514_v33 = vld [vmem:[#allocation6 + $0x18c] ss:$24 sps:$4 sm:$0xff]   ;;  %v3517_v35 = vld [vmem:[#allocation6 + $0x188] ss:$24 sps:$4 sm:$0xff]  }
  0x42   :  { %726 = vmatprep.subr.bf16.mxu1 %v3484_v13  ;;  %v3516_v34 = vld [vmem:[#allocation6 + $0x180] ss:$24 sps:$4 sm:$0xff]   ;;  %v3518_v36 = vld [vmem:[#allocation6 + $0x1b4] ss:$24 sps:$4 sm:$0xff]   ;;  %v3522_v38 = vld [vmem:[#allocation6 + $0x1b0] ss:$24 sps:$4 sm:$0xff]  }
  0x43   :  { %v3520_v37 = vld [vmem:[#allocation6 + $0x1bc] ss:$24 sps:$4 sm:$0xff]   ;;  %v3523_v39 = vld [vmem:[#allocation6 + $0x1b8] ss:$24 sps:$4 sm:$0xff]   ;;  %v3526_v41 = vld [vmem:[#allocation6 + $0x1ec] ss:$24 sps:$4 sm:$0xff]  }
  0x44   :  { %686 = vmatpush1.bf16.msra.mxu0 %v3486_v14  ;;  %v3524_v40 = vld [vmem:[#allocation6 + $0x1e4] ss:$24 sps:$4 sm:$0xff]   ;;  %v3528_v42 = vld [vmem:[#allocation6 + $0x1e0] ss:$24 sps:$4 sm:$0xff]   ;;  %v3530_v44 = vld [vmem:[#allocation6 + $0x214] ss:$24 sps:$4 sm:$0xff]  }
  0x45   :  { %727 = vmatpush1.bf16.msra.mxu1 %v3487_v15  ;;  %687 = vmatprep.subr.bf16.mxu0 %v3488_v16  ;;  %v3529_v43 = vld [vmem:[#allocation6 + $0x1e8] ss:$24 sps:$4 sm:$0xff]   ;;  %v3532_v45 = vld [vmem:[#allocation6 + $0x21c] ss:$24 sps:$4 sm:$0xff]   ;;  %v3535_v49 = vld [vmem:[#allocation6 + $0x218] ss:$24 sps:$4 sm:$0xff]  }
  0x46   :  { %728 = vmatprep.subr.bf16.mxu1 %v3490_v17  ;;  %v63_v46 = vld [vmem:[#allocation3] sm:$0xff]  ;;  %v3534_v47 = vld [vmem:[#allocation6 + $0x210] ss:$24 sps:$4 sm:$0xff]   ;;  %v3538_v51 = vld [vmem:[#allocation6 + $0x24c] ss:$24 sps:$4 sm:$0xff]   ;;  %v5501_v17 = vlaneseq }
  0x47   :  { %v3256_v48 = vcombine.high %v63_v46, %v63_v46  ;;  %v3536_v50 = vld [vmem:[#allocation6 + $0x244] ss:$24 sps:$4 sm:$0xff]   ;;  %v3540_v52 = vld [vmem:[#allocation6 + $0x240] ss:$24 sps:$4 sm:$0xff]   ;;  %v3542_v54 = vld [vmem:[#allocation6 + $0x274] ss:$24 sps:$4 sm:$0xff]   ;;  %v4145_v4 = vcombine.low %v63_v46, %v63_v46 }
  0x48   :  { %688 = vmatpush1.bf16.msra.mxu0 %v3492_v18  ;;  %v3541_v53 = vld [vmem:[#allocation6 + $0x248] ss:$24 sps:$4 sm:$0xff]   ;;  %v3544_v55 = vld [vmem:[#allocation6 + $0x27c] ss:$24 sps:$4 sm:$0xff]   ;;  %v3547_v57 = vld [vmem:[#allocation6 + $0x278] ss:$24 sps:$4 sm:$0xff]  }
  0x49   :  { %729 = vmatpush1.bf16.msra.mxu1 %v3493_v19  ;;  %689 = vmatprep.subr.bf16.mxu0 %v3494_v20  ;;  %v3546_v56 = vld [vmem:[#allocation6 + $0x270] ss:$24 sps:$4 sm:$0xff]   ;;  %v3548_v58 = vld [vmem:[#allocation6 + $0x2a4] ss:$24 sps:$4 sm:$0xff]   ;;  %v3552_v60 = vld [vmem:[#allocation6 + $0x2a0] ss:$24 sps:$4 sm:$0xff]  }
  0x4a   :  { %730 = vmatprep.subr.bf16.mxu1 %v3496_v21  ;;  %711 = vmatprep.mubr.bf16.mxu0 %v3256_v48  ;;  %v3550_v59 = vld [vmem:[#allocation6 + $0x2ac] ss:$24 sps:$4 sm:$0xff]   ;;  %v3553_v61 = vld [vmem:[#allocation6 + $0x2a8] ss:$24 sps:$4 sm:$0xff]   ;;  %v3556_v63 = vld [vmem:[#allocation6 + $0x2dc] ss:$24 sps:$4 sm:$0xff]  }
  0x4b   :  { %752 = vmatprep.mubr.bf16.mxu1 %v3256_v48  ;;  %v3554_v62 = vld [vmem:[#allocation6 + $0x2d4] ss:$24 sps:$4 sm:$0xff]   ;;  %v3558_v0 = vld [vmem:[#allocation6 + $0x2d0] ss:$24 sps:$4 sm:$0xff]   ;;  %v4143_v3 = vld [vmem:[#allocation8 + $0x4] ss:$24 sps:$4 sm:$0xff]  }
  0x4c   :  { %690 = vmatpush1.bf16.msra.mxu0 %v3498_v22  ;;  %v3559_v1 = vld [vmem:[#allocation6 + $0x2d8] ss:$24 sps:$4 sm:$0xff]   ;;  %v3564_v2 = vld [vmem:[#allocation6 + $0x14] ss:$24 sps:$4 sm:$0xff]   ;;  %v3570_v7 = vld [vmem:[#allocation6 + $0x44] ss:$24 sps:$4 sm:$0xff]  }
  0x4d   :  { %731 = vmatpush1.bf16.msra.mxu1 %v3499_v23  ;;  %691 = vmatprep.subr.bf16.mxu0 %v3500_v24  ;;  %v3562_v5 = vld [vmem:[#allocation6 + $0x10] ss:$24 sps:$4 sm:$0xff]   ;;  %v4147_v6 = vld [vmem:[#allocation8] ss:$24 sps:$4 sm:$0xff]   ;;  %v4150_v8 = vld [vmem:[#allocation8 + $0x34] ss:$24 sps:$4 sm:$0xff]  }
  0x4e   :  { %732 = vmatprep.subr.bf16.mxu1 %v3502_v25  ;;  %v3568_v9 = vld [vmem:[#allocation6 + $0x40] ss:$24 sps:$4 sm:$0xff]   ;;  %v4155_v10 = vld [vmem:[#allocation8 + $0x30] ss:$24 sps:$4 sm:$0xff]   ;;  %v3576_v11 = vld [vmem:[#allocation6 + $0x74] ss:$24 sps:$4 sm:$0xff]  }
  0x4f   :  { %v4158_v12 = vld [vmem:[#allocation8 + $0x64] ss:$24 sps:$4 sm:$0xff]   ;;  %v3574_v13 = vld [vmem:[#allocation6 + $0x70] ss:$24 sps:$4 sm:$0xff]   ;;  %v4161_v14 = vld [vmem:[#allocation8 + $0x60] ss:$24 sps:$4 sm:$0xff]  }
  0x50   :  { %692 = vmatpush1.bf16.msra.mxu0 %v3504_v26  ;;  %v3582_v15 = vld [vmem:[#allocation6 + $0xa4] ss:$24 sps:$4 sm:$0xff]   ;;  %v4164_v16 = vld [vmem:[#allocation8 + $0x94] ss:$24 sps:$4 sm:$0xff]   ;;  %v3580_v18 = vld [vmem:[#allocation6 + $0xa0] ss:$24 sps:$4 sm:$0xff]  }
  0x51   :  { %733 = vmatpush1.bf16.msra.mxu1 %v3505_v27  ;;  %693 = vmatprep.subr.bf16.mxu0 %v3506_v28  ;;  %v4167_v19 = vld [vmem:[#allocation8 + $0x90] ss:$24 sps:$4 sm:$0xff]   ;;  %v3588_v20 = vld [vmem:[#allocation6 + $0xd4] ss:$24 sps:$4 sm:$0xff]   ;;  %v4170_v21 = vld [vmem:[#allocation8 + $0xc4] ss:$24 sps:$4 sm:$0xff]  }
  0x52   :  { %734 = vmatprep.subr.bf16.mxu1 %v3508_v29  ;;  %v4173_v22 = vshrl.u32 %v5501_v17, 7  ;;  %v3586_v23 = vld [vmem:[#allocation6 + $0xd0] ss:$24 sps:$4 sm:$0xff]   ;;  %v4176_v24 = vld [vmem:[#allocation8 + $0xc0] ss:$24 sps:$4 sm:$0xff]  }
  0x53   :  { %v3594_v25 = vld [vmem:[#allocation6 + $0x104] ss:$24 sps:$4 sm:$0xff]   ;;  %v4179_v26 = vld [vmem:[#allocation8 + $0xf4] ss:$24 sps:$4 sm:$0xff]   ;;  %v3592_v28 = vld [vmem:[#allocation6 + $0x100] ss:$24 sps:$4 sm:$0xff]  }
  0x54   :  { %694 = vmatpush1.bf16.msra.mxu0 %v3510_v30  ;;  %5747 = vst [vmem:[#allocation13_spill] sm:$0xff] %v4173_v22  ;;  %v4182_v27 = vsub.s32 1, %v4173_v22  ;;  %v4185_v29 = vld [vmem:[#allocation8 + $0xf0] ss:$24 sps:$4 sm:$0xff]   ;;  %v3600_v30 = vld [vmem:[#allocation6 + $0x134] ss:$24 sps:$4 sm:$0xff]  }
  0x55   :  { %735 = vmatpush1.bf16.msra.mxu1 %v3511_v31  ;;  %695 = vmatprep.subr.bf16.mxu0 %v3512_v32  ;;  %v4188_v31 = vld [vmem:[#allocation8 + $0x124] ss:$24 sps:$4 sm:$0xff]   ;;  %v4193_v32 = vld [vmem:[%s5499_s5] sm:$0x3]  ;;  %v4216_v46 = vld [vmem:[#allocation8 + $0x1b4] ss:$24 sps:$4 sm:$0xff]  }
  0x56   :  { %736 = vmatprep.subr.bf16.mxu1 %v3514_v33  ;;  %5748 = vst [vmem:[#allocation14_spill] sm:$0xff] %v4182_v27  ;;  %5749 = vst [vmem:[#allocation15_spill] sm:$0xff] %v4193_v32  ;;  %v914_v33 = vrot.slane %v4193_v32, %v4182_v27  ;;  %v4346_v17 = vld [vmem:[#allocation8 + $0x128] ss:$24 sps:$4 sm:$0xff]   ;;  %v4402_v27 = vld [vmem:[#allocation8 + $0x224] ss:$24 sps:$4 sm:$0xff]  }
  0x57   :  { %5778 = vst [vmem:[#allocation44_spill] sm:$0xff] %v4346_v17  ;;  %5797 = vst [vmem:[#allocation63_spill] sm:$0xff] %v4402_v27 }
  0x58   :  { %696 = vmatpush1.bf16.msra.mxu0 %v3516_v34  ;;  %v3598_v34 = vld [vmem:[#allocation6 + $0x130] ss:$24 sps:$4 sm:$0xff]  }
  0x59   :  { %737 = vmatpush1.bf16.msra.mxu1 %v3517_v35  ;;  %697 = vmatprep.subr.bf16.mxu0 %v3518_v36  ;;  %v4198_v35 = vld [vmem:[#allocation8 + $0x120] ss:$24 sps:$4 sm:$0xff]   ;;  %v3606_v36 = vld [vmem:[#allocation6 + $0x164] ss:$24 sps:$4 sm:$0xff]  }
  0x5a   :  { %738 = vmatprep.subr.bf16.mxu1 %v3520_v37  ;;  %v4200_v37 = vpack.c.bf16 %v914_v33, %v914_v33  ;;  %v4272_v33 = vld [vmem:[#allocation8 + $0x10] ss:$24 sps:$4 sm:$0xff]  }
  0x5b   :  { %5757 = vst [vmem:[#allocation23_spill] sm:$0xff] %v4272_v33 }
  0x5c   :  { %698 = vmatpush1.bf16.msra.mxu0 %v3522_v38  ;;  %v4203_v38 = vld [vmem:[#allocation8 + $0x154] ss:$24 sps:$4 sm:$0xff]  }
  0x5d   :  { %739 = vmatpush1.bf16.msra.mxu1 %v3523_v39  ;;  %699 = vmatprep.subr.bf16.mxu0 %v3524_v40  ;;  %v3604_v39 = vld [vmem:[#allocation6 + $0x160] ss:$24 sps:$4 sm:$0xff]   ;;  %v4207_v40 = vld [vmem:[#allocation8 + $0x150] ss:$24 sps:$4 sm:$0xff]  }
  0x5e   :  { %740 = vmatprep.subr.bf16.mxu1 %v3526_v41  ;;  %v3612_v41 = vld [vmem:[#allocation6 + $0x194] ss:$24 sps:$4 sm:$0xff]  }
  0x60   :  { %700 = vmatpush1.bf16.msra.mxu0 %v3528_v42  ;;  %v4210_v42 = vld [vmem:[#allocation8 + $0x184] ss:$24 sps:$4 sm:$0xff]  }
  0x61   :  { %741 = vmatpush1.bf16.msra.mxu1 %v3529_v43  ;;  %701 = vmatprep.subr.bf16.mxu0 %v3530_v44  ;;  %v3610_v43 = vld [vmem:[#allocation6 + $0x190] ss:$24 sps:$4 sm:$0xff]   ;;  %v4213_v44 = vld [vmem:[#allocation8 + $0x180] ss:$24 sps:$4 sm:$0xff]  }
  0x62   :  { %742 = vmatprep.subr.bf16.mxu1 %v3532_v45  ;;  %v3618_v45 = vld [vmem:[#allocation6 + $0x1c4] ss:$24 sps:$4 sm:$0xff]  }
  0x64   :  { %702 = vmatpush1.bf16.msra.mxu0 %v3534_v47  ;;  %v3616_v47 = vld [vmem:[#allocation6 + $0x1c0] ss:$24 sps:$4 sm:$0xff]  }
  0x65   :  { %743 = vmatpush1.bf16.msra.mxu1 %v3535_v49  ;;  %703 = vmatprep.subr.bf16.mxu0 %v3536_v50  ;;  %v3624_v49 = vld [vmem:[#allocation6 + $0x1f4] ss:$24 sps:$4 sm:$0xff]   ;;  %v4222_v50 = vld [vmem:[#allocation8 + $0x1e4] ss:$24 sps:$4 sm:$0xff]  }
  0x66   :  { %744 = vmatprep.subr.bf16.mxu1 %v3538_v51  ;;  %v3622_v51 = vld [vmem:[#allocation6 + $0x1f0] ss:$24 sps:$4 sm:$0xff]  }
  0x68   :  { %704 = vmatpush1.bf16.msra.mxu0 %v3540_v52  ;;  %v4225_v52 = vld [vmem:[#allocation8 + $0x1e0] ss:$24 sps:$4 sm:$0xff]  }
  0x69   :  { %745 = vmatpush1.bf16.msra.mxu1 %v3541_v53  ;;  %705 = vmatprep.subr.bf16.mxu0 %v3542_v54  ;;  %v3630_v53 = vld [vmem:[#allocation6 + $0x224] ss:$24 sps:$4 sm:$0xff]   ;;  %v4228_v54 = vld [vmem:[#allocation8 + $0x214] ss:$24 sps:$4 sm:$0xff]  }
  0x6a   :  { %746 = vmatprep.subr.bf16.mxu1 %v3544_v55  ;;  %v3628_v55 = vld [vmem:[#allocation6 + $0x220] ss:$24 sps:$4 sm:$0xff]  }
  0x6c   :  { %706 = vmatpush1.bf16.msra.mxu0 %v3546_v56  ;;  %v4231_v56 = vld [vmem:[#allocation8 + $0x210] ss:$24 sps:$4 sm:$0xff]  }
  0x6d   :  { %747 = vmatpush1.bf16.msra.mxu1 %v3547_v57  ;;  %707 = vmatprep.subr.bf16.mxu0 %v3548_v58  ;;  %v3636_v57 = vld [vmem:[#allocation6 + $0x254] ss:$24 sps:$4 sm:$0xff]   ;;  %v4234_v58 = vld [vmem:[#allocation8 + $0x244] ss:$24 sps:$4 sm:$0xff]  }
  0x6e   :  { %748 = vmatprep.subr.bf16.mxu1 %v3550_v59  ;;  %v3634_v59 = vld [vmem:[#allocation6 + $0x250] ss:$24 sps:$4 sm:$0xff]  }
  0x70   :  { %708 = vmatpush1.bf16.msra.mxu0 %v3552_v60  ;;  %v4237_v60 = vld [vmem:[#allocation8 + $0x240] ss:$24 sps:$4 sm:$0xff]  }
  0x71   :  { %749 = vmatpush1.bf16.msra.mxu1 %v3553_v61  ;;  %709 = vmatprep.subr.bf16.mxu0 %v3554_v62  ;;  %v3642_v61 = vld [vmem:[#allocation6 + $0x284] ss:$24 sps:$4 sm:$0xff]   ;;  %v4240_v62 = vld [vmem:[#allocation8 + $0x274] ss:$24 sps:$4 sm:$0xff]  }
  0x72   :  { %750 = vmatprep.subr.bf16.mxu1 %v3556_v63  ;;  %v3640_v63 = vld [vmem:[#allocation6 + $0x280] ss:$24 sps:$4 sm:$0xff]  }
  0x74   :  { %710 = vmatpush1.bf16.msra.mxu0 %v3558_v0  ;;  %v4243_v0 = vld [vmem:[#allocation8 + $0x270] ss:$24 sps:$4 sm:$0xff]  }
  0x75   :  { %751 = vmatpush1.bf16.msra.mxu1 %v3559_v1  ;;  %761 = vmatprep.subr.bf16.mxu0 %v3564_v2  ;;  %5750 = vst [vmem:[#allocation16_spill] sm:$0xff] %v4243_v0  ;;  %v3648_v1 = vld [vmem:[#allocation6 + $0x2b4] ss:$24 sps:$4 sm:$0xff]   ;;  %v4246_v2 = vld [vmem:[#allocation8 + $0x2a4] ss:$24 sps:$4 sm:$0xff]  }
  0x76   :  { %1399 = vmatprep.subr.bf16.mxu1 %v4143_v3  ;;  %5751 = vst [vmem:[#allocation17_spill] sm:$0xff] %v4246_v2 }
  0x77   :  { %712 = vmatmul.mubr.bf16.vlgmr.msra.gmra.mrb[0].mxu0 %v4145_v4 }
  0x78   :  { %753 = vmatmul.mubr.bf16.vlgmr.msra.gmra.mrb[0].mxu1 %v4145_v4  ;;  %762 = vmatpush1.bf16.msra.mxu0 %v3562_v5  ;;  %v3646_v5 = vld [vmem:[#allocation6 + $0x2b0] ss:$24 sps:$4 sm:$0xff]  }
  0x79   :  { %1400 = vmatpush1.bf16.msra.mxu1 %v4147_v6  ;;  %763 = vmatprep.subr.bf16.mxu0 %v3570_v7  ;;  %v4249_v7 = vsub.s32 0, %v4173_v22  ;;  %v4414_v22 = vld [vmem:[#allocation8 + $0x254] ss:$24 sps:$4 sm:$0xff]  }
  0x7a   :  { %1401 = vmatprep.subr.bf16.mxu1 %v4150_v8  ;;  %793 = vmatprep.mubr.bf16.mxu0 %v3256_v48  ;;  %v4219_v48 = vld [vmem:[#allocation8 + $0x1b0] ss:$24 sps:$4 sm:$0xff]   ;;  %5801 = vst [vmem:[#allocation67_spill] sm:$0xff] %v4414_v22 }
  0x7b   :  { %1431 = vmatprep.mubr.bf16.mxu1 %v4200_v37  ;;  %5752 = vst [vmem:[#allocation18_spill] sm:$0xff] %v4249_v7 }
  0x7c   :  { %764 = vmatpush1.bf16.msra.mxu0 %v3568_v9  ;;  %v4252_v9 = vld [vmem:[#allocation8 + $0x2a0] ss:$24 sps:$4 sm:$0xff]  }
  0x7d   :  { %1402 = vmatpush1.bf16.msra.mxu1 %v4155_v10  ;;  %765 = vmatprep.subr.bf16.mxu0 %v3576_v11  ;;  %5753 = vst [vmem:[#allocation19_spill] sm:$0xff] %v4252_v9  ;;  %v3654_v11 = vld [vmem:[#allocation6 + $0x2e4] ss:$24 sps:$4 sm:$0xff]  }
  0x7e   :  { %1403 = vmatprep.subr.bf16.mxu1 %v4158_v12 }
  0x80   :  { %766 = vmatpush1.bf16.msra.mxu0 %v3574_v13  ;;  %v4255_v13 = vld [vmem:[#allocation8 + $0x2d4] ss:$24 sps:$4 sm:$0xff]  }
  0x81   :  { %1404 = vmatpush1.bf16.msra.mxu1 %v4161_v14  ;;  %767 = vmatprep.subr.bf16.mxu0 %v3582_v15  ;;  %5754 = vst [vmem:[#allocation20_spill] sm:$0xff] %v4255_v13  ;;  %v3652_v15 = vld [vmem:[#allocation6 + $0x2e0] ss:$24 sps:$4 sm:$0xff]  }
  0x82   :  { %1405 = vmatprep.subr.bf16.mxu1 %v4164_v16 }
  0x84   :  { %768 = vmatpush1.bf16.msra.mxu0 %v3580_v18  ;;  %v910_v18 = vrot.slane %v4193_v32, %v4249_v7  ;;  %v4396_v32 = vld [vmem:[#allocation8 + $0x1f0] ss:$24 sps:$4 sm:$0xff]   ;;  %v4408_v7 = vld [vmem:[#allocation8 + $0x220] ss:$24 sps:$4 sm:$0xff]  }
  0x85   :  { %1406 = vmatpush1.bf16.msra.mxu1 %v4167_v19  ;;  %769 = vmatprep.subr.bf16.mxu0 %v3588_v20  ;;  %v4260_v20 = vld [vmem:[#allocation8 + $0x2d0] ss:$24 sps:$4 sm:$0xff]   ;;  %5795 = vst [vmem:[#allocation61_spill] sm:$0xff] %v4396_v32  ;;  %5799 = vst [vmem:[#allocation65_spill] sm:$0xff] %v4408_v7 }
  0x86   :  { %1407 = vmatprep.subr.bf16.mxu1 %v4170_v21  ;;  %5755 = vst [vmem:[#allocation21_spill] sm:$0xff] %v4260_v20 }
  0x88   :  { %770 = vmatpush1.bf16.msra.mxu0 %v3586_v23  ;;  %v4263_v23 = vld [vmem:[#allocation8 + $0xc] ss:$24 sps:$4 sm:$0xff]  }
  0x89   :  { %1408 = vmatpush1.bf16.msra.mxu1 %v4176_v24  ;;  %771 = vmatprep.subr.bf16.mxu0 %v3594_v25  ;;  %v4265_v25 = vld [vmem:[#allocation8 + $0x14] ss:$24 sps:$4 sm:$0xff]  }
  0x8a   :  { %1409 = vmatprep.subr.bf16.mxu1 %v4179_v26  ;;  %5756 = vst [vmem:[#allocation22_spill] sm:$0xff] %v4265_v25 }
  0x8c   :  { %772 = vmatpush1.bf16.msra.mxu0 %v3592_v28  ;;  %v4267_v28 = vpack.c.bf16 %v910_v18, %v910_v18  ;;  %v4342_v18 = vld [vmem:[#allocation8 + $0x134] ss:$24 sps:$4 sm:$0xff]  }
  0x8d   :  { %1410 = vmatpush1.bf16.msra.mxu1 %v4185_v29  ;;  %773 = vmatprep.subr.bf16.mxu0 %v3600_v30  ;;  %v4270_v30 = vld [vmem:[#allocation8 + $0x8] ss:$24 sps:$4 sm:$0xff]   ;;  %5777 = vst [vmem:[#allocation43_spill] sm:$0xff] %v4342_v18 }
  0x8e   :  { %1411 = vmatprep.subr.bf16.mxu1 %v4188_v31 }
  0x90   :  { %774 = vmatpush1.bf16.msra.mxu0 %v3598_v34  ;;  %v4276_v34 = vld [vmem:[#allocation8 + $0x3c] ss:$24 sps:$4 sm:$0xff]  }
  0x91   :  { %1412 = vmatpush1.bf16.msra.mxu1 %v4198_v35  ;;  %775 = vmatprep.subr.bf16.mxu0 %v3606_v36  ;;  %v4278_v36 = vld [vmem:[#allocation8 + $0x44] ss:$24 sps:$4 sm:$0xff]  }
  0x92   :  { %1413 = vmatprep.subr.bf16.mxu1 %v4203_v38  ;;  %5758 = vst [vmem:[#allocation24_spill] sm:$0xff] %v4278_v36 }
  0x94   :  { %776 = vmatpush1.bf16.msra.mxu0 %v3604_v39  ;;  %v4284_v39 = vld [vmem:[#allocation8 + $0x38] ss:$24 sps:$4 sm:$0xff]  }
  0x95   :  { %1414 = vmatpush1.bf16.msra.mxu1 %v4207_v40  ;;  %777 = vmatprep.subr.bf16.mxu0 %v3612_v41  ;;  %v4286_v41 = vld [vmem:[#allocation8 + $0x40] ss:$24 sps:$4 sm:$0xff]  }
  0x96   :  { %1415 = vmatprep.subr.bf16.mxu1 %v4210_v42  ;;  %5759 = vst [vmem:[#allocation25_spill] sm:$0xff] %v4286_v41 }
  0x98   :  { %778 = vmatpush1.bf16.msra.mxu0 %v3610_v43  ;;  %v4290_v43 = vld [vmem:[#allocation8 + $0x6c] ss:$24 sps:$4 sm:$0xff]  }
  0x99   :  { %1416 = vmatpush1.bf16.msra.mxu1 %v4213_v44  ;;  %779 = vmatprep.subr.bf16.mxu0 %v3618_v45  ;;  %5760 = vst [vmem:[#allocation26_spill] sm:$0xff] %v4290_v43  ;;  %v4292_v45 = vld [vmem:[#allocation8 + $0x74] ss:$24 sps:$4 sm:$0xff]  }
  0x9a   :  { %1417 = vmatprep.subr.bf16.mxu1 %v4216_v46  ;;  %5761 = vst [vmem:[#allocation27_spill] sm:$0xff] %v4292_v45 }
  0x9c   :  { %780 = vmatpush1.bf16.msra.mxu0 %v3616_v47  ;;  %v4300_v47 = vld [vmem:[#allocation8 + $0x70] ss:$24 sps:$4 sm:$0xff]  }
  0x9d   :  { %1418 = vmatpush1.bf16.msra.mxu1 %v4219_v48  ;;  %781 = vmatprep.subr.bf16.mxu0 %v3624_v49  ;;  %5763 = vst [vmem:[#allocation29_spill] sm:$0xff] %v4300_v47  ;;  %v4304_v49 = vld [vmem:[#allocation8 + $0x9c] ss:$24 sps:$4 sm:$0xff]  }
  0x9e   :  { %1419 = vmatprep.subr.bf16.mxu1 %v4222_v50  ;;  %5764 = vst [vmem:[#allocation30_spill] sm:$0xff] %v4304_v49 }
  0xa0   :  { %782 = vmatpush1.bf16.msra.mxu0 %v3622_v51  ;;  %v4306_v51 = vld [vmem:[#allocation8 + $0xa4] ss:$24 sps:$4 sm:$0xff]  }
  0xa1   :  { %1420 = vmatpush1.bf16.msra.mxu1 %v4225_v52  ;;  %783 = vmatprep.subr.bf16.mxu0 %v3630_v53  ;;  %5765 = vst [vmem:[#allocation31_spill] sm:$0xff] %v4306_v51  ;;  %v4312_v53 = vld [vmem:[#allocation8 + $0xa0] ss:$24 sps:$4 sm:$0xff]  }
  0xa2   :  { %1421 = vmatprep.subr.bf16.mxu1 %v4228_v54  ;;  %5767 = vst [vmem:[#allocation33_spill] sm:$0xff] %v4312_v53 }
  0xa4   :  { %784 = vmatpush1.bf16.msra.mxu0 %v3628_v55  ;;  %v4316_v55 = vld [vmem:[#allocation8 + $0xcc] ss:$24 sps:$4 sm:$0xff]  }
  0xa5   :  { %1422 = vmatpush1.bf16.msra.mxu1 %v4231_v56  ;;  %785 = vmatprep.subr.bf16.mxu0 %v3636_v57  ;;  %5768 = vst [vmem:[#allocation34_spill] sm:$0xff] %v4316_v55  ;;  %v4318_v57 = vld [vmem:[#allocation8 + $0xd4] ss:$24 sps:$4 sm:$0xff]  }
  0xa6   :  { %1423 = vmatprep.subr.bf16.mxu1 %v4234_v58  ;;  %5769 = vst [vmem:[#allocation35_spill] sm:$0xff] %v4318_v57 }
  0xa8   :  { %786 = vmatpush1.bf16.msra.mxu0 %v3634_v59  ;;  %v4322_v59 = vld [vmem:[#allocation8 + $0xc8] ss:$24 sps:$4 sm:$0xff]  }
  0xa9   :  { %1424 = vmatpush1.bf16.msra.mxu1 %v4237_v60  ;;  %787 = vmatprep.subr.bf16.mxu0 %v3642_v61  ;;  %5770 = vst [vmem:[#allocation36_spill] sm:$0xff] %v4322_v59  ;;  %v4324_v61 = vld [vmem:[#allocation8 + $0xd0] ss:$24 sps:$4 sm:$0xff]  }
  0xaa   :  { %1425 = vmatprep.subr.bf16.mxu1 %v4240_v62  ;;  %5771 = vst [vmem:[#allocation37_spill] sm:$0xff] %v4324_v61 }
  0xac   :  { %788 = vmatpush1.bf16.msra.mxu0 %v3640_v63  ;;  %v4328_v63 = vld [vmem:[#allocation8 + $0xfc] ss:$24 sps:$4 sm:$0xff]  }
  0xad   :  { %1426 = vmatpush1.bf16.msra.mxu1 %v4243_v0  ;;  %789 = vmatprep.subr.bf16.mxu0 %v3648_v1  ;;  %5772 = vst [vmem:[#allocation38_spill] sm:$0xff] %v4328_v63  ;;  %v4330_v1 = vld [vmem:[#allocation8 + $0x104] ss:$24 sps:$4 sm:$0xff]  }
  0xae   :  { %1427 = vmatprep.subr.bf16.mxu1 %v4246_v2  ;;  %5773 = vst [vmem:[#allocation39_spill] sm:$0xff] %v4330_v1  ;;  %v4444_v2 = vld [vmem:[#allocation8 + $0x2b0] ss:$24 sps:$4 sm:$0xff]   ;;  %v4450_v0 = vld [vmem:[#allocation8 + $0x2e4] ss:$24 sps:$4 sm:$0xff]  }
  0xb0   :  { %790 = vmatpush1.bf16.msra.mxu0 %v3646_v5  ;;  %v4334_v5 = vld [vmem:[#allocation8 + $0xf8] ss:$24 sps:$4 sm:$0xff]  }
  0xb1   :  { %1428 = vmatpush1.bf16.msra.mxu1 %v4252_v9  ;;  %791 = vmatprep.subr.bf16.mxu0 %v3654_v11  ;;  %5774 = vst [vmem:[#allocation40_spill] sm:$0xff] %v4334_v5  ;;  %v4336_v11 = vld [vmem:[#allocation8 + $0x100] ss:$24 sps:$4 sm:$0xff]   ;;  %v4438_v9 = vld [vmem:[#allocation8 + $0x2b4] ss:$24 sps:$4 sm:$0xff]  }
  0xb2   :  { %1429 = vmatprep.subr.bf16.mxu1 %v4255_v13  ;;  %5775 = vst [vmem:[#allocation41_spill] sm:$0xff] %v4336_v11  ;;  %v4432_v13 = vld [vmem:[#allocation8 + $0x280] ss:$24 sps:$4 sm:$0xff]  }
  0xb4   :  { %792 = vmatpush1.bf16.msra.mxu0 %v3652_v15  ;;  %v4340_v15 = vld [vmem:[#allocation8 + $0x12c] ss:$24 sps:$4 sm:$0xff]  }
  0xb5   :  { %1430 = vmatpush1.bf16.msra.mxu1 %v4260_v20  ;;  %1440 = vmatprep.subr.bf16.mxu0 %v4263_v23  ;;  %5776 = vst [vmem:[#allocation42_spill] sm:$0xff] %v4340_v15  ;;  %v4426_v20 = vld [vmem:[#allocation8 + $0x284] ss:$24 sps:$4 sm:$0xff]  }
  0xb6   :  { %1481 = vmatprep.subr.bf16.mxu1 %v4265_v25  ;;  %v4420_v25 = vld [vmem:[#allocation8 + $0x250] ss:$24 sps:$4 sm:$0xff]   ;;  %5805 = vst [vmem:[#allocation71_spill] sm:$0xff] %v4426_v20 }
  0xb7   :  { %794 = vmatmul.mubr.bf16.vlgmr.msra.gmra.mrb[4].mxu0 %v4145_v4  ;;  %v4298_v4 = vld [vmem:[#allocation8 + $0x68] ss:$24 sps:$4 sm:$0xff]   ;;  %5803 = vst [vmem:[#allocation69_spill] sm:$0xff] %v4420_v25 }
  0xb8   :  { %1432 = vmatmul.mubr.bf16.vlgmr.msra.gmra.mrb[4].mxu1 %v4267_v28  ;;  %1441 = vmatpush1.bf16.msra.mxu0 %v4270_v30  ;;  %5762 = vst [vmem:[#allocation28_spill] sm:$0xff] %v4298_v4 }
  0xb9   :  { %1482 = vmatpush1.bf16.msra.mxu1 %v4272_v33  ;;  %1442 = vmatprep.subr.bf16.mxu0 %v4276_v34  ;;  %v4390_v33 = vld [vmem:[#allocation8 + $0x1f4] ss:$24 sps:$4 sm:$0xff]  }
  0xba   :  { %1483 = vmatprep.subr.bf16.mxu1 %v4278_v36  ;;  %1472 = vmatprep.mubr.bf16.mxu0 %v4200_v37  ;;  %v4384_v36 = vld [vmem:[#allocation8 + $0x1c0] ss:$24 sps:$4 sm:$0xff]   ;;  %5793 = vst [vmem:[#allocation59_spill] sm:$0xff] %v4390_v33 }
  0xbb   :  { %1513 = vmatprep.mubr.bf16.mxu1 %v4200_v37  ;;  %v4310_v37 = vld [vmem:[#allocation8 + $0x98] ss:$24 sps:$4 sm:$0xff]   ;;  %5791 = vst [vmem:[#allocation57_spill] sm:$0xff] %v4384_v36 }
  0xbc   :  { %1443 = vmatpush1.bf16.msra.mxu0 %v4284_v39  ;;  %5766 = vst [vmem:[#allocation32_spill] sm:$0xff] %v4310_v37 }
  0xbd   :  { %1484 = vmatpush1.bf16.msra.mxu1 %v4286_v41  ;;  %1444 = vmatprep.subr.bf16.mxu0 %v4290_v43  ;;  %v4378_v41 = vld [vmem:[#allocation8 + $0x1c4] ss:$24 sps:$4 sm:$0xff]  }
  0xbe   :  { %1485 = vmatprep.subr.bf16.mxu1 %v4292_v45  ;;  %v4372_v45 = vld [vmem:[#allocation8 + $0x190] ss:$24 sps:$4 sm:$0xff]   ;;  %5789 = vst [vmem:[#allocation55_spill] sm:$0xff] %v4378_v41 }
  0xbf   :  { %5787 = vst [vmem:[#allocation53_spill] sm:$0xff] %v4372_v45 }
  0xc0   :  { %1445 = vmatpush1.bf16.msra.mxu0 %v4298_v4 }
  0xc1   :  { %1486 = vmatpush1.bf16.msra.mxu1 %v4300_v47  ;;  %1446 = vmatprep.subr.bf16.mxu0 %v4304_v49  ;;  %v4366_v47 = vld [vmem:[#allocation8 + $0x194] ss:$24 sps:$4 sm:$0xff]  }
  0xc2   :  { %1487 = vmatprep.subr.bf16.mxu1 %v4306_v51  ;;  %v4360_v51 = vld [vmem:[#allocation8 + $0x160] ss:$24 sps:$4 sm:$0xff]   ;;  %5785 = vst [vmem:[#allocation51_spill] sm:$0xff] %v4366_v47 }
  0xc3   :  { %5783 = vst [vmem:[#allocation49_spill] sm:$0xff] %v4360_v51 }
  0xc4   :  { %1447 = vmatpush1.bf16.msra.mxu0 %v4310_v37 }
  0xc5   :  { %1488 = vmatpush1.bf16.msra.mxu1 %v4312_v53  ;;  %1448 = vmatprep.subr.bf16.mxu0 %v4316_v55  ;;  %v4354_v53 = vld [vmem:[#allocation8 + $0x164] ss:$24 sps:$4 sm:$0xff]  }
  0xc6   :  { %1489 = vmatprep.subr.bf16.mxu1 %v4318_v57  ;;  %v4348_v57 = vld [vmem:[#allocation8 + $0x130] ss:$24 sps:$4 sm:$0xff]   ;;  %5781 = vst [vmem:[#allocation47_spill] sm:$0xff] %v4354_v53 }
  0xc7   :  { %5779 = vst [vmem:[#allocation45_spill] sm:$0xff] %v4348_v57 }
  0xc8   :  { %1449 = vmatpush1.bf16.msra.mxu0 %v4322_v59 }
  0xc9   :  { %1490 = vmatpush1.bf16.msra.mxu1 %v4324_v61  ;;  %1450 = vmatprep.subr.bf16.mxu0 %v4328_v63  ;;  %v4352_v61 = vld [vmem:[#allocation8 + $0x15c] ss:$24 sps:$4 sm:$0xff]  }
  0xca   :  { %1491 = vmatprep.subr.bf16.mxu1 %v4330_v1  ;;  %5780 = vst [vmem:[#allocation46_spill] sm:$0xff] %v4352_v61  ;;  %v4358_v1 = vld [vmem:[#allocation8 + $0x158] ss:$24 sps:$4 sm:$0xff]  }
  0xcb   :  { %5782 = vst [vmem:[#allocation48_spill] sm:$0xff] %v4358_v1 }
  0xcc   :  { %1451 = vmatpush1.bf16.msra.mxu0 %v4334_v5 }
  0xcd   :  { %1492 = vmatpush1.bf16.msra.mxu1 %v4336_v11  ;;  %1452 = vmatprep.subr.bf16.mxu0 %v4340_v15  ;;  %v4364_v11 = vld [vmem:[#allocation8 + $0x18c] ss:$24 sps:$4 sm:$0xff]  }
  0xce   :  { %1493 = vmatprep.subr.bf16.mxu1 %v4342_v18  ;;  %5784 = vst [vmem:[#allocation50_spill] sm:$0xff] %v4364_v11  ;;  %v4370_v18 = vld [vmem:[#allocation8 + $0x188] ss:$24 sps:$4 sm:$0xff]  }
  0xcf   :  { %5786 = vst [vmem:[#allocation52_spill] sm:$0xff] %v4370_v18 }
  0xd0   :  { %1453 = vmatpush1.bf16.msra.mxu0 %v4346_v17 }
  0xd1   :  { %1494 = vmatpush1.bf16.msra.mxu1 %v4348_v57  ;;  %1454 = vmatprep.subr.bf16.mxu0 %v4352_v61  ;;  %v4376_v57 = vld [vmem:[#allocation8 + $0x1bc] ss:$24 sps:$4 sm:$0xff]  }
  0xd2   :  { %1495 = vmatprep.subr.bf16.mxu1 %v4354_v53  ;;  %5788 = vst [vmem:[#allocation54_spill] sm:$0xff] %v4376_v57  ;;  %v4382_v53 = vld [vmem:[#allocation8 + $0x1b8] ss:$24 sps:$4 sm:$0xff]  }
  0xd3   :  { %5790 = vst [vmem:[#allocation56_spill] sm:$0xff] %v4382_v53 }
  0xd4   :  { %1455 = vmatpush1.bf16.msra.mxu0 %v4358_v1 }
  0xd5   :  { %1496 = vmatpush1.bf16.msra.mxu1 %v4360_v51  ;;  %1456 = vmatprep.subr.bf16.mxu0 %v4364_v11  ;;  %v4388_v51 = vld [vmem:[#allocation8 + $0x1ec] ss:$24 sps:$4 sm:$0xff]  }
  0xd6   :  { %1497 = vmatprep.subr.bf16.mxu1 %v4366_v47  ;;  %5792 = vst [vmem:[#allocation58_spill] sm:$0xff] %v4388_v51  ;;  %v4394_v47 = vld [vmem:[#allocation8 + $0x1e8] ss:$24 sps:$4 sm:$0xff]  }
  0xd7   :  { %5794 = vst [vmem:[#allocation60_spill] sm:$0xff] %v4394_v47 }
  0xd8   :  { %1457 = vmatpush1.bf16.msra.mxu0 %v4370_v18 }
  0xd9   :  { %1498 = vmatpush1.bf16.msra.mxu1 %v4372_v45  ;;  %1458 = vmatprep.subr.bf16.mxu0 %v4376_v57  ;;  %v4400_v45 = vld [vmem:[#allocation8 + $0x21c] ss:$24 sps:$4 sm:$0xff]  }
  0xda   :  { %1499 = vmatprep.subr.bf16.mxu1 %v4378_v41  ;;  %5796 = vst [vmem:[#allocation62_spill] sm:$0xff] %v4400_v45  ;;  %v4406_v41 = vld [vmem:[#allocation8 + $0x218] ss:$24 sps:$4 sm:$0xff]  }
  0xdb   :  { %5798 = vst [vmem:[#allocation64_spill] sm:$0xff] %v4406_v41 }
  0xdc   :  { %1459 = vmatpush1.bf16.msra.mxu0 %v4382_v53 }
  0xdd   :  { %1500 = vmatpush1.bf16.msra.mxu1 %v4384_v36  ;;  %1460 = vmatprep.subr.bf16.mxu0 %v4388_v51  ;;  %v4412_v36 = vld [vmem:[#allocation8 + $0x24c] ss:$24 sps:$4 sm:$0xff]  }
  0xde   :  { %1501 = vmatprep.subr.bf16.mxu1 %v4390_v33  ;;  %5800 = vst [vmem:[#allocation66_spill] sm:$0xff] %v4412_v36  ;;  %v4418_v33 = vld [vmem:[#allocation8 + $0x248] ss:$24 sps:$4 sm:$0xff]  }
  0xdf   :  { %5802 = vst [vmem:[#allocation68_spill] sm:$0xff] %v4418_v33 }
  0xe0   :  { %1461 = vmatpush1.bf16.msra.mxu0 %v4394_v47 }
  0xe1   :  { %1502 = vmatpush1.bf16.msra.mxu1 %v4396_v32  ;;  %1462 = vmatprep.subr.bf16.mxu0 %v4400_v45  ;;  %v4424_v32 = vld [vmem:[#allocation8 + $0x27c] ss:$24 sps:$4 sm:$0xff]  }
  0xe2   :  { %1503 = vmatprep.subr.bf16.mxu1 %v4402_v27  ;;  %5804 = vst [vmem:[#allocation70_spill] sm:$0xff] %v4424_v32  ;;  %v4430_v27 = vld [vmem:[#allocation8 + $0x278] ss:$24 sps:$4 sm:$0xff]  }
  0xe3   :  { %5806 = vst [vmem:[#allocation72_spill] sm:$0xff] %v4430_v27 }
  0xe4   :  { %1463 = vmatpush1.bf16.msra.mxu0 %v4406_v41 }
  0xe5   :  { %1504 = vmatpush1.bf16.msra.mxu1 %v4408_v7  ;;  %1464 = vmatprep.subr.bf16.mxu0 %v4412_v36  ;;  %v4436_v7 = vld [vmem:[#allocation8 + $0x2ac] ss:$24 sps:$4 sm:$0xff]  }
  0xe6   :  { %1505 = vmatprep.subr.bf16.mxu1 %v4414_v22  ;;  %5807 = vst [vmem:[#allocation73_spill] sm:$0xff] %v4436_v7  ;;  %v4442_v22 = vld [vmem:[#allocation8 + $0x2a8] ss:$24 sps:$4 sm:$0xff]  }
  0xe7   :  { %5808 = vst [vmem:[#allocation74_spill] sm:$0xff] %v4442_v22 }
  0xe8   :  { %1465 = vmatpush1.bf16.msra.mxu0 %v4418_v33 }
  0xe9   :  { %1506 = vmatpush1.bf16.msra.mxu1 %v4420_v25  ;;  %1466 = vmatprep.subr.bf16.mxu0 %v4424_v32  ;;  %v4448_v25 = vld [vmem:[#allocation8 + $0x2dc] ss:$24 sps:$4 sm:$0xff]  }
  0xea   :  { %1507 = vmatprep.subr.bf16.mxu1 %v4426_v20  ;;  %5809 = vst [vmem:[#allocation75_spill] sm:$0xff] %v4448_v25  ;;  %v4454_v20 = vld [vmem:[#allocation8 + $0x2d8] ss:$24 sps:$4 sm:$0xff]  }
  0xeb   :  { %5810 = vst [vmem:[#allocation76_spill] sm:$0xff] %v4454_v20 }
  0xec   :  { %1467 = vmatpush1.bf16.msra.mxu0 %v4430_v27  ;;  %v4456_v27 = vld [vmem:[#allocation8 + $0x2e0] ss:$24 sps:$4 sm:$0xff]  }
  0xed   :  { %1508 = vmatpush1.bf16.msra.mxu1 %v4432_v13  ;;  %1468 = vmatprep.subr.bf16.mxu0 %v4436_v7 }
  0xee   :  { %1509 = vmatprep.subr.bf16.mxu1 %v4438_v9 }
  0xf0   :  { %1469 = vmatpush1.bf16.msra.mxu0 %v4442_v22 }
  0xf1   :  { %1510 = vmatpush1.bf16.msra.mxu1 %v4444_v2  ;;  %1470 = vmatprep.subr.bf16.mxu0 %v4448_v25 }
  0xf2   :  { %1511 = vmatprep.subr.bf16.mxu1 %v4450_v0 }
  0xf4   :  { %1471 = vmatpush1.bf16.msra.mxu0 %v4454_v20 }
  0xf5   :  { %1512 = vmatpush1.bf16.msra.mxu1 %v4456_v27  ;;  %1642 = vmatprep.subr.bf16.mxu0 %v4143_v3 }
  0xf6   :  { %1683 = vmatprep.subr.bf16.mxu1 %v4263_v23 }
  0xf7   :  { %1473 = vmatmul.mubr.bf16.vlgmr.msra.gmra.mrb[8].mxu0 %v4267_v28 }
  0xf8   :  { %1514 = vmatmul.mubr.bf16.vlgmr.msra.gmra.mrb[8].mxu1 %v4267_v28  ;;  %1643 = vmatpush1.bf16.msra.mxu0 %v4147_v6  ;;  %v5811_v6 = vld [vmem:[#allocation16_spill] sm:$0xff]  ;;  %v5816_v28 = vld [vmem:[#allocation21_spill] sm:$0xff] }
  0xf9   :  { %1684 = vmatpush1.bf16.msra.mxu1 %v4270_v30  ;;  %1644 = vmatprep.subr.bf16.mxu0 %v4150_v8  ;;  %v5812_v8 = vld [vmem:[#allocation72_spill] sm:$0xff] }
  0xfa   :  { %1685 = vmatprep.subr.bf16.mxu1 %v4276_v34 }
  0xfc   :  { %1645 = vmatpush1.bf16.msra.mxu0 %v4155_v10  ;;  %v5813_v10 = vld [vmem:[#allocation17_spill] sm:$0xff] }
  0xfd   :  { %1686 = vmatpush1.bf16.msra.mxu1 %v4284_v39  ;;  %1646 = vmatprep.subr.bf16.mxu0 %v4158_v12  ;;  %v5814_v12 = vld [vmem:[#allocation19_spill] sm:$0xff] }
  0xfe   :  { %1687 = vmatprep.subr.bf16.mxu1 %v4290_v43 }
 0x100   :  { %1647 = vmatpush1.bf16.msra.mxu0 %v4161_v14  ;;  %v5815_v14 = vld [vmem:[#allocation20_spill] sm:$0xff] }
 0x101   :  { %1688 = vmatpush1.bf16.msra.mxu1 %v4298_v4  ;;  %1648 = vmatprep.subr.bf16.mxu0 %v4164_v16 }
 0x102   :  { %1689 = vmatprep.subr.bf16.mxu1 %v4304_v49 }
 0x104   :  { %1649 = vmatpush1.bf16.msra.mxu0 %v4167_v19 }
 0x105   :  { %1690 = vmatpush1.bf16.msra.mxu1 %v4310_v37  ;;  %1650 = vmatprep.subr.bf16.mxu0 %v4170_v21 }
 0x106   :  { %1691 = vmatprep.subr.bf16.mxu1 %v4316_v55 }
 0x108   :  { %1651 = vmatpush1.bf16.msra.mxu0 %v4176_v24 }
 0x109   :  { %1692 = vmatpush1.bf16.msra.mxu1 %v4322_v59  ;;  %1652 = vmatprep.subr.bf16.mxu0 %v4179_v26 }
 0x10a   :  { %1693 = vmatprep.subr.bf16.mxu1 %v4328_v63 }
 0x10c   :  { %1653 = vmatpush1.bf16.msra.mxu0 %v4185_v29 }
 0x10d   :  { %1694 = vmatpush1.bf16.msra.mxu1 %v4334_v5  ;;  %1654 = vmatprep.subr.bf16.mxu0 %v4188_v31 }
 0x10e   :  { %1695 = vmatprep.subr.bf16.mxu1 %v4340_v15 }
 0x110   :  { %1655 = vmatpush1.bf16.msra.mxu0 %v4198_v35 }
 0x111   :  { %1696 = vmatpush1.bf16.msra.mxu1 %v4346_v17  ;;  %1656 = vmatprep.subr.bf16.mxu0 %v4203_v38 }
 0x112   :  { %1697 = vmatprep.subr.bf16.mxu1 %v4352_v61 }
 0x114   :  { %1657 = vmatpush1.bf16.msra.mxu0 %v4207_v40 }
 0x115   :  { %1698 = vmatpush1.bf16.msra.mxu1 %v4358_v1  ;;  %1658 = vmatprep.subr.bf16.mxu0 %v4210_v42 }
 0x116   :  { %1699 = vmatprep.subr.bf16.mxu1 %v4364_v11 }
 0x118   :  { %1659 = vmatpush1.bf16.msra.mxu0 %v4213_v44 }
 0x119   :  { %1700 = vmatpush1.bf16.msra.mxu1 %v4370_v18  ;;  %1660 = vmatprep.subr.bf16.mxu0 %v4216_v46 }
 0x11a   :  { %1701 = vmatprep.subr.bf16.mxu1 %v4376_v57 }
 0x11c   :  { %1661 = vmatpush1.bf16.msra.mxu0 %v4219_v48 }
 0x11d   :  { %1702 = vmatpush1.bf16.msra.mxu1 %v4382_v53  ;;  %1662 = vmatprep.subr.bf16.mxu0 %v4222_v50 }
 0x11e   :  { %1703 = vmatprep.subr.bf16.mxu1 %v4388_v51 }
 0x120   :  { %1663 = vmatpush1.bf16.msra.mxu0 %v4225_v52 }
 0x121   :  { %1704 = vmatpush1.bf16.msra.mxu1 %v4394_v47  ;;  %1664 = vmatprep.subr.bf16.mxu0 %v4228_v54 }
 0x122   :  { %1705 = vmatprep.subr.bf16.mxu1 %v4400_v45 }
 0x124   :  { %1665 = vmatpush1.bf16.msra.mxu0 %v4231_v56 }
 0x125   :  { %1706 = vmatpush1.bf16.msra.mxu1 %v4406_v41  ;;  %1666 = vmatprep.subr.bf16.mxu0 %v4234_v58 }
 0x126   :  { %1707 = vmatprep.subr.bf16.mxu1 %v4412_v36  ;;  %v5819_v36 = vld [vmem:[#allocation18_spill] sm:$0xff] }
 0x128   :  { %1667 = vmatpush1.bf16.msra.mxu0 %v4237_v60 }
 0x129   :  { %1708 = vmatpush1.bf16.msra.mxu1 %v4418_v33  ;;  %1668 = vmatprep.subr.bf16.mxu0 %v4240_v62 }
 0x12a   :  { %1709 = vmatprep.subr.bf16.mxu1 %v4424_v32  ;;  %v5817_v32 = vld [vmem:[#allocation22_spill] sm:$0xff] }
 0x12c   :  { %1669 = vmatpush1.bf16.msra.mxu0 %v5811_v6 }
 0x12d   :  { %1710 = vmatpush1.bf16.msra.mxu1 %v5812_v8  ;;  %1670 = vmatprep.subr.bf16.mxu0 %v5813_v10  ;;  %v5818_v8 = vld [vmem:[#allocation13_spill] sm:$0xff] }
 0x12e   :  { %1711 = vmatprep.subr.bf16.mxu1 %v4436_v7  ;;  %v172_v33 = vsub.s32 2, %v5818_v8  ;;  %v160_v7 = vld [vmem:[%s5497_s3] sm:$0x3f] }
 0x12f   :  { %v165_v41 = vrot.slane %v160_v7, %v5819_v36 }
 0x130   :  { %1671 = vmatpush1.bf16.msra.mxu0 %v5814_v12  ;;  %v173_v45 = vrot.slane %v160_v7, %v172_v33  ;;  %v180_v33 = vsub.s32 4, %v5818_v8 }
 0x131   :  { %1712 = vmatpush1.bf16.msra.mxu1 %v4442_v22  ;;  %1672 = vmatprep.subr.bf16.mxu0 %v5815_v14  ;;  %v176_v22 = vsub.s32 3, %v5818_v8 }
 0x132   :  { %1713 = vmatprep.subr.bf16.mxu1 %v4448_v25  ;;  %v5820_v25 = vld [vmem:[#allocation14_spill] sm:$0xff]  ;;  %v181_v59 = vrot.slane %v160_v7, %v180_v33 }
 0x133   :  { %v169_v47 = vrot.slane %v160_v7, %v5820_v25  ;;  %v177_v51 = vrot.slane %v160_v7, %v176_v22  ;;  %v184_v22 = vsub.s32 5, %v5818_v8 }
 0x134   :  { %1673 = vmatpush1.bf16.msra.mxu0 %v5816_v28 }
 0x135   :  { %1714 = vmatpush1.bf16.msra.mxu1 %v4454_v20  ;;  %1724 = vmatprep.subr.bf16.mxu0 %v5817_v32  ;;  %v185_v55 = vrot.slane %v160_v7, %v184_v22 }
 0x136   :  { %1872 = vmatprep.subr.bf16.mxu1 %v4143_v3 }
 0x14a   :  { %v713_v53 = vpop.f32.mrb[0].mxu0 }
 0x14b   :  { %v754_v20 = vpop.f32.mrb[0].mxu1  ;;  %v714_v57 = vadd.f32 %v713_v53, %v165_v41  ;;  %v715_v11 = vpop.f32.mrb[1].mxu0 }
 0x14c   :  { %v755_v18 = vadd.f32 %v754_v20, %v173_v45  ;;  %v756_v3 = vpop.f32.mrb[1].mxu1  ;;  %v716_v1 = vadd.f32 %v715_v11, %v169_v47  ;;  %v717_v17 = vpop.f32.mrb[2].mxu0 }
 0x14d   :  { %v757_v61 = vadd.f32 %v756_v3, %v177_v51  ;;  %v758_v15 = vpop.f32.mrb[2].mxu1  ;;  %802 = vst [vmem:[#allocation2] sm:$0xff] %v714_v57  ;;  %v718_v5 = vpop.f32.mrb[3].mxu0 }
 0x14e   :  { %804 = vst [vmem:[#allocation2 + $0x10] sm:$0xff] %v755_v18  ;;  %v759_v63 = vpop.f32.mrb[3].mxu1  ;;  %803 = vst [vmem:[#allocation2 + $0x8] sm:$0xff] %v716_v1  ;;  %v904_v15 = vld [vmem:[%s5498_s4] sm:$0x3]  ;;  %s4065_s4 = smov [#allocation9]  }
 0x14f   :  { %805 = vst [vmem:[#allocation2 + $0x18] sm:$0xff] %v757_v61  ;;  %v4064_v61 = vmov 1966171168   ;;  %v4543_v18 = vrot.slane %v904_v15, %v5819_v36  ;;  %s3245_s12 = sshll.u32 %s4065_s4, 4  ;;  %s3246_s12 = int_to_ptr.vmem [resolvable:$true] %s3245_s12 }
 0x150   :  { %v1535_v1 = vunpack.c.l.s4 %v4064_v61  ;;  %s4031_s13 = scalar_lea.vmem %s3246_s12, 256  ;;  %p4036_p11 = scmp.lt.s32.totalorder %s3246_s12, %s3246_s12 }
 0x151   :  { %5821 = vst [vmem:[#allocation16_spill] sm:$0xff] %v4543_v18  ;;  %p4032_p10 = scmp.ne.s32.totalorder %s3246_s12, %s4031_s13  ;;  %p4037_p12 = scmp.lt.s32.totalorder %s4031_s13, %s4031_s13 }
 0x152   :  { %v1536_v7 = vunpack.c.0.s8 %v1535_v1 }
 0x153   :  { %p4038_p13 = por %p4037_p12, %p4036_p11 }
 0x155   :  { %p4039_p0 = pnand %p4038_p13, %p4032_p10 }
 0x18a   :  { %v795_v41 = vpop.f32.mrb[4].mxu0 }
 0x18b   :  { %v1433_v20 = vpop.f32.mrb[4].mxu1  ;;  %v796_v45 = vadd.f32 %v795_v41, %v181_v59  ;;  %v797_v53 = vpop.f32.mrb[5].mxu0  ;;  %v4546_v59 = vrot.slane %v904_v15, %v5820_v25 }
 0x18c   :  { %v1435_v47 = vpop.f32.mrb[5].mxu1  ;;  %v798_v51 = vadd.f32 %v797_v53, %v185_v55  ;;  %v799_v11 = vpop.f32.mrb[6].mxu0  ;;  %v4549_v55 = vsub.s32 %v1536_v7, %v5818_v8 }
 0x18d   :  { %v1531_v17 = vcombine.low %v1433_v20, %v1435_v47  ;;  %v1437_v57 = vpop.f32.mrb[6].mxu1  ;;  %806 = vst [vmem:[#allocation2 + $0x20] sm:$0xff] %v796_v45  ;;  %v800_v5 = vpop.f32.mrb[7].mxu0 }
 0x18e   :  { %v1438_v63 = vpop.f32.mrb[7].mxu1  ;;  %807 = vst [vmem:[#allocation2 + $0x28] sm:$0xff] %v798_v51 }
 0x18f   :  { %v1540_v63 = vrot.slane %v1531_v17, %v4549_v55 }
 0x1ca   :  { %v1474_v3 = vpop.f32.mrb[8].mxu0 }
 0x1cb   :  { %v1515_v33 = vpop.f32.mrb[8].mxu1  ;;  %v1476_v41 = vpop.f32.mrb[9].mxu0 }
 0x1cc   :  { %v1590_v22 = vadd.f32 %v4543_v18, %v1515_v33  ;;  %v1517_v20 = vpop.f32.mrb[9].mxu1  ;;  %v1532_v45 = vcombine.low %v1474_v3, %v1476_v41  ;;  %v1478_v51 = vpop.f32.mrb[10].mxu0  ;;  %v1523_v18 = vld [vmem:[#allocation2] ss:$8 sm:$0x30] }
 0x1cd   :  { %v1533_v53 = vcombine.low %v1515_v33, %v1517_v20  ;;  %v1591_v47 = vadd.f32 %v4546_v59, %v1517_v20  ;;  %v1519_v11 = vpop.f32.mrb[10].mxu1  ;;  %v1479_v57 = vpop.f32.mrb[11].mxu0  ;;  %v1522_v33 = vld [vmem:[#allocation2] ss:$8 sm:$0xf] }
 0x1ce   :  { %v1520_v5 = vpop.f32.mrb[11].mxu1  ;;  %v1547_v61 = vrot.slane %v1532_v45, %v4549_v55  ;;  %v1524_v41 = vor.u32 %v1523_v18, %v1522_v33  ;;  %v5823_v33 = vlaneseq }
 0x1cf   :  { %v1554_v8 = vrot.slane %v1533_v53, %v4549_v55  ;;  %v1594_v1 = vcombine.low %v1590_v22, %v1591_v47 }
 0x1d0   :  { %v1555_v15 = vcombine.low %v1540_v63, %v1547_v61  ;;  %v1612_v47 = vrot.slane %v1524_v41, 4  ;;  %vm4562_vm0 = vcmp.lt.s32.totalorder %v5823_v33, 256  ;;  %v5834_v33 = vld [vmem:[#allocation37_spill] sm:$0xff] }
 0x1d1   :  { %v1569_v7 = vrot.slane %v1554_v8, %v4549_v55  ;;  %v1601_v17 = vrot.slane %v1594_v1, %v4549_v55 }
 0x1d2   :  { %v1562_v3 = vrot.slane %v1555_v15, %v4549_v55 }
 0x1d3   :  { %v1608_v45 = vrot.slane %v1601_v17, %v4549_v55  ;;  %v5827_v17 = vld [vmem:[#allocation24_spill] sm:$0xff] }
 0x1d4   :  { %v1570_v20 = vcombine.low %v1562_v3, %v1569_v7  ;;  %v5822_v7 = vld [vmem:[#allocation15_spill] sm:$0xff] }
 0x1d6   :  { %v1572_v51 = vadd.f32 %v1570_v20, %v1524_v41 }
 0x1d8   :  { %v3449_v11 = vmul.f32 -1.442695, %v1572_v51 }
 0x1da   :  { %3754 = vpow2.f32 %v3449_v11 }
 0x1e4   :  { %v3755_v57 = vpop.eup %3754 }
 0x1e5   :  { %v1576_v5 = vadd.f32 1.0, %v3755_v57 }
 0x1e7   :  { %3756 = vrcp.f32 %v1576_v5  ;;  %v5826_v5 = vld [vmem:[#allocation23_spill] sm:$0xff] }
 0x1f1   :  { %v3757_v22 = vpop.eup %3756 }
 0x1f2   :  { %v1610_v53 = vmul.f32 %v3757_v22, %v1608_v45  ;;  %v1617_v61 = vrot.slane %v3757_v22, 2  ;;  %v4581_v45 = vld [vmem:[#allocation8] ss:$24 sps:$4 sm:$0xff]   ;;  %v4584_v22 = vld [vmem:[#allocation8 + $0x34] ss:$24 sps:$4 sm:$0xff]  }
 0x1f4   :  { %v1614_v63 = vadd.f32 %v1612_v47, %v1610_v53  ;;  %v1619_v8 = vsub.f32 1.0, %v1617_v61  ;;  %v1621_v3 = vmul.f32 %v1617_v61, %v5822_v7  ;;  %v5828_v53 = vld [vmem:[#allocation25_spill] sm:$0xff]  ;;  %v5829_v47 = vld [vmem:[#allocation27_spill] sm:$0xff] }
 0x1f5   :  { %v4592_v61 = vld [vmem:[#allocation8 + $0x64] ss:$24 sps:$4 sm:$0xff]   ;;  %v5832_v7 = vld [vmem:[#allocation33_spill] sm:$0xff] }
 0x1f6   :  { %3758 = vtanh.f32 %v1614_v63  ;;  %v4589_v63 = vld [vmem:[#allocation8 + $0x30] ss:$24 sps:$4 sm:$0xff]  }
 0x200   :  { %v3759_v15 = vpop.eup %3758 }
 0x201   :  { %v1620_v18 = vmul.f32 %v3759_v15, %v1619_v8  ;;  %v5830_v8 = vld [vmem:[#allocation29_spill] sm:$0xff]  ;;  %v5831_v15 = vld [vmem:[#allocation31_spill] sm:$0xff] }
 0x203   :  { %v4566_v51 = vadd.f32 %v1621_v3, %v1620_v18  ;;  %v4597_v18 = vld [vmem:[#allocation8 + $0x60] ss:$24 sps:$4 sm:$0xff]  }
 0x204   :  { %v5833_v3 = vld [vmem:[#allocation35_spill] sm:$0xff] }
 0x205   :  { %1627 = vst.msk [vmem:[#allocation9] ss:$8 sm:$0x3] %vm4562_vm0, %v4566_v51  ;;  %v1637_v1 = vrot.slane %v4566_v51, %v5820_v25  ;;  %v1633_v41 = vrot.slane %v4566_v51, %v5819_v36 }
 0x207   :  { %v1641_v11 = vpack.c.bf16 %v1637_v1, %v1637_v1  ;;  %v4575_v57 = vpack.c.bf16 %v1633_v41, %v1633_v41  ;;  %v5835_v1 = vld [vmem:[#allocation39_spill] sm:$0xff]  ;;  %v5836_v41 = vld [vmem:[#allocation41_spill] sm:$0xff] }
 0x209   :  { %1674 = vmatprep.mubr.bf16.mxu0 %v1641_v11  ;;  %1715 = vmatprep.mubr.bf16.mxu1 %v1641_v11 }
 0x20a   :  { %1675 = vmatmul.mubr.bf16.vlgmr.msra.gmra.mrb[12].mxu0 %v4575_v57  ;;  %1716 = vmatmul.mubr.bf16.vlgmr.msra.gmra.mrb[12].mxu1 %v4575_v57 }
 0x20b   :  { %1725 = vmatpush1.bf16.msra.mxu0 %v5826_v5  ;;  %1756 = vmatprep.mubr.bf16.mxu0 %v1641_v11  ;;  %v5837_v11 = vld [vmem:[#allocation43_spill] sm:$0xff] }
 0x20c   :  { %1726 = vmatprep.subr.bf16.mxu0 %v5827_v17  ;;  %1873 = vmatpush1.bf16.msra.mxu1 %v4581_v45 }
 0x20d   :  { %1874 = vmatprep.subr.bf16.mxu1 %v4584_v22 }
 0x20f   :  { %1727 = vmatpush1.bf16.msra.mxu0 %v5828_v53 }
 0x210   :  { %1728 = vmatprep.subr.bf16.mxu0 %v5829_v47  ;;  %1875 = vmatpush1.bf16.msra.mxu1 %v4589_v63 }
 0x211   :  { %1876 = vmatprep.subr.bf16.mxu1 %v4592_v61 }
 0x213   :  { %1729 = vmatpush1.bf16.msra.mxu0 %v5830_v8 }
 0x214   :  { %1730 = vmatprep.subr.bf16.mxu0 %v5831_v15  ;;  %1877 = vmatpush1.bf16.msra.mxu1 %v4597_v18 }
 0x215   :  { %1878 = vmatprep.subr.bf16.mxu1 %v4164_v16  ;;  %v5838_v16 = vld [vmem:[#allocation45_spill] sm:$0xff] }
 0x217   :  { %1731 = vmatpush1.bf16.msra.mxu0 %v5832_v7 }
 0x218   :  { %1732 = vmatprep.subr.bf16.mxu0 %v5833_v3  ;;  %1879 = vmatpush1.bf16.msra.mxu1 %v4167_v19  ;;  %v5839_v19 = vld [vmem:[#allocation47_spill] sm:$0xff] }
 0x219   :  { %1880 = vmatprep.subr.bf16.mxu1 %v4170_v21  ;;  %v5840_v21 = vld [vmem:[#allocation49_spill] sm:$0xff] }
 0x21b   :  { %1733 = vmatpush1.bf16.msra.mxu0 %v5834_v33 }
 0x21c   :  { %1734 = vmatprep.subr.bf16.mxu0 %v5835_v1  ;;  %1881 = vmatpush1.bf16.msra.mxu1 %v4176_v24  ;;  %v5841_v24 = vld [vmem:[#allocation51_spill] sm:$0xff] }
 0x21d   :  { %1882 = vmatprep.subr.bf16.mxu1 %v4179_v26  ;;  %v5842_v26 = vld [vmem:[#allocation53_spill] sm:$0xff] }
 0x21f   :  { %1735 = vmatpush1.bf16.msra.mxu0 %v5836_v41 }
 0x220   :  { %1736 = vmatprep.subr.bf16.mxu0 %v5837_v11  ;;  %1883 = vmatpush1.bf16.msra.mxu1 %v4185_v29  ;;  %v5843_v29 = vld [vmem:[#allocation55_spill] sm:$0xff] }
 0x221   :  { %1884 = vmatprep.subr.bf16.mxu1 %v4188_v31  ;;  %v5844_v31 = vld [vmem:[#allocation57_spill] sm:$0xff] }
 0x223   :  { %1737 = vmatpush1.bf16.msra.mxu0 %v5838_v16 }
 0x224   :  { %1738 = vmatprep.subr.bf16.mxu0 %v5839_v19  ;;  %1885 = vmatpush1.bf16.msra.mxu1 %v4198_v35  ;;  %v5845_v35 = vld [vmem:[#allocation59_spill] sm:$0xff] }
 0x225   :  { %1886 = vmatprep.subr.bf16.mxu1 %v4203_v38  ;;  %v5846_v38 = vld [vmem:[#allocation61_spill] sm:$0xff] }
 0x227   :  { %1739 = vmatpush1.bf16.msra.mxu0 %v5840_v21 }
 0x228   :  { %1740 = vmatprep.subr.bf16.mxu0 %v5841_v24  ;;  %1887 = vmatpush1.bf16.msra.mxu1 %v4207_v40  ;;  %v5847_v40 = vld [vmem:[#allocation63_spill] sm:$0xff] }
 0x229   :  { %1888 = vmatprep.subr.bf16.mxu1 %v4210_v42  ;;  %v5848_v42 = vld [vmem:[#allocation65_spill] sm:$0xff] }
 0x22b   :  { %1741 = vmatpush1.bf16.msra.mxu0 %v5842_v26 }
 0x22c   :  { %1742 = vmatprep.subr.bf16.mxu0 %v5843_v29  ;;  %1889 = vmatpush1.bf16.msra.mxu1 %v4213_v44  ;;  %v5849_v44 = vld [vmem:[#allocation67_spill] sm:$0xff] }
 0x22d   :  { %1890 = vmatprep.subr.bf16.mxu1 %v4216_v46  ;;  %v5850_v46 = vld [vmem:[#allocation69_spill] sm:$0xff] }
 0x22f   :  { %1743 = vmatpush1.bf16.msra.mxu0 %v5844_v31 }
 0x230   :  { %1744 = vmatprep.subr.bf16.mxu0 %v5845_v35  ;;  %1891 = vmatpush1.bf16.msra.mxu1 %v4219_v48  ;;  %v5851_v48 = vld [vmem:[#allocation71_spill] sm:$0xff] }
 0x231   :  { %1892 = vmatprep.subr.bf16.mxu1 %v4222_v50  ;;  %v5852_v50 = vld [vmem:[#allocation34_spill] sm:$0xff] }
 0x233   :  { %1745 = vmatpush1.bf16.msra.mxu0 %v5846_v38 }
 0x234   :  { %1746 = vmatprep.subr.bf16.mxu0 %v5847_v40  ;;  %1893 = vmatpush1.bf16.msra.mxu1 %v4225_v52  ;;  %v5853_v52 = vld [vmem:[#allocation36_spill] sm:$0xff] }
 0x235   :  { %1894 = vmatprep.subr.bf16.mxu1 %v4228_v54  ;;  %v5855_v54 = vld [vmem:[#allocation40_spill] sm:$0xff] }
 0x237   :  { %1747 = vmatpush1.bf16.msra.mxu0 %v5848_v42 }
 0x238   :  { %1748 = vmatprep.subr.bf16.mxu0 %v5849_v44  ;;  %1895 = vmatpush1.bf16.msra.mxu1 %v4231_v56  ;;  %v5856_v56 = vld [vmem:[#allocation42_spill] sm:$0xff] }
 0x239   :  { %1896 = vmatprep.subr.bf16.mxu1 %v4234_v58  ;;  %v5857_v58 = vld [vmem:[#allocation44_spill] sm:$0xff] }
 0x23b   :  { %1749 = vmatpush1.bf16.msra.mxu0 %v5850_v46 }
 0x23c   :  { %1750 = vmatprep.subr.bf16.mxu0 %v5851_v48  ;;  %1897 = vmatpush1.bf16.msra.mxu1 %v4237_v60  ;;  %v5858_v60 = vld [vmem:[#allocation46_spill] sm:$0xff] }
 0x23d   :  { %1898 = vmatprep.subr.bf16.mxu1 %v4240_v62  ;;  %v5859_v62 = vld [vmem:[#allocation48_spill] sm:$0xff] }
 0x23f   :  { %1751 = vmatpush1.bf16.msra.mxu0 %v4432_v13 }
 0x240   :  { %1752 = vmatprep.subr.bf16.mxu0 %v4438_v9  ;;  %1899 = vmatpush1.bf16.msra.mxu1 %v5811_v6  ;;  %v5863_v6 = vld [vmem:[#allocation56_spill] sm:$0xff] }
 0x241   :  { %1900 = vmatprep.subr.bf16.mxu1 %v5813_v10  ;;  %v5864_v10 = vld [vmem:[#allocation58_spill] sm:$0xff] }
 0x243   :  { %1753 = vmatpush1.bf16.msra.mxu0 %v4444_v2 }
 0x244   :  { %1754 = vmatprep.subr.bf16.mxu0 %v4450_v0  ;;  %1901 = vmatpush1.bf16.msra.mxu1 %v5814_v12  ;;  %v5865_v12 = vld [vmem:[#allocation60_spill] sm:$0xff] }
 0x245   :  { %1902 = vmatprep.subr.bf16.mxu1 %v5815_v14  ;;  %v5866_v14 = vld [vmem:[#allocation62_spill] sm:$0xff] }
 0x247   :  { %1755 = vmatpush1.bf16.msra.mxu0 %v4456_v27 }
 0x248   :  { %1913 = vmatprep.subr.bf16.mxu0 %v4263_v23  ;;  %1903 = vmatpush1.bf16.msra.mxu1 %v5816_v28  ;;  %v5860_v23 = vld [vmem:[#allocation50_spill] sm:$0xff]  ;;  %v5867_v28 = vld [vmem:[#allocation64_spill] sm:$0xff] }
 0x249   :  { %1954 = vmatprep.subr.bf16.mxu1 %v5817_v32  ;;  %v5854_v32 = vld [vmem:[#allocation38_spill] sm:$0xff] }
 0x24a   :  { %1757 = vmatmul.mubr.bf16.vlgmr.msra.gmra.mrb[16].mxu0 %v4575_v57  ;;  %v5868_v57 = vld [vmem:[#allocation66_spill] sm:$0xff] }
 0x24b   :  { %1914 = vmatpush1.bf16.msra.mxu0 %v4270_v30  ;;  %v5861_v30 = vld [vmem:[#allocation52_spill] sm:$0xff] }
 0x24c   :  { %1915 = vmatprep.subr.bf16.mxu0 %v4276_v34  ;;  %v5862_v34 = vld [vmem:[#allocation54_spill] sm:$0xff] }
 0x24f   :  { %1916 = vmatpush1.bf16.msra.mxu0 %v4284_v39 }
 0x250   :  { %1917 = vmatprep.subr.bf16.mxu0 %v4290_v43 }
 0x253   :  { %1918 = vmatpush1.bf16.msra.mxu0 %v4298_v4 }
 0x254   :  { %1919 = vmatprep.subr.bf16.mxu0 %v4304_v49 }
 0x257   :  { %1920 = vmatpush1.bf16.msra.mxu0 %v4310_v37 }
 0x258   :  { %1921 = vmatprep.subr.bf16.mxu0 %v5852_v50 }
 0x25b   :  { %1922 = vmatpush1.bf16.msra.mxu0 %v5853_v52  ;;  %v5877_v52 = vld [vmem:[#allocation16_spill] sm:$0xff] }
 0x25c   :  { %1923 = vmatprep.subr.bf16.mxu0 %v5854_v32 }
 0x25f   :  { %1924 = vmatpush1.bf16.msra.mxu0 %v5855_v54 }
 0x260   :  { %1925 = vmatprep.subr.bf16.mxu0 %v5856_v56 }
 0x263   :  { %1926 = vmatpush1.bf16.msra.mxu0 %v5857_v58 }
 0x264   :  { %1927 = vmatprep.subr.bf16.mxu0 %v5858_v60  ;;  %v5869_v60 = vld [vmem:[#allocation68_spill] sm:$0xff] }
 0x267   :  { %1928 = vmatpush1.bf16.msra.mxu0 %v5859_v62  ;;  %v5870_v62 = vld [vmem:[#allocation70_spill] sm:$0xff] }
 0x268   :  { %1929 = vmatprep.subr.bf16.mxu0 %v5860_v23  ;;  %v5871_v23 = vld [vmem:[#allocation72_spill] sm:$0xff] }
 0x26b   :  { %1930 = vmatpush1.bf16.msra.mxu0 %v5861_v30  ;;  %v5872_v30 = vld [vmem:[#allocation73_spill] sm:$0xff] }
 0x26c   :  { %1931 = vmatprep.subr.bf16.mxu0 %v5862_v34  ;;  %v5873_v34 = vld [vmem:[#allocation74_spill] sm:$0xff] }
 0x26f   :  { %1932 = vmatpush1.bf16.msra.mxu0 %v5863_v6  ;;  %v5874_v6 = vld [vmem:[#allocation75_spill] sm:$0xff] }
 0x270   :  { %1933 = vmatprep.subr.bf16.mxu0 %v5864_v10  ;;  %v5875_v10 = vld [vmem:[#allocation76_spill] sm:$0xff] }
 0x273   :  { %1934 = vmatpush1.bf16.msra.mxu0 %v5865_v12  ;;  %v4685_v12 = vld [vmem:[#allocation8 + $0x4] ss:$24 sps:$4 sm:$0xff]  }
 0x274   :  { %1935 = vmatprep.subr.bf16.mxu0 %v5866_v14  ;;  %5876 = vst [vmem:[#allocation17_spill] sm:$0xff] %v4685_v12 }
 0x277   :  { %1936 = vmatpush1.bf16.msra.mxu0 %v5867_v28 }
 0x278   :  { %1937 = vmatprep.subr.bf16.mxu0 %v5868_v57 }
 0x27b   :  { %1938 = vmatpush1.bf16.msra.mxu0 %v5869_v60 }
 0x27c   :  { %1939 = vmatprep.subr.bf16.mxu0 %v5870_v62 }
 0x27f   :  { %1940 = vmatpush1.bf16.msra.mxu0 %v5871_v23 }
 0x280   :  { %1941 = vmatprep.subr.bf16.mxu0 %v5872_v30 }
 0x283   :  { %1942 = vmatpush1.bf16.msra.mxu0 %v5873_v34 }
 0x284   :  { %1943 = vmatprep.subr.bf16.mxu0 %v5874_v6 }
 0x287   :  { %1944 = vmatpush1.bf16.msra.mxu0 %v5875_v10 }
 0x288   :  { %2102 = vmatprep.subr.bf16.mxu0 %v4685_v12 }
 0x2dd   :  { %v1676_v28 = vpop.f32.mrb[12].mxu0  ;;  %v1717_v57 = vpop.f32.mrb[12].mxu1 }
 0x2de   :  { %v1678_v14 = vpop.f32.mrb[13].mxu0  ;;  %v1719_v60 = vpop.f32.mrb[13].mxu1 }
 0x2df   :  { %v1775_v58 = vcombine.low %v1676_v28, %v1678_v14  ;;  %v1776_v62 = vcombine.low %v1717_v57, %v1719_v60  ;;  %v1680_v56 = vpop.f32.mrb[14].mxu0  ;;  %v1721_v23 = vpop.f32.mrb[14].mxu1 }
 0x2e0   :  { %v1681_v54 = vpop.f32.mrb[15].mxu0  ;;  %v1722_v30 = vpop.f32.mrb[15].mxu1  ;;  %v1767_v23 = vld [vmem:[#allocation2 + $0x1] ss:$8 sm:$0x30] }
 0x2e1   :  { %v1784_v34 = vrot.slane %v1775_v58, %v4549_v55  ;;  %v1791_v6 = vrot.slane %v1776_v62, %v4549_v55  ;;  %v1766_v30 = vld [vmem:[#allocation2 + $0x1] ss:$8 sm:$0xf] }
 0x2e2   :  { %v1768_v62 = vor.u32 %v1767_v23, %v1766_v30 }
 0x2e3   :  { %v1799_v32 = vcombine.low %v1784_v34, %v1791_v6 }
 0x2e5   :  { %v1806_v54 = vrot.slane %v1799_v32, %v4549_v55 }
 0x31d   :  { %v1758_v10 = vpop.f32.mrb[16].mxu0 }
 0x31e   :  { %v1823_v50 = vadd.f32 %v1758_v10, %v5877_v52  ;;  %v1760_v37 = vpop.f32.mrb[17].mxu0 }
 0x31f   :  { %v1777_v12 = vcombine.low %v1758_v10, %v1760_v37  ;;  %v1824_v49 = vadd.f32 %v1760_v37, %v4546_v59  ;;  %v1762_v4 = vpop.f32.mrb[18].mxu0 }
 0x320   :  { %v1763_v43 = vpop.f32.mrb[19].mxu0 }
 0x321   :  { %v1798_v60 = vrot.slane %v1777_v12, %v4549_v55  ;;  %v1827_v56 = vcombine.low %v1823_v50, %v1824_v49  ;;  %v1845_v50 = vrot.slane %v1768_v62, 4 }
 0x323   :  { %v1813_v58 = vrot.slane %v1798_v60, %v4549_v55  ;;  %v1834_v4 = vrot.slane %v1827_v56, %v4549_v55 }
 0x325   :  { %v1814_v34 = vcombine.low %v1806_v54, %v1813_v58  ;;  %v1841_v43 = vrot.slane %v1834_v4, %v4549_v55  ;;  %v5899_v4 = vld [vmem:[#allocation38_spill] sm:$0xff] }
 0x327   :  { %v1816_v6 = vadd.f32 %v1814_v34, %v1768_v62 }
 0x329   :  { %v3450_v14 = vmul.f32 -1.442695, %v1816_v6  ;;  %v5895_v6 = vld [vmem:[#allocation30_spill] sm:$0xff] }
 0x32b   :  { %3760 = vpow2.f32 %v3450_v14  ;;  %v5896_v14 = vld [vmem:[#allocation32_spill] sm:$0xff] }
 0x335   :  { %v3761_v28 = vpop.eup %3760 }
 0x336   :  { %v1820_v10 = vadd.f32 1.0, %v3761_v28  ;;  %v5897_v28 = vld [vmem:[#allocation34_spill] sm:$0xff] }
 0x338   :  { %3762 = vrcp.f32 %v1820_v10  ;;  %v5898_v10 = vld [vmem:[#allocation36_spill] sm:$0xff] }
 0x342   :  { %v3763_v37 = vpop.eup %3762 }
 0x343   :  { %v1843_v49 = vmul.f32 %v3763_v37, %v1841_v43  ;;  %v1850_v32 = vrot.slane %v3763_v37, 2  ;;  %v5900_v43 = vld [vmem:[#allocation40_spill] sm:$0xff]  ;;  %v5901_v37 = vld [vmem:[#allocation42_spill] sm:$0xff] }
 0x345   :  { %v1847_v12 = vadd.f32 %v1845_v50, %v1843_v49  ;;  %v1852_v57 = vsub.f32 1.0, %v1850_v32  ;;  %v1854_v54 = vmul.f32 %v1850_v32, %v4566_v51  ;;  %v4722_v51 = vld [vmem:[#allocation8 + $0x94] ss:$24 sps:$4 sm:$0xff]  }
 0x346   :  { %v5902_v49 = vld [vmem:[#allocation44_spill] sm:$0xff] }
 0x347   :  { %3764 = vtanh.f32 %v1847_v12  ;;  %v5904_v50 = vld [vmem:[#allocation48_spill] sm:$0xff]  ;;  %v5905_v12 = vld [vmem:[#allocation50_spill] sm:$0xff] }
 0x348   :  { %v5906_v32 = vld [vmem:[#allocation52_spill] sm:$0xff] }
 0x351   :  { %v3765_v60 = vpop.eup %3764 }
 0x352   :  { %v1853_v23 = vmul.f32 %v3765_v60, %v1852_v57  ;;  %v5907_v57 = vld [vmem:[#allocation54_spill] sm:$0xff]  ;;  %v5908_v60 = vld [vmem:[#allocation56_spill] sm:$0xff] }
 0x354   :  { %v4698_v58 = vadd.f32 %v1854_v54, %v1853_v23  ;;  %v5909_v23 = vld [vmem:[#allocation58_spill] sm:$0xff]  ;;  %v5910_v54 = vld [vmem:[#allocation60_spill] sm:$0xff] }
 0x356   :  { %1857 = vst.msk [vmem:[#allocation9 + $0x1] ss:$8 sm:$0x3] %vm4562_vm0, %v4698_v58  ;;  %v1867_v56 = vrot.slane %v4698_v58, %v5820_v25  ;;  %v1863_v30 = vrot.slane %v4698_v58, %v5819_v36 }
 0x358   :  { %v1871_v62 = vpack.c.bf16 %v1867_v56, %v1867_v56  ;;  %v4707_v34 = vpack.c.bf16 %v1863_v30, %v1863_v30  ;;  %v5911_v56 = vld [vmem:[#allocation62_spill] sm:$0xff]  ;;  %v5912_v30 = vld [vmem:[#allocation64_spill] sm:$0xff] }
 0x35a   :  { %1904 = vmatprep.mubr.bf16.mxu1 %v1871_v62  ;;  %1945 = vmatprep.mubr.bf16.mxu0 %v1871_v62 }
 0x35b   :  { %1905 = vmatmul.mubr.bf16.vlgmr.msra.gmra.mrb[16].mxu1 %v4707_v34  ;;  %1946 = vmatmul.mubr.bf16.vlgmr.msra.gmra.mrb[20].mxu0 %v4707_v34 }
 0x35c   :  { %1955 = vmatpush1.bf16.msra.mxu1 %v5826_v5  ;;  %1986 = vmatprep.mubr.bf16.mxu1 %v1871_v62  ;;  %v4727_v5 = vld [vmem:[#allocation8 + $0x90] ss:$24 sps:$4 sm:$0xff]   ;;  %v5913_v62 = vld [vmem:[#allocation66_spill] sm:$0xff] }
 0x35d   :  { %1956 = vmatprep.subr.bf16.mxu1 %v5827_v17  ;;  %2103 = vmatpush1.bf16.msra.mxu0 %v4581_v45  ;;  %v4730_v17 = vld [vmem:[#allocation8 + $0xc4] ss:$24 sps:$4 sm:$0xff]  }
 0x35e   :  { %2104 = vmatprep.subr.bf16.mxu0 %v4584_v22 }
 0x360   :  { %1957 = vmatpush1.bf16.msra.mxu1 %v5828_v53  ;;  %v4735_v53 = vld [vmem:[#allocation8 + $0xc0] ss:$24 sps:$4 sm:$0xff]  }
 0x361   :  { %1958 = vmatprep.subr.bf16.mxu1 %v5829_v47  ;;  %2105 = vmatpush1.bf16.msra.mxu0 %v4589_v63  ;;  %v4738_v47 = vld [vmem:[#allocation8 + $0xf4] ss:$24 sps:$4 sm:$0xff]  }
 0x362   :  { %2106 = vmatprep.subr.bf16.mxu0 %v4592_v61 }
 0x364   :  { %1959 = vmatpush1.bf16.msra.mxu1 %v5830_v8  ;;  %v4743_v8 = vld [vmem:[#allocation8 + $0xf0] ss:$24 sps:$4 sm:$0xff]  }
 0x365   :  { %1960 = vmatprep.subr.bf16.mxu1 %v5831_v15  ;;  %2107 = vmatpush1.bf16.msra.mxu0 %v4597_v18  ;;  %v4746_v15 = vld [vmem:[#allocation8 + $0x124] ss:$24 sps:$4 sm:$0xff]  }
 0x366   :  { %2108 = vmatprep.subr.bf16.mxu0 %v4722_v51 }
 0x368   :  { %1961 = vmatpush1.bf16.msra.mxu1 %v5832_v7  ;;  %v4751_v7 = vld [vmem:[#allocation8 + $0x120] ss:$24 sps:$4 sm:$0xff]  }
 0x369   :  { %1962 = vmatprep.subr.bf16.mxu1 %v5833_v3  ;;  %2109 = vmatpush1.bf16.msra.mxu0 %v4727_v5  ;;  %v4754_v3 = vld [vmem:[#allocation8 + $0x154] ss:$24 sps:$4 sm:$0xff]  }
 0x36a   :  { %2110 = vmatprep.subr.bf16.mxu0 %v4730_v17 }
 0x36c   :  { %1963 = vmatpush1.bf16.msra.mxu1 %v5834_v33  ;;  %v4759_v33 = vld [vmem:[#allocation8 + $0x150] ss:$24 sps:$4 sm:$0xff]  }
 0x36d   :  { %1964 = vmatprep.subr.bf16.mxu1 %v5835_v1  ;;  %2111 = vmatpush1.bf16.msra.mxu0 %v4735_v53  ;;  %v4762_v1 = vld [vmem:[#allocation8 + $0x184] ss:$24 sps:$4 sm:$0xff]  }
 0x36e   :  { %2112 = vmatprep.subr.bf16.mxu0 %v4738_v47 }
 0x370   :  { %1965 = vmatpush1.bf16.msra.mxu1 %v5836_v41  ;;  %v4767_v41 = vld [vmem:[#allocation8 + $0x180] ss:$24 sps:$4 sm:$0xff]  }
 0x371   :  { %1966 = vmatprep.subr.bf16.mxu1 %v5837_v11  ;;  %2113 = vmatpush1.bf16.msra.mxu0 %v4743_v8  ;;  %v4770_v11 = vld [vmem:[#allocation8 + $0x1b4] ss:$24 sps:$4 sm:$0xff]  }
 0x372   :  { %2114 = vmatprep.subr.bf16.mxu0 %v4746_v15 }
 0x374   :  { %1967 = vmatpush1.bf16.msra.mxu1 %v5838_v16  ;;  %v4775_v16 = vld [vmem:[#allocation8 + $0x1b0] ss:$24 sps:$4 sm:$0xff]  }
 0x375   :  { %1968 = vmatprep.subr.bf16.mxu1 %v5839_v19  ;;  %2115 = vmatpush1.bf16.msra.mxu0 %v4751_v7  ;;  %v4778_v19 = vld [vmem:[#allocation8 + $0x1e4] ss:$24 sps:$4 sm:$0xff]  }
 0x376   :  { %2116 = vmatprep.subr.bf16.mxu0 %v4754_v3 }
 0x378   :  { %1969 = vmatpush1.bf16.msra.mxu1 %v5840_v21  ;;  %v4783_v21 = vld [vmem:[#allocation8 + $0x1e0] ss:$24 sps:$4 sm:$0xff]  }
 0x379   :  { %1970 = vmatprep.subr.bf16.mxu1 %v5841_v24  ;;  %2117 = vmatpush1.bf16.msra.mxu0 %v4759_v33  ;;  %5878 = vst [vmem:[#allocation19_spill] sm:$0xff] %v4783_v21  ;;  %v4786_v24 = vld [vmem:[#allocation8 + $0x214] ss:$24 sps:$4 sm:$0xff]  }
 0x37a   :  { %2118 = vmatprep.subr.bf16.mxu0 %v4762_v1  ;;  %5879 = vst [vmem:[#allocation20_spill] sm:$0xff] %v4786_v24 }
 0x37c   :  { %1971 = vmatpush1.bf16.msra.mxu1 %v5842_v26  ;;  %v4791_v26 = vld [vmem:[#allocation8 + $0x210] ss:$24 sps:$4 sm:$0xff]  }
 0x37d   :  { %1972 = vmatprep.subr.bf16.mxu1 %v5843_v29  ;;  %2119 = vmatpush1.bf16.msra.mxu0 %v4767_v41  ;;  %5880 = vst [vmem:[#allocation21_spill] sm:$0xff] %v4791_v26  ;;  %v4794_v29 = vld [vmem:[#allocation8 + $0x244] ss:$24 sps:$4 sm:$0xff]  }
 0x37e   :  { %2120 = vmatprep.subr.bf16.mxu0 %v4770_v11  ;;  %5881 = vst [vmem:[#allocation22_spill] sm:$0xff] %v4794_v29 }
 0x380   :  { %1973 = vmatpush1.bf16.msra.mxu1 %v5844_v31  ;;  %v4799_v31 = vld [vmem:[#allocation8 + $0x240] ss:$24 sps:$4 sm:$0xff]  }
 0x381   :  { %1974 = vmatprep.subr.bf16.mxu1 %v5845_v35  ;;  %2121 = vmatpush1.bf16.msra.mxu0 %v4775_v16  ;;  %5882 = vst [vmem:[#allocation13_spill] sm:$0xff] %v4799_v31  ;;  %v4802_v35 = vld [vmem:[#allocation8 + $0x274] ss:$24 sps:$4 sm:$0xff]  }
 0x382   :  { %2122 = vmatprep.subr.bf16.mxu0 %v4778_v19  ;;  %5883 = vst [vmem:[#allocation18_spill] sm:$0xff] %v4802_v35 }
 0x384   :  { %1975 = vmatpush1.bf16.msra.mxu1 %v5846_v38  ;;  %v4807_v38 = vld [vmem:[#allocation8 + $0x270] ss:$24 sps:$4 sm:$0xff]  }
 0x385   :  { %1976 = vmatprep.subr.bf16.mxu1 %v5847_v40  ;;  %2123 = vmatpush1.bf16.msra.mxu0 %v4783_v21  ;;  %5884 = vst [vmem:[#allocation14_spill] sm:$0xff] %v4807_v38  ;;  %v4810_v40 = vld [vmem:[#allocation8 + $0x2a4] ss:$24 sps:$4 sm:$0xff]  }
 0x386   :  { %2124 = vmatprep.subr.bf16.mxu0 %v4786_v24  ;;  %5885 = vst [vmem:[#allocation15_spill] sm:$0xff] %v4810_v40 }
 0x388   :  { %1977 = vmatpush1.bf16.msra.mxu1 %v5848_v42  ;;  %v4815_v42 = vld [vmem:[#allocation8 + $0x2a0] ss:$24 sps:$4 sm:$0xff]  }
 0x389   :  { %1978 = vmatprep.subr.bf16.mxu1 %v5849_v44  ;;  %2125 = vmatpush1.bf16.msra.mxu0 %v4791_v26  ;;  %5886 = vst [vmem:[#allocation23_spill] sm:$0xff] %v4815_v42  ;;  %v4818_v44 = vld [vmem:[#allocation8 + $0x2d4] ss:$24 sps:$4 sm:$0xff]  }
 0x38a   :  { %2126 = vmatprep.subr.bf16.mxu0 %v4794_v29  ;;  %5887 = vst [vmem:[#allocation24_spill] sm:$0xff] %v4818_v44 }
 0x38c   :  { %1979 = vmatpush1.bf16.msra.mxu1 %v5850_v46  ;;  %v4835_v46 = vld [vmem:[#allocation8 + $0x3c] ss:$24 sps:$4 sm:$0xff]  }
 0x38d   :  { %1980 = vmatprep.subr.bf16.mxu1 %v5851_v48  ;;  %2127 = vmatpush1.bf16.msra.mxu0 %v4799_v31  ;;  %5892 = vst [vmem:[#allocation33_spill] sm:$0xff] %v4835_v46  ;;  %v5894_v48 = vld [vmem:[#allocation28_spill] sm:$0xff] }
 0x38e   :  { %2128 = vmatprep.subr.bf16.mxu0 %v4802_v35 }
 0x390   :  { %1981 = vmatpush1.bf16.msra.mxu1 %v4432_v13  ;;  %v4825_v13 = vld [vmem:[#allocation8 + $0x2d0] ss:$24 sps:$4 sm:$0xff]  }
 0x391   :  { %1982 = vmatprep.subr.bf16.mxu1 %v4438_v9  ;;  %2129 = vmatpush1.bf16.msra.mxu0 %v4807_v38  ;;  %v4822_v9 = vld [vmem:[#allocation8 + $0xc] ss:$24 sps:$4 sm:$0xff]   ;;  %5889 = vst [vmem:[#allocation27_spill] sm:$0xff] %v4825_v13 }
 0x392   :  { %2130 = vmatprep.subr.bf16.mxu0 %v4810_v40  ;;  %5888 = vst [vmem:[#allocation25_spill] sm:$0xff] %v4822_v9 }
 0x394   :  { %1983 = vmatpush1.bf16.msra.mxu1 %v4444_v2  ;;  %v4828_v2 = vld [vmem:[#allocation8 + $0x14] ss:$24 sps:$4 sm:$0xff]  }
 0x395   :  { %1984 = vmatprep.subr.bf16.mxu1 %v4450_v0  ;;  %2131 = vmatpush1.bf16.msra.mxu0 %v4815_v42  ;;  %5890 = vst [vmem:[#allocation29_spill] sm:$0xff] %v4828_v2  ;;  %v4832_v0 = vld [vmem:[#allocation8 + $0x8] ss:$24 sps:$4 sm:$0xff]  }
 0x396   :  { %2132 = vmatprep.subr.bf16.mxu0 %v4818_v44  ;;  %5891 = vst [vmem:[#allocation31_spill] sm:$0xff] %v4832_v0 }
 0x398   :  { %1985 = vmatpush1.bf16.msra.mxu1 %v4456_v27  ;;  %v5893_v27 = vld [vmem:[#allocation26_spill] sm:$0xff] }
 0x399   :  { %2143 = vmatprep.subr.bf16.mxu1 %v4822_v9  ;;  %2133 = vmatpush1.bf16.msra.mxu0 %v4825_v13 }
 0x39a   :  { %2184 = vmatprep.subr.bf16.mxu0 %v4828_v2 }
 0x39b   :  { %1987 = vmatmul.mubr.bf16.vlgmr.msra.gmra.mrb[20].mxu1 %v4707_v34  ;;  %v5914_v34 = vld [vmem:[#allocation68_spill] sm:$0xff] }
 0x39c   :  { %2144 = vmatpush1.bf16.msra.mxu1 %v4832_v0 }
 0x39d   :  { %2145 = vmatprep.subr.bf16.mxu1 %v4835_v46 }
 0x3a0   :  { %2146 = vmatpush1.bf16.msra.mxu1 %v4284_v39  ;;  %v5903_v39 = vld [vmem:[#allocation46_spill] sm:$0xff] }
 0x3a1   :  { %2147 = vmatprep.subr.bf16.mxu1 %v5893_v27  ;;  %v5915_v27 = vld [vmem:[#allocation70_spill] sm:$0xff] }
 0x3a4   :  { %2148 = vmatpush1.bf16.msra.mxu1 %v5894_v48  ;;  %v5916_v48 = vld [vmem:[#allocation72_spill] sm:$0xff] }
 0x3a5   :  { %2149 = vmatprep.subr.bf16.mxu1 %v5895_v6  ;;  %v5917_v6 = vld [vmem:[#allocation73_spill] sm:$0xff] }
 0x3a8   :  { %2150 = vmatpush1.bf16.msra.mxu1 %v5896_v14  ;;  %v5918_v14 = vld [vmem:[#allocation74_spill] sm:$0xff] }
 0x3a9   :  { %2151 = vmatprep.subr.bf16.mxu1 %v5897_v28  ;;  %v5919_v28 = vld [vmem:[#allocation75_spill] sm:$0xff] }
 0x3ac   :  { %2152 = vmatpush1.bf16.msra.mxu1 %v5898_v10  ;;  %v5920_v10 = vld [vmem:[#allocation76_spill] sm:$0xff] }
 0x3ad   :  { %2153 = vmatprep.subr.bf16.mxu1 %v5899_v4  ;;  %v5921_v4 = vld [vmem:[#allocation17_spill] sm:$0xff] }
 0x3b0   :  { %2154 = vmatpush1.bf16.msra.mxu1 %v5900_v43 }
 0x3b1   :  { %2155 = vmatprep.subr.bf16.mxu1 %v5901_v37 }
 0x3b4   :  { %2156 = vmatpush1.bf16.msra.mxu1 %v5902_v49 }
 0x3b5   :  { %2157 = vmatprep.subr.bf16.mxu1 %v5903_v39 }
 0x3b8   :  { %2158 = vmatpush1.bf16.msra.mxu1 %v5904_v50 }
 0x3b9   :  { %2159 = vmatprep.subr.bf16.mxu1 %v5905_v12 }
 0x3bc   :  { %2160 = vmatpush1.bf16.msra.mxu1 %v5906_v32 }
 0x3bd   :  { %2161 = vmatprep.subr.bf16.mxu1 %v5907_v57 }
 0x3c0   :  { %2162 = vmatpush1.bf16.msra.mxu1 %v5908_v60 }
 0x3c1   :  { %2163 = vmatprep.subr.bf16.mxu1 %v5909_v23 }
 0x3c4   :  { %2164 = vmatpush1.bf16.msra.mxu1 %v5910_v54 }
 0x3c5   :  { %2165 = vmatprep.subr.bf16.mxu1 %v5911_v56 }
 0x3c8   :  { %2166 = vmatpush1.bf16.msra.mxu1 %v5912_v30 }
 0x3c9   :  { %2167 = vmatprep.subr.bf16.mxu1 %v5913_v62 }
 0x3cc   :  { %2168 = vmatpush1.bf16.msra.mxu1 %v5914_v34 }
 0x3cd   :  { %2169 = vmatprep.subr.bf16.mxu1 %v5915_v27 }
 0x3d0   :  { %2170 = vmatpush1.bf16.msra.mxu1 %v5916_v48 }
 0x3d1   :  { %2171 = vmatprep.subr.bf16.mxu1 %v5917_v6 }
 0x3d4   :  { %2172 = vmatpush1.bf16.msra.mxu1 %v5918_v14 }
 0x3d5   :  { %2173 = vmatprep.subr.bf16.mxu1 %v5919_v28 }
 0x3d8   :  { %2174 = vmatpush1.bf16.msra.mxu1 %v5920_v10 }
 0x3d9   :  { %2332 = vmatprep.subr.bf16.mxu1 %v5921_v4 }
 0x42e   :  { %v1906_v43 = vpop.f32.mrb[16].mxu1  ;;  %v1947_v37 = vpop.f32.mrb[20].mxu0 }
 0x42f   :  { %v1908_v49 = vpop.f32.mrb[17].mxu1  ;;  %v1949_v39 = vpop.f32.mrb[21].mxu0 }
 0x430   :  { %v2005_v50 = vcombine.low %v1906_v43, %v1908_v49  ;;  %v2006_v12 = vcombine.low %v1947_v37, %v1949_v39  ;;  %v1910_v32 = vpop.f32.mrb[18].mxu1  ;;  %v1951_v57 = vpop.f32.mrb[22].mxu0  ;;  %v1997_v37 = vld [vmem:[#allocation2 + $0x2] ss:$8 sm:$0x30] }
 0x431   :  { %v1911_v60 = vpop.f32.mrb[19].mxu1  ;;  %v1952_v23 = vpop.f32.mrb[23].mxu0 }
 0x432   :  { %v2014_v54 = vrot.slane %v2005_v50, %v4549_v55  ;;  %v2021_v56 = vrot.slane %v2006_v12, %v4549_v55  ;;  %v1996_v50 = vld [vmem:[#allocation2 + $0x2] ss:$8 sm:$0xf] }
 0x433   :  { %v1998_v12 = vor.u32 %v1997_v37, %v1996_v50 }
 0x434   :  { %v2029_v30 = vcombine.low %v2014_v54, %v2021_v56 }
 0x436   :  { %v2036_v49 = vrot.slane %v2029_v30, %v4549_v55 }
 0x46e   :  { %v1988_v62 = vpop.f32.mrb[20].mxu1 }
 0x46f   :  { %v2053_v34 = vadd.f32 %v1988_v62, %v5877_v52  ;;  %v1990_v27 = vpop.f32.mrb[21].mxu1 }
 0x470   :  { %v2007_v48 = vcombine.low %v1988_v62, %v1990_v27  ;;  %v2054_v6 = vadd.f32 %v1990_v27, %v4546_v59  ;;  %v1992_v14 = vpop.f32.mrb[22].mxu1 }
 0x471   :  { %v1993_v28 = vpop.f32.mrb[23].mxu1 }
 0x472   :  { %v2028_v10 = vrot.slane %v2007_v48, %v4549_v55  ;;  %v2057_v43 = vcombine.low %v2053_v34, %v2054_v6  ;;  %v2075_v48 = vrot.slane %v1998_v12, 4 }
 0x474   :  { %v2043_v39 = vrot.slane %v2028_v10, %v4549_v55  ;;  %v2064_v56 = vrot.slane %v2057_v43, %v4549_v55 }
 0x476   :  { %v2044_v32 = vcombine.low %v2036_v49, %v2043_v39  ;;  %v2071_v62 = vrot.slane %v2064_v56, %v4549_v55  ;;  %v4915_v56 = vld [vmem:[#allocation8 + $0xa0] ss:$24 sps:$4 sm:$0xff]  }
 0x478   :  { %v2046_v57 = vadd.f32 %v2044_v32, %v1998_v12  ;;  %v4894_v32 = vld [vmem:[#allocation8 + $0x44] ss:$24 sps:$4 sm:$0xff]  }
 0x47a   :  { %v3451_v60 = vmul.f32 -1.442695, %v2046_v57  ;;  %v4899_v57 = vld [vmem:[#allocation8 + $0x40] ss:$24 sps:$4 sm:$0xff]  }
 0x47c   :  { %3766 = vpow2.f32 %v3451_v60  ;;  %v4902_v60 = vld [vmem:[#allocation8 + $0x74] ss:$24 sps:$4 sm:$0xff]  }
 0x486   :  { %v3767_v23 = vpop.eup %3766 }
 0x487   :  { %v2050_v54 = vadd.f32 1.0, %v3767_v23  ;;  %v4907_v23 = vld [vmem:[#allocation8 + $0x70] ss:$24 sps:$4 sm:$0xff]  }
 0x489   :  { %3768 = vrcp.f32 %v2050_v54  ;;  %v4910_v54 = vld [vmem:[#allocation8 + $0xa4] ss:$24 sps:$4 sm:$0xff]  }
 0x493   :  { %v3769_v27 = vpop.eup %3768 }
 0x494   :  { %v2073_v34 = vmul.f32 %v3769_v27, %v2071_v62  ;;  %v2080_v30 = vrot.slane %v3769_v27, 2  ;;  %v4918_v62 = vld [vmem:[#allocation8 + $0xd4] ss:$24 sps:$4 sm:$0xff]   ;;  %v4923_v27 = vld [vmem:[#allocation8 + $0xd0] ss:$24 sps:$4 sm:$0xff]  }
 0x496   :  { %v2077_v6 = vadd.f32 %v2075_v48, %v2073_v34  ;;  %v2082_v14 = vsub.f32 1.0, %v2080_v30  ;;  %v2084_v37 = vmul.f32 %v2080_v30, %v4698_v58  ;;  %v4891_v58 = vld [vmem:[#allocation8 + $0x10] ss:$24 sps:$4 sm:$0xff]   ;;  %v4926_v34 = vld [vmem:[#allocation8 + $0x104] ss:$24 sps:$4 sm:$0xff]  }
 0x497   :  { %v4931_v48 = vld [vmem:[#allocation8 + $0x100] ss:$24 sps:$4 sm:$0xff]   ;;  %v4939_v30 = vld [vmem:[#allocation8 + $0x130] ss:$24 sps:$4 sm:$0xff]  }
 0x498   :  { %3770 = vtanh.f32 %v2077_v6  ;;  %v4934_v6 = vld [vmem:[#allocation8 + $0x134] ss:$24 sps:$4 sm:$0xff]  }
 0x4a2   :  { %v3771_v28 = vpop.eup %3770 }
 0x4a3   :  { %v2083_v10 = vmul.f32 %v3771_v28, %v2082_v14  ;;  %v4942_v14 = vld [vmem:[#allocation8 + $0x164] ss:$24 sps:$4 sm:$0xff]   ;;  %v4947_v28 = vld [vmem:[#allocation8 + $0x160] ss:$24 sps:$4 sm:$0xff]  }
 0x4a5   :  { %v4878_v49 = vadd.f32 %v2084_v37, %v2083_v10  ;;  %v4950_v10 = vld [vmem:[#allocation8 + $0x194] ss:$24 sps:$4 sm:$0xff]   ;;  %v4955_v37 = vld [vmem:[#allocation8 + $0x190] ss:$24 sps:$4 sm:$0xff]  }
 0x4a6   :  { %5922 = vst [vmem:[#allocation35_spill] sm:$0xff] %v4955_v37 }
 0x4a7   :  { %2087 = vst.msk [vmem:[#allocation9 + $0x2] ss:$8 sm:$0x3] %vm4562_vm0, %v4878_v49  ;;  %v2097_v43 = vrot.slane %v4878_v49, %v5820_v25  ;;  %v2093_v39 = vrot.slane %v4878_v49, %v5819_v36 }
 0x4a9   :  { %v2101_v50 = vpack.c.bf16 %v2097_v43, %v2097_v43  ;;  %v4887_v12 = vpack.c.bf16 %v2093_v39, %v2093_v39  ;;  %v4958_v43 = vld [vmem:[#allocation8 + $0x1c4] ss:$24 sps:$4 sm:$0xff]   ;;  %v4963_v39 = vld [vmem:[#allocation8 + $0x1c0] ss:$24 sps:$4 sm:$0xff]  }
 0x4aa   :  { %5923 = vst [vmem:[#allocation37_spill] sm:$0xff] %v4958_v43  ;;  %5924 = vst [vmem:[#allocation39_spill] sm:$0xff] %v4963_v39 }
 0x4ab   :  { %2134 = vmatprep.mubr.bf16.mxu0 %v2101_v50  ;;  %2175 = vmatprep.mubr.bf16.mxu1 %v2101_v50 }
 0x4ac   :  { %2135 = vmatmul.mubr.bf16.vlgmr.msra.gmra.mrb[24].mxu0 %v4887_v12  ;;  %2176 = vmatmul.mubr.bf16.vlgmr.msra.gmra.mrb[24].mxu1 %v4887_v12 }
 0x4ad   :  { %2185 = vmatpush1.bf16.msra.mxu0 %v4891_v58  ;;  %2216 = vmatprep.mubr.bf16.mxu0 %v2101_v50  ;;  %v4966_v50 = vld [vmem:[#allocation8 + $0x1f4] ss:$24 sps:$4 sm:$0xff]  }
 0x4ae   :  { %2186 = vmatprep.subr.bf16.mxu0 %v4894_v32  ;;  %2333 = vmatpush1.bf16.msra.mxu1 %v4581_v45  ;;  %5925 = vst [vmem:[#allocation41_spill] sm:$0xff] %v4966_v50 }
 0x4af   :  { %2334 = vmatprep.subr.bf16.mxu1 %v4584_v22 }
 0x4b1   :  { %2187 = vmatpush1.bf16.msra.mxu0 %v4899_v57 }
 0x4b2   :  { %2188 = vmatprep.subr.bf16.mxu0 %v4902_v60  ;;  %2335 = vmatpush1.bf16.msra.mxu1 %v4589_v63 }
 0x4b3   :  { %2336 = vmatprep.subr.bf16.mxu1 %v4592_v61 }
 0x4b5   :  { %2189 = vmatpush1.bf16.msra.mxu0 %v4907_v23 }
 0x4b6   :  { %2190 = vmatprep.subr.bf16.mxu0 %v4910_v54  ;;  %2337 = vmatpush1.bf16.msra.mxu1 %v4597_v18 }
 0x4b7   :  { %2338 = vmatprep.subr.bf16.mxu1 %v4722_v51 }
 0x4b9   :  { %2191 = vmatpush1.bf16.msra.mxu0 %v4915_v56 }
 0x4ba   :  { %2192 = vmatprep.subr.bf16.mxu0 %v4918_v62  ;;  %2339 = vmatpush1.bf16.msra.mxu1 %v4727_v5 }
 0x4bb   :  { %2340 = vmatprep.subr.bf16.mxu1 %v4730_v17 }
 0x4bd   :  { %2193 = vmatpush1.bf16.msra.mxu0 %v4923_v27 }
 0x4be   :  { %2194 = vmatprep.subr.bf16.mxu0 %v4926_v34  ;;  %2341 = vmatpush1.bf16.msra.mxu1 %v4735_v53 }
 0x4bf   :  { %2342 = vmatprep.subr.bf16.mxu1 %v4738_v47 }
 0x4c1   :  { %2195 = vmatpush1.bf16.msra.mxu0 %v4931_v48 }
 0x4c2   :  { %2196 = vmatprep.subr.bf16.mxu0 %v4934_v6  ;;  %2343 = vmatpush1.bf16.msra.mxu1 %v4743_v8 }
 0x4c3   :  { %2344 = vmatprep.subr.bf16.mxu1 %v4746_v15 }
 0x4c5   :  { %2197 = vmatpush1.bf16.msra.mxu0 %v4939_v30 }
 0x4c6   :  { %2198 = vmatprep.subr.bf16.mxu0 %v4942_v14  ;;  %2345 = vmatpush1.bf16.msra.mxu1 %v4751_v7 }
 0x4c7   :  { %2346 = vmatprep.subr.bf16.mxu1 %v4754_v3 }
 0x4c9   :  { %2199 = vmatpush1.bf16.msra.mxu0 %v4947_v28 }
 0x4ca   :  { %2200 = vmatprep.subr.bf16.mxu0 %v4950_v10  ;;  %2347 = vmatpush1.bf16.msra.mxu1 %v4759_v33 }
 0x4cb   :  { %2348 = vmatprep.subr.bf16.mxu1 %v4762_v1 }
 0x4cd   :  { %2201 = vmatpush1.bf16.msra.mxu0 %v4955_v37  ;;  %v4971_v37 = vld [vmem:[#allocation8 + $0x1f0] ss:$24 sps:$4 sm:$0xff]  }
 0x4ce   :  { %2202 = vmatprep.subr.bf16.mxu0 %v4958_v43  ;;  %2349 = vmatpush1.bf16.msra.mxu1 %v4767_v41  ;;  %5926 = vst [vmem:[#allocation43_spill] sm:$0xff] %v4971_v37  ;;  %v4974_v43 = vld [vmem:[#allocation8 + $0x224] ss:$24 sps:$4 sm:$0xff]  }
 0x4cf   :  { %2350 = vmatprep.subr.bf16.mxu1 %v4770_v11  ;;  %5927 = vst [vmem:[#allocation45_spill] sm:$0xff] %v4974_v43 }
 0x4d1   :  { %2203 = vmatpush1.bf16.msra.mxu0 %v4963_v39  ;;  %v4979_v39 = vld [vmem:[#allocation8 + $0x220] ss:$24 sps:$4 sm:$0xff]  }
 0x4d2   :  { %2204 = vmatprep.subr.bf16.mxu0 %v4966_v50  ;;  %2351 = vmatpush1.bf16.msra.mxu1 %v4775_v16  ;;  %5928 = vst [vmem:[#allocation47_spill] sm:$0xff] %v4979_v39  ;;  %v4982_v50 = vld [vmem:[#allocation8 + $0x254] ss:$24 sps:$4 sm:$0xff]  }
 0x4d3   :  { %2352 = vmatprep.subr.bf16.mxu1 %v4778_v19  ;;  %5929 = vst [vmem:[#allocation49_spill] sm:$0xff] %v4982_v50 }
 0x4d5   :  { %2205 = vmatpush1.bf16.msra.mxu0 %v4971_v37  ;;  %v4987_v37 = vld [vmem:[#allocation8 + $0x250] ss:$24 sps:$4 sm:$0xff]  }
 0x4d6   :  { %2206 = vmatprep.subr.bf16.mxu0 %v4974_v43  ;;  %2353 = vmatpush1.bf16.msra.mxu1 %v4783_v21  ;;  %5930 = vst [vmem:[#allocation51_spill] sm:$0xff] %v4987_v37  ;;  %v4990_v43 = vld [vmem:[#allocation8 + $0x284] ss:$24 sps:$4 sm:$0xff]  }
 0x4d7   :  { %2354 = vmatprep.subr.bf16.mxu1 %v4786_v24  ;;  %5931 = vst [vmem:[#allocation53_spill] sm:$0xff] %v4990_v43 }
 0x4d9   :  { %2207 = vmatpush1.bf16.msra.mxu0 %v4979_v39  ;;  %v4995_v39 = vld [vmem:[#allocation8 + $0x280] ss:$24 sps:$4 sm:$0xff]  }
 0x4da   :  { %2208 = vmatprep.subr.bf16.mxu0 %v4982_v50  ;;  %2355 = vmatpush1.bf16.msra.mxu1 %v4791_v26  ;;  %5932 = vst [vmem:[#allocation55_spill] sm:$0xff] %v4995_v39  ;;  %v4998_v50 = vld [vmem:[#allocation8 + $0x2b4] ss:$24 sps:$4 sm:$0xff]  }
 0x4db   :  { %2356 = vmatprep.subr.bf16.mxu1 %v4794_v29  ;;  %5933 = vst [vmem:[#allocation57_spill] sm:$0xff] %v4998_v50 }
 0x4dd   :  { %2209 = vmatpush1.bf16.msra.mxu0 %v4987_v37  ;;  %v5003_v37 = vld [vmem:[#allocation8 + $0x2b0] ss:$24 sps:$4 sm:$0xff]  }
 0x4de   :  { %2210 = vmatprep.subr.bf16.mxu0 %v4990_v43  ;;  %2357 = vmatpush1.bf16.msra.mxu1 %v4799_v31  ;;  %5934 = vst [vmem:[#allocation59_spill] sm:$0xff] %v5003_v37  ;;  %v5006_v43 = vld [vmem:[#allocation8 + $0x2e4] ss:$24 sps:$4 sm:$0xff]  }
 0x4df   :  { %2358 = vmatprep.subr.bf16.mxu1 %v4802_v35  ;;  %5935 = vst [vmem:[#allocation61_spill] sm:$0xff] %v5006_v43 }
 0x4e1   :  { %2211 = vmatpush1.bf16.msra.mxu0 %v4995_v39  ;;  %v5011_v39 = vld [vmem:[#allocation8 + $0x2e0] ss:$24 sps:$4 sm:$0xff]  }
 0x4e2   :  { %2212 = vmatprep.subr.bf16.mxu0 %v4998_v50  ;;  %2359 = vmatpush1.bf16.msra.mxu1 %v4807_v38  ;;  %5936 = vst [vmem:[#allocation63_spill] sm:$0xff] %v5011_v39 }
 0x4e3   :  { %2360 = vmatprep.subr.bf16.mxu1 %v4810_v40 }
 0x4e5   :  { %2213 = vmatpush1.bf16.msra.mxu0 %v5003_v37 }
 0x4e6   :  { %2214 = vmatprep.subr.bf16.mxu0 %v5006_v43  ;;  %2361 = vmatpush1.bf16.msra.mxu1 %v4815_v42  ;;  %v5020_v43 = vld [vmem:[#allocation8 + $0x38] ss:$24 sps:$4 sm:$0xff]  }
 0x4e7   :  { %2362 = vmatprep.subr.bf16.mxu1 %v4818_v44  ;;  %5937 = vst [vmem:[#allocation65_spill] sm:$0xff] %v5020_v43  ;;  %v5023_v44 = vld [vmem:[#allocation8 + $0x6c] ss:$24 sps:$4 sm:$0xff]  }
 0x4e8   :  { %5938 = vst [vmem:[#allocation67_spill] sm:$0xff] %v5023_v44 }
 0x4e9   :  { %2215 = vmatpush1.bf16.msra.mxu0 %v5011_v39  ;;  %v5026_v39 = vld [vmem:[#allocation8 + $0x68] ss:$24 sps:$4 sm:$0xff]  }
 0x4ea   :  { %2373 = vmatprep.subr.bf16.mxu0 %v4822_v9  ;;  %2363 = vmatpush1.bf16.msra.mxu1 %v4825_v13  ;;  %5939 = vst [vmem:[#allocation69_spill] sm:$0xff] %v5026_v39  ;;  %v5029_v13 = vld [vmem:[#allocation8 + $0x9c] ss:$24 sps:$4 sm:$0xff]  }
 0x4eb   :  { %2414 = vmatprep.subr.bf16.mxu1 %v4828_v2  ;;  %5940 = vst [vmem:[#allocation71_spill] sm:$0xff] %v5029_v13 }
 0x4ec   :  { %2217 = vmatmul.mubr.bf16.vlgmr.msra.gmra.mrb[28].mxu0 %v4887_v12  ;;  %v5032_v12 = vld [vmem:[#allocation8 + $0x98] ss:$24 sps:$4 sm:$0xff]  }
 0x4ed   :  { %2374 = vmatpush1.bf16.msra.mxu0 %v4832_v0  ;;  %5941 = vst [vmem:[#allocation16_spill] sm:$0xff] %v5032_v12 }
 0x4ee   :  { %2375 = vmatprep.subr.bf16.mxu0 %v4835_v46  ;;  %v5035_v46 = vld [vmem:[#allocation8 + $0xcc] ss:$24 sps:$4 sm:$0xff]  }
 0x4ef   :  { %5942 = vst [vmem:[#allocation26_spill] sm:$0xff] %v5035_v46 }
 0x4f1   :  { %2376 = vmatpush1.bf16.msra.mxu0 %v5020_v43  ;;  %v5038_v43 = vld [vmem:[#allocation8 + $0xc8] ss:$24 sps:$4 sm:$0xff]  }
 0x4f2   :  { %2377 = vmatprep.subr.bf16.mxu0 %v5023_v44  ;;  %5943 = vst [vmem:[#allocation28_spill] sm:$0xff] %v5038_v43  ;;  %v5041_v44 = vld [vmem:[#allocation8 + $0xfc] ss:$24 sps:$4 sm:$0xff]  }
 0x4f3   :  { %5944 = vst [vmem:[#allocation30_spill] sm:$0xff] %v5041_v44 }
 0x4f5   :  { %2378 = vmatpush1.bf16.msra.mxu0 %v5026_v39  ;;  %v5044_v39 = vld [vmem:[#allocation8 + $0xf8] ss:$24 sps:$4 sm:$0xff]  }
 0x4f6   :  { %2379 = vmatprep.subr.bf16.mxu0 %v5029_v13  ;;  %5945 = vst [vmem:[#allocation32_spill] sm:$0xff] %v5044_v39  ;;  %v5047_v13 = vld [vmem:[#allocation8 + $0x12c] ss:$24 sps:$4 sm:$0xff]  }
 0x4f7   :  { %5946 = vst [vmem:[#allocation34_spill] sm:$0xff] %v5047_v13 }
 0x4f9   :  { %2380 = vmatpush1.bf16.msra.mxu0 %v5032_v12  ;;  %v5050_v12 = vld [vmem:[#allocation8 + $0x128] ss:$24 sps:$4 sm:$0xff]  }
 0x4fa   :  { %2381 = vmatprep.subr.bf16.mxu0 %v5035_v46  ;;  %5947 = vst [vmem:[#allocation36_spill] sm:$0xff] %v5050_v12  ;;  %v5053_v46 = vld [vmem:[#allocation8 + $0x15c] ss:$24 sps:$4 sm:$0xff]  }
 0x4fb   :  { %5948 = vst [vmem:[#allocation38_spill] sm:$0xff] %v5053_v46 }
 0x4fd   :  { %2382 = vmatpush1.bf16.msra.mxu0 %v5038_v43  ;;  %v5056_v43 = vld [vmem:[#allocation8 + $0x158] ss:$24 sps:$4 sm:$0xff]  }
 0x4fe   :  { %2383 = vmatprep.subr.bf16.mxu0 %v5041_v44  ;;  %5949 = vst [vmem:[#allocation40_spill] sm:$0xff] %v5056_v43  ;;  %v5059_v44 = vld [vmem:[#allocation8 + $0x18c] ss:$24 sps:$4 sm:$0xff]  }
 0x4ff   :  { %5950 = vst [vmem:[#allocation42_spill] sm:$0xff] %v5059_v44 }
 0x501   :  { %2384 = vmatpush1.bf16.msra.mxu0 %v5044_v39  ;;  %v5062_v39 = vld [vmem:[#allocation8 + $0x188] ss:$24 sps:$4 sm:$0xff]  }
 0x502   :  { %2385 = vmatprep.subr.bf16.mxu0 %v5047_v13  ;;  %5951 = vst [vmem:[#allocation44_spill] sm:$0xff] %v5062_v39  ;;  %v5065_v13 = vld [vmem:[#allocation8 + $0x1bc] ss:$24 sps:$4 sm:$0xff]  }
 0x503   :  { %5952 = vst [vmem:[#allocation46_spill] sm:$0xff] %v5065_v13 }
 0x505   :  { %2386 = vmatpush1.bf16.msra.mxu0 %v5050_v12  ;;  %v5068_v12 = vld [vmem:[#allocation8 + $0x1b8] ss:$24 sps:$4 sm:$0xff]  }
 0x506   :  { %2387 = vmatprep.subr.bf16.mxu0 %v5053_v46  ;;  %5953 = vst [vmem:[#allocation48_spill] sm:$0xff] %v5068_v12  ;;  %v5071_v46 = vld [vmem:[#allocation8 + $0x1ec] ss:$24 sps:$4 sm:$0xff]  }
 0x507   :  { %5954 = vst [vmem:[#allocation50_spill] sm:$0xff] %v5071_v46 }
 0x509   :  { %2388 = vmatpush1.bf16.msra.mxu0 %v5056_v43  ;;  %v5074_v43 = vld [vmem:[#allocation8 + $0x1e8] ss:$24 sps:$4 sm:$0xff]  }
 0x50a   :  { %2389 = vmatprep.subr.bf16.mxu0 %v5059_v44  ;;  %5955 = vst [vmem:[#allocation52_spill] sm:$0xff] %v5074_v43  ;;  %v5077_v44 = vld [vmem:[#allocation8 + $0x21c] ss:$24 sps:$4 sm:$0xff]  }
 0x50b   :  { %5956 = vst [vmem:[#allocation54_spill] sm:$0xff] %v5077_v44 }
 0x50d   :  { %2390 = vmatpush1.bf16.msra.mxu0 %v5062_v39  ;;  %v5080_v39 = vld [vmem:[#allocation8 + $0x218] ss:$24 sps:$4 sm:$0xff]  }
 0x50e   :  { %2391 = vmatprep.subr.bf16.mxu0 %v5065_v13  ;;  %5957 = vst [vmem:[#allocation56_spill] sm:$0xff] %v5080_v39  ;;  %v5083_v13 = vld [vmem:[#allocation8 + $0x24c] ss:$24 sps:$4 sm:$0xff]  }
 0x50f   :  { %5958 = vst [vmem:[#allocation58_spill] sm:$0xff] %v5083_v13 }
 0x511   :  { %2392 = vmatpush1.bf16.msra.mxu0 %v5068_v12  ;;  %v5086_v12 = vld [vmem:[#allocation8 + $0x248] ss:$24 sps:$4 sm:$0xff]  }
 0x512   :  { %2393 = vmatprep.subr.bf16.mxu0 %v5071_v46  ;;  %5959 = vst [vmem:[#allocation60_spill] sm:$0xff] %v5086_v12  ;;  %v5089_v46 = vld [vmem:[#allocation8 + $0x27c] ss:$24 sps:$4 sm:$0xff]  }
 0x513   :  { %5960 = vst [vmem:[#allocation62_spill] sm:$0xff] %v5089_v46 }
 0x515   :  { %2394 = vmatpush1.bf16.msra.mxu0 %v5074_v43  ;;  %v5092_v43 = vld [vmem:[#allocation8 + $0x278] ss:$24 sps:$4 sm:$0xff]  }
 0x516   :  { %2395 = vmatprep.subr.bf16.mxu0 %v5077_v44  ;;  %5961 = vst [vmem:[#allocation64_spill] sm:$0xff] %v5092_v43  ;;  %v5095_v44 = vld [vmem:[#allocation8 + $0x2ac] ss:$24 sps:$4 sm:$0xff]  }
 0x517   :  { %5962 = vst [vmem:[#allocation66_spill] sm:$0xff] %v5095_v44 }
 0x519   :  { %2396 = vmatpush1.bf16.msra.mxu0 %v5080_v39  ;;  %v5098_v39 = vld [vmem:[#allocation8 + $0x2a8] ss:$24 sps:$4 sm:$0xff]  }
 0x51a   :  { %2397 = vmatprep.subr.bf16.mxu0 %v5083_v13  ;;  %5963 = vst [vmem:[#allocation68_spill] sm:$0xff] %v5098_v39  ;;  %v5101_v13 = vld [vmem:[#allocation8 + $0x2dc] ss:$24 sps:$4 sm:$0xff]  }
 0x51b   :  { %5964 = vst [vmem:[#allocation70_spill] sm:$0xff] %v5101_v13 }
 0x51d   :  { %2398 = vmatpush1.bf16.msra.mxu0 %v5086_v12  ;;  %v5104_v12 = vld [vmem:[#allocation8 + $0x2d8] ss:$24 sps:$4 sm:$0xff]  }
 0x51e   :  { %2399 = vmatprep.subr.bf16.mxu0 %v5089_v46  ;;  %5965 = vst [vmem:[#allocation72_spill] sm:$0xff] %v5104_v12 }
 0x521   :  { %2400 = vmatpush1.bf16.msra.mxu0 %v5092_v43 }
 0x522   :  { %2401 = vmatprep.subr.bf16.mxu0 %v5095_v44 }
 0x525   :  { %2402 = vmatpush1.bf16.msra.mxu0 %v5098_v39 }
 0x526   :  { %2403 = vmatprep.subr.bf16.mxu0 %v5101_v13 }
 0x529   :  { %2404 = vmatpush1.bf16.msra.mxu0 %v5104_v12 }
 0x52a   :  { %2562 = vmatprep.subr.bf16.mxu0 %v5921_v4 }
 0x57f   :  { %v2136_v46 = vpop.f32.mrb[24].mxu0  ;;  %v2177_v43 = vpop.f32.mrb[24].mxu1 }
 0x580   :  { %v2138_v0 = vpop.f32.mrb[25].mxu0  ;;  %v2179_v2 = vpop.f32.mrb[25].mxu1 }
 0x581   :  { %v2235_v9 = vcombine.low %v2136_v46, %v2138_v0  ;;  %v2236_v44 = vcombine.low %v2177_v43, %v2179_v2  ;;  %v2140_v42 = vpop.f32.mrb[26].mxu0  ;;  %v2181_v37 = vpop.f32.mrb[26].mxu1  ;;  %v2227_v0 = vld [vmem:[#allocation2 + $0x3] ss:$8 sm:$0x30] }
 0x582   :  { %v2141_v40 = vpop.f32.mrb[27].mxu0  ;;  %v2182_v39 = vpop.f32.mrb[27].mxu1  ;;  %v2226_v46 = vld [vmem:[#allocation2 + $0x3] ss:$8 sm:$0xf] }
 0x583   :  { %v2244_v38 = vrot.slane %v2235_v9, %v4549_v55  ;;  %v2251_v13 = vrot.slane %v2236_v44, %v4549_v55  ;;  %v2228_v44 = vor.u32 %v2227_v0, %v2226_v46 }
 0x585   :  { %v2259_v50 = vcombine.low %v2244_v38, %v2251_v13 }
 0x587   :  { %v2266_v40 = vrot.slane %v2259_v50, %v4549_v55 }
 0x5bf   :  { %v2218_v35 = vpop.f32.mrb[28].mxu0 }
 0x5c0   :  { %v2283_v12 = vadd.f32 %v2218_v35, %v5877_v52  ;;  %v2220_v31 = vpop.f32.mrb[29].mxu0 }
 0x5c1   :  { %v2237_v4 = vcombine.low %v2218_v35, %v2220_v31  ;;  %v2284_v29 = vadd.f32 %v2220_v31, %v4546_v59  ;;  %v2222_v26 = vpop.f32.mrb[30].mxu0 }
 0x5c2   :  { %v2223_v24 = vpop.f32.mrb[31].mxu0 }
 0x5c3   :  { %v2258_v2 = vrot.slane %v2237_v4, %v4549_v55  ;;  %v2287_v42 = vcombine.low %v2283_v12, %v2284_v29  ;;  %v2305_v4 = vrot.slane %v2228_v44, 4 }
 0x5c5   :  { %v2273_v9 = vrot.slane %v2258_v2, %v4549_v55  ;;  %v2294_v26 = vrot.slane %v2287_v42, %v4549_v55 }
 0x5c7   :  { %v2274_v38 = vcombine.low %v2266_v40, %v2273_v9  ;;  %v2301_v24 = vrot.slane %v2294_v26, %v4549_v55  ;;  %v5976_v26 = vld [vmem:[#allocation22_spill] sm:$0xff] }
 0x5c9   :  { %v2276_v13 = vadd.f32 %v2274_v38, %v2228_v44 }
 0x5cb   :  { %v3452_v37 = vmul.f32 -1.442695, %v2276_v13  ;;  %v5972_v13 = vld [vmem:[#allocation20_spill] sm:$0xff] }
 0x5cd   :  { %3772 = vpow2.f32 %v3452_v37  ;;  %v5973_v37 = vld [vmem:[#allocation47_spill] sm:$0xff] }
 0x5d7   :  { %v3773_v43 = vpop.eup %3772 }
 0x5d8   :  { %v2280_v35 = vadd.f32 1.0, %v3773_v43  ;;  %v5974_v43 = vld [vmem:[#allocation49_spill] sm:$0xff] }
 0x5da   :  { %3774 = vrcp.f32 %v2280_v35  ;;  %v5975_v35 = vld [vmem:[#allocation21_spill] sm:$0xff] }
 0x5e4   :  { %v3775_v31 = vpop.eup %3774 }
 0x5e5   :  { %v2303_v29 = vmul.f32 %v3775_v31, %v2301_v24  ;;  %v2310_v50 = vrot.slane %v3775_v31, 2  ;;  %v5977_v24 = vld [vmem:[#allocation51_spill] sm:$0xff]  ;;  %v5978_v31 = vld [vmem:[#allocation53_spill] sm:$0xff] }
 0x5e7   :  { %v2307_v39 = vadd.f32 %v2305_v4, %v2303_v29  ;;  %v2312_v12 = vsub.f32 1.0, %v2310_v50  ;;  %v2314_v40 = vmul.f32 %v2310_v50, %v4878_v49  ;;  %v5971_v49 = vld [vmem:[#allocation45_spill] sm:$0xff]  ;;  %v5980_v4 = vld [vmem:[#allocation18_spill] sm:$0xff] }
 0x5e8   :  { %v5979_v29 = vld [vmem:[#allocation13_spill] sm:$0xff] }
 0x5e9   :  { %3776 = vtanh.f32 %v2307_v39  ;;  %v5981_v39 = vld [vmem:[#allocation55_spill] sm:$0xff]  ;;  %v5982_v50 = vld [vmem:[#allocation57_spill] sm:$0xff] }
 0x5f3   :  { %v3777_v2 = vpop.eup %3776 }
 0x5f4   :  { %v2313_v0 = vmul.f32 %v3777_v2, %v2312_v12  ;;  %v5983_v12 = vld [vmem:[#allocation14_spill] sm:$0xff]  ;;  %v5984_v2 = vld [vmem:[#allocation15_spill] sm:$0xff] }
 0x5f6   :  { %v5118_v9 = vadd.f32 %v2314_v40, %v2313_v0  ;;  %v5985_v0 = vld [vmem:[#allocation59_spill] sm:$0xff]  ;;  %v5986_v40 = vld [vmem:[#allocation61_spill] sm:$0xff] }
 0x5f8   :  { %2317 = vst.msk [vmem:[#allocation9 + $0x3] ss:$8 sm:$0x3] %vm4562_vm0, %v5118_v9  ;;  %v2327_v42 = vrot.slane %v5118_v9, %v5820_v25  ;;  %v2323_v46 = vrot.slane %v5118_v9, %v5819_v36 }
 0x5fa   :  { %v2331_v44 = vpack.c.bf16 %v2327_v42, %v2327_v42  ;;  %v5127_v38 = vpack.c.bf16 %v2323_v46, %v2323_v46  ;;  %v5987_v42 = vld [vmem:[#allocation23_spill] sm:$0xff]  ;;  %v5988_v46 = vld [vmem:[#allocation24_spill] sm:$0xff] }
 0x5fc   :  { %2364 = vmatprep.mubr.bf16.mxu1 %v2331_v44  ;;  %2405 = vmatprep.mubr.bf16.mxu0 %v2331_v44 }
 0x5fd   :  { %2365 = vmatmul.mubr.bf16.vlgmr.msra.gmra.mrb[28].mxu1 %v5127_v38  ;;  %2406 = vmatmul.mubr.bf16.vlgmr.msra.gmra.mrb[32].mxu0 %v5127_v38 }
 0x5fe   :  { %2415 = vmatpush1.bf16.msra.mxu1 %v4891_v58  ;;  %2446 = vmatprep.mubr.bf16.mxu1 %v2331_v44  ;;  %v5989_v44 = vld [vmem:[#allocation63_spill] sm:$0xff] }
 0x5ff   :  { %2416 = vmatprep.subr.bf16.mxu1 %v4894_v32  ;;  %2563 = vmatpush1.bf16.msra.mxu0 %v4581_v45  ;;  %v5966_v45 = vld [vmem:[#allocation35_spill] sm:$0xff] }
 0x600   :  { %2564 = vmatprep.subr.bf16.mxu0 %v4584_v22  ;;  %v5967_v22 = vld [vmem:[#allocation37_spill] sm:$0xff] }
 0x602   :  { %2417 = vmatpush1.bf16.msra.mxu1 %v4899_v57 }
 0x603   :  { %2418 = vmatprep.subr.bf16.mxu1 %v4902_v60  ;;  %2565 = vmatpush1.bf16.msra.mxu0 %v4589_v63  ;;  %v5968_v63 = vld [vmem:[#allocation39_spill] sm:$0xff] }
 0x604   :  { %2566 = vmatprep.subr.bf16.mxu0 %v4592_v61  ;;  %v5969_v61 = vld [vmem:[#allocation41_spill] sm:$0xff] }
 0x606   :  { %2419 = vmatpush1.bf16.msra.mxu1 %v4907_v23 }
 0x607   :  { %2420 = vmatprep.subr.bf16.mxu1 %v4910_v54  ;;  %2567 = vmatpush1.bf16.msra.mxu0 %v4597_v18  ;;  %v5970_v18 = vld [vmem:[#allocation43_spill] sm:$0xff] }
 0x608   :  { %2568 = vmatprep.subr.bf16.mxu0 %v4722_v51 }
 0x60a   :  { %2421 = vmatpush1.bf16.msra.mxu1 %v4915_v56 }
 0x60b   :  { %2422 = vmatprep.subr.bf16.mxu1 %v4918_v62  ;;  %2569 = vmatpush1.bf16.msra.mxu0 %v4727_v5 }
 0x60c   :  { %2570 = vmatprep.subr.bf16.mxu0 %v4730_v17 }
 0x60e   :  { %2423 = vmatpush1.bf16.msra.mxu1 %v4923_v27 }
 0x60f   :  { %2424 = vmatprep.subr.bf16.mxu1 %v4926_v34  ;;  %2571 = vmatpush1.bf16.msra.mxu0 %v4735_v53 }
 0x610   :  { %2572 = vmatprep.subr.bf16.mxu0 %v4738_v47 }
 0x612   :  { %2425 = vmatpush1.bf16.msra.mxu1 %v4931_v48 }
 0x613   :  { %2426 = vmatprep.subr.bf16.mxu1 %v4934_v6  ;;  %2573 = vmatpush1.bf16.msra.mxu0 %v4743_v8 }
 0x614   :  { %2574 = vmatprep.subr.bf16.mxu0 %v4746_v15 }
 0x616   :  { %2427 = vmatpush1.bf16.msra.mxu1 %v4939_v30 }
 0x617   :  { %2428 = vmatprep.subr.bf16.mxu1 %v4942_v14  ;;  %2575 = vmatpush1.bf16.msra.mxu0 %v4751_v7 }
 0x618   :  { %2576 = vmatprep.subr.bf16.mxu0 %v4754_v3 }
 0x61a   :  { %2429 = vmatpush1.bf16.msra.mxu1 %v4947_v28 }
 0x61b   :  { %2430 = vmatprep.subr.bf16.mxu1 %v4950_v10  ;;  %2577 = vmatpush1.bf16.msra.mxu0 %v4759_v33 }
 0x61c   :  { %2578 = vmatprep.subr.bf16.mxu0 %v4762_v1 }
 0x61e   :  { %2431 = vmatpush1.bf16.msra.mxu1 %v5966_v45 }
 0x61f   :  { %2432 = vmatprep.subr.bf16.mxu1 %v5967_v22  ;;  %2579 = vmatpush1.bf16.msra.mxu0 %v4767_v41 }
 0x620   :  { %2580 = vmatprep.subr.bf16.mxu0 %v4770_v11 }
 0x622   :  { %2433 = vmatpush1.bf16.msra.mxu1 %v5968_v63 }
 0x623   :  { %2434 = vmatprep.subr.bf16.mxu1 %v5969_v61  ;;  %2581 = vmatpush1.bf16.msra.mxu0 %v4775_v16 }
 0x624   :  { %2582 = vmatprep.subr.bf16.mxu0 %v4778_v19 }
 0x626   :  { %2435 = vmatpush1.bf16.msra.mxu1 %v5970_v18 }
 0x627   :  { %2436 = vmatprep.subr.bf16.mxu1 %v5971_v49  ;;  %2583 = vmatpush1.bf16.msra.mxu0 %v4783_v21 }
 0x628   :  { %2584 = vmatprep.subr.bf16.mxu0 %v5972_v13 }
 0x62a   :  { %2437 = vmatpush1.bf16.msra.mxu1 %v5973_v37 }
 0x62b   :  { %2438 = vmatprep.subr.bf16.mxu1 %v5974_v43  ;;  %2585 = vmatpush1.bf16.msra.mxu0 %v5975_v35 }
 0x62c   :  { %2586 = vmatprep.subr.bf16.mxu0 %v5976_v26 }
 0x62e   :  { %2439 = vmatpush1.bf16.msra.mxu1 %v5977_v24 }
 0x62f   :  { %2440 = vmatprep.subr.bf16.mxu1 %v5978_v31  ;;  %2587 = vmatpush1.bf16.msra.mxu0 %v5979_v29  ;;  %v5990_v29 = vld [vmem:[#allocation25_spill] sm:$0xff] }
 0x630   :  { %2588 = vmatprep.subr.bf16.mxu0 %v5980_v4  ;;  %v5991_v4 = vld [vmem:[#allocation27_spill] sm:$0xff] }
 0x632   :  { %2441 = vmatpush1.bf16.msra.mxu1 %v5981_v39  ;;  %v5992_v39 = vld [vmem:[#allocation29_spill] sm:$0xff] }
 0x633   :  { %2442 = vmatprep.subr.bf16.mxu1 %v5982_v50  ;;  %2589 = vmatpush1.bf16.msra.mxu0 %v5983_v12  ;;  %v5993_v12 = vld [vmem:[#allocation31_spill] sm:$0xff] }
 0x634   :  { %2590 = vmatprep.subr.bf16.mxu0 %v5984_v2  ;;  %v5994_v2 = vld [vmem:[#allocation33_spill] sm:$0xff] }
 0x636   :  { %2443 = vmatpush1.bf16.msra.mxu1 %v5985_v0  ;;  %v5995_v0 = vld [vmem:[#allocation65_spill] sm:$0xff] }
 0x637   :  { %2444 = vmatprep.subr.bf16.mxu1 %v5986_v40  ;;  %2591 = vmatpush1.bf16.msra.mxu0 %v5987_v42  ;;  %v5996_v40 = vld [vmem:[#allocation67_spill] sm:$0xff]  ;;  %v5997_v42 = vld [vmem:[#allocation69_spill] sm:$0xff] }
 0x638   :  { %2592 = vmatprep.subr.bf16.mxu0 %v5988_v46  ;;  %v5998_v46 = vld [vmem:[#allocation71_spill] sm:$0xff] }
 0x63a   :  { %2445 = vmatpush1.bf16.msra.mxu1 %v5989_v44  ;;  %v5999_v44 = vld [vmem:[#allocation16_spill] sm:$0xff] }
 0x63b   :  { %2603 = vmatprep.subr.bf16.mxu1 %v5990_v29  ;;  %2593 = vmatpush1.bf16.msra.mxu0 %v5991_v4  ;;  %v6000_v29 = vld [vmem:[#allocation26_spill] sm:$0xff]  ;;  %v6001_v4 = vld [vmem:[#allocation28_spill] sm:$0xff] }
 0x63c   :  { %2644 = vmatprep.subr.bf16.mxu0 %v5992_v39  ;;  %v6002_v39 = vld [vmem:[#allocation30_spill] sm:$0xff] }
 0x63d   :  { %2447 = vmatmul.mubr.bf16.vlgmr.msra.gmra.mrb[32].mxu1 %v5127_v38  ;;  %v6003_v38 = vld [vmem:[#allocation32_spill] sm:$0xff] }
 0x63e   :  { %2604 = vmatpush1.bf16.msra.mxu1 %v5993_v12  ;;  %v6004_v12 = vld [vmem:[#allocation34_spill] sm:$0xff] }
 0x63f   :  { %2605 = vmatprep.subr.bf16.mxu1 %v5994_v2  ;;  %v6005_v2 = vld [vmem:[#allocation36_spill] sm:$0xff] }
 0x642   :  { %2606 = vmatpush1.bf16.msra.mxu1 %v5995_v0  ;;  %v6006_v0 = vld [vmem:[#allocation38_spill] sm:$0xff] }
 0x643   :  { %2607 = vmatprep.subr.bf16.mxu1 %v5996_v40  ;;  %v6007_v40 = vld [vmem:[#allocation40_spill] sm:$0xff] }
 0x646   :  { %2608 = vmatpush1.bf16.msra.mxu1 %v5997_v42  ;;  %v6008_v42 = vld [vmem:[#allocation42_spill] sm:$0xff] }
 0x647   :  { %2609 = vmatprep.subr.bf16.mxu1 %v5998_v46  ;;  %v6009_v46 = vld [vmem:[#allocation44_spill] sm:$0xff] }
 0x64a   :  { %2610 = vmatpush1.bf16.msra.mxu1 %v5999_v44  ;;  %v6010_v44 = vld [vmem:[#allocation46_spill] sm:$0xff] }
 0x64b   :  { %2611 = vmatprep.subr.bf16.mxu1 %v6000_v29  ;;  %v6011_v29 = vld [vmem:[#allocation48_spill] sm:$0xff] }
 0x64e   :  { %2612 = vmatpush1.bf16.msra.mxu1 %v6001_v4  ;;  %v6012_v4 = vld [vmem:[#allocation50_spill] sm:$0xff] }
 0x64f   :  { %2613 = vmatprep.subr.bf16.mxu1 %v6002_v39  ;;  %v6013_v39 = vld [vmem:[#allocation52_spill] sm:$0xff] }
 0x652   :  { %2614 = vmatpush1.bf16.msra.mxu1 %v6003_v38  ;;  %v6014_v38 = vld [vmem:[#allocation54_spill] sm:$0xff] }
 0x653   :  { %2615 = vmatprep.subr.bf16.mxu1 %v6004_v12  ;;  %v6015_v12 = vld [vmem:[#allocation56_spill] sm:$0xff] }
 0x656   :  { %2616 = vmatpush1.bf16.msra.mxu1 %v6005_v2  ;;  %v6016_v2 = vld [vmem:[#allocation58_spill] sm:$0xff] }
 0x657   :  { %2617 = vmatprep.subr.bf16.mxu1 %v6006_v0  ;;  %v6017_v0 = vld [vmem:[#allocation60_spill] sm:$0xff] }
 0x65a   :  { %2618 = vmatpush1.bf16.msra.mxu1 %v6007_v40  ;;  %v6018_v40 = vld [vmem:[#allocation62_spill] sm:$0xff] }
 0x65b   :  { %2619 = vmatprep.subr.bf16.mxu1 %v6008_v42  ;;  %v6019_v42 = vld [vmem:[#allocation64_spill] sm:$0xff] }
 0x65e   :  { %2620 = vmatpush1.bf16.msra.mxu1 %v6009_v46  ;;  %v6020_v46 = vld [vmem:[#allocation66_spill] sm:$0xff] }
 0x65f   :  { %2621 = vmatprep.subr.bf16.mxu1 %v6010_v44  ;;  %v6021_v44 = vld [vmem:[#allocation68_spill] sm:$0xff] }
 0x662   :  { %2622 = vmatpush1.bf16.msra.mxu1 %v6011_v29  ;;  %v6022_v29 = vld [vmem:[#allocation70_spill] sm:$0xff] }
 0x663   :  { %2623 = vmatprep.subr.bf16.mxu1 %v6012_v4  ;;  %v6023_v4 = vld [vmem:[#allocation72_spill] sm:$0xff] }
 0x666   :  { %2624 = vmatpush1.bf16.msra.mxu1 %v6013_v39  ;;  %v6024_v39 = vld [vmem:[#allocation17_spill] sm:$0xff] }
 0x667   :  { %2625 = vmatprep.subr.bf16.mxu1 %v6014_v38 }
 0x66a   :  { %2626 = vmatpush1.bf16.msra.mxu1 %v6015_v12 }
 0x66b   :  { %2627 = vmatprep.subr.bf16.mxu1 %v6016_v2 }
 0x66e   :  { %2628 = vmatpush1.bf16.msra.mxu1 %v6017_v0 }
 0x66f   :  { %2629 = vmatprep.subr.bf16.mxu1 %v6018_v40 }
 0x672   :  { %2630 = vmatpush1.bf16.msra.mxu1 %v6019_v42 }
 0x673   :  { %2631 = vmatprep.subr.bf16.mxu1 %v6020_v46 }
 0x676   :  { %2632 = vmatpush1.bf16.msra.mxu1 %v6021_v44 }
 0x677   :  { %2633 = vmatprep.subr.bf16.mxu1 %v6022_v29 }
 0x67a   :  { %2634 = vmatpush1.bf16.msra.mxu1 %v6023_v4 }
 0x67b   :  { %2792 = vmatprep.subr.bf16.mxu1 %v6024_v39 }
 0x6d0   :  { %v2366_v38 = vpop.f32.mrb[28].mxu1  ;;  %v2407_v12 = vpop.f32.mrb[32].mxu0 }
 0x6d1   :  { %v2368_v50 = vpop.f32.mrb[29].mxu1  ;;  %v2409_v2 = vpop.f32.mrb[33].mxu0 }
 0x6d2   :  { %v2465_v31 = vcombine.low %v2366_v38, %v2368_v50  ;;  %v2466_v0 = vcombine.low %v2407_v12, %v2409_v2  ;;  %v2370_v24 = vpop.f32.mrb[30].mxu1  ;;  %v2411_v40 = vpop.f32.mrb[34].mxu0  ;;  %v2457_v12 = vld [vmem:[#allocation2 + $0x4] ss:$8 sm:$0x30] }
 0x6d3   :  { %v2371_v26 = vpop.f32.mrb[31].mxu1  ;;  %v2412_v42 = vpop.f32.mrb[35].mxu0  ;;  %v2456_v2 = vld [vmem:[#allocation2 + $0x4] ss:$8 sm:$0xf] }
 0x6d4   :  { %v2474_v46 = vrot.slane %v2465_v31, %v4549_v55  ;;  %v2481_v44 = vrot.slane %v2466_v0, %v4549_v55  ;;  %v2458_v0 = vor.u32 %v2457_v12, %v2456_v2 }
 0x6d6   :  { %v2489_v35 = vcombine.low %v2474_v46, %v2481_v44 }
 0x6d8   :  { %v2496_v26 = vrot.slane %v2489_v35, %v4549_v55 }
 0x710   :  { %v2448_v29 = vpop.f32.mrb[32].mxu1 }
 0x711   :  { %v2513_v4 = vadd.f32 %v2448_v29, %v5877_v52  ;;  %v2450_v43 = vpop.f32.mrb[33].mxu1 }
 0x712   :  { %v2467_v39 = vcombine.low %v2448_v29, %v2450_v43  ;;  %v2514_v37 = vadd.f32 %v2450_v43, %v4546_v59  ;;  %v2452_v13 = vpop.f32.mrb[34].mxu1 }
 0x713   :  { %v2453_v21 = vpop.f32.mrb[35].mxu1 }
 0x714   :  { %v2488_v50 = vrot.slane %v2467_v39, %v4549_v55  ;;  %v2517_v24 = vcombine.low %v2513_v4, %v2514_v37  ;;  %v2535_v4 = vrot.slane %v2458_v0, 4 }
 0x716   :  { %v2503_v31 = vrot.slane %v2488_v50, %v4549_v55  ;;  %v2524_v13 = vrot.slane %v2517_v24, %v4549_v55 }
 0x718   :  { %v2504_v40 = vcombine.low %v2496_v26, %v2503_v31  ;;  %v2531_v21 = vrot.slane %v2524_v13, %v4549_v55  ;;  %v6040_v13 = vld [vmem:[#allocation61_spill] sm:$0xff] }
 0x71a   :  { %v2506_v42 = vadd.f32 %v2504_v40, %v2458_v0 }
 0x71c   :  { %v3453_v46 = vmul.f32 -1.442695, %v2506_v42  ;;  %v5256_v42 = vld [vmem:[#allocation8 + $0x34] ss:$24 sps:$4 sm:$0xff]  }
 0x71e   :  { %3778 = vpow2.f32 %v3453_v46  ;;  %v5261_v46 = vld [vmem:[#allocation8 + $0x30] ss:$24 sps:$4 sm:$0xff]  }
 0x728   :  { %v3779_v44 = vpop.eup %3778 }
 0x729   :  { %v2510_v29 = vadd.f32 1.0, %v3779_v44  ;;  %v5264_v44 = vld [vmem:[#allocation8 + $0x64] ss:$24 sps:$4 sm:$0xff]  }
 0x72b   :  { %3780 = vrcp.f32 %v2510_v29  ;;  %v5269_v29 = vld [vmem:[#allocation8 + $0x60] ss:$24 sps:$4 sm:$0xff]  }
 0x735   :  { %v3781_v43 = vpop.eup %3780 }
 0x736   :  { %v2533_v37 = vmul.f32 %v3781_v43, %v2531_v21  ;;  %v2540_v35 = vrot.slane %v3781_v43, 2  ;;  %v6041_v21 = vld [vmem:[#allocation23_spill] sm:$0xff]  ;;  %v6042_v43 = vld [vmem:[#allocation24_spill] sm:$0xff] }
 0x738   :  { %v2537_v38 = vadd.f32 %v2535_v4, %v2533_v37  ;;  %v2542_v39 = vsub.f32 1.0, %v2540_v35  ;;  %v2544_v26 = vmul.f32 %v2540_v35, %v5118_v9  ;;  %v5253_v9 = vld [vmem:[#allocation8] ss:$24 sps:$4 sm:$0xff]   ;;  %v6044_v4 = vld [vmem:[#allocation25_spill] sm:$0xff] }
 0x739   :  { %v6043_v37 = vld [vmem:[#allocation63_spill] sm:$0xff]  ;;  %v6046_v35 = vld [vmem:[#allocation29_spill] sm:$0xff] }
 0x73a   :  { %3782 = vtanh.f32 %v2537_v38  ;;  %v6045_v38 = vld [vmem:[#allocation27_spill] sm:$0xff] }
 0x744   :  { %v3783_v50 = vpop.eup %3782 }
 0x745   :  { %v2543_v12 = vmul.f32 %v3783_v50, %v2542_v39  ;;  %v6047_v39 = vld [vmem:[#allocation31_spill] sm:$0xff]  ;;  %v6048_v50 = vld [vmem:[#allocation33_spill] sm:$0xff] }
 0x747   :  { %v5238_v31 = vadd.f32 %v2544_v26, %v2543_v12  ;;  %v6049_v12 = vld [vmem:[#allocation65_spill] sm:$0xff]  ;;  %v6050_v26 = vld [vmem:[#allocation67_spill] sm:$0xff] }
 0x749   :  { %2547 = vst.msk [vmem:[#allocation9 + $0x4] ss:$8 sm:$0x3] %vm4562_vm0, %v5238_v31  ;;  %v2557_v24 = vrot.slane %v5238_v31, %v5820_v25  ;;  %v2553_v2 = vrot.slane %v5238_v31, %v5819_v36 }
 0x74b   :  { %v2561_v0 = vpack.c.bf16 %v2557_v24, %v2557_v24  ;;  %v5247_v40 = vpack.c.bf16 %v2553_v2, %v2553_v2  ;;  %v6051_v24 = vld [vmem:[#allocation69_spill] sm:$0xff]  ;;  %v6052_v2 = vld [vmem:[#allocation71_spill] sm:$0xff] }
 0x74d   :  { %2594 = vmatprep.mubr.bf16.mxu0 %v2561_v0  ;;  %2635 = vmatprep.mubr.bf16.mxu1 %v2561_v0 }
 0x74e   :  { %2595 = vmatmul.mubr.bf16.vlgmr.msra.gmra.mrb[36].mxu0 %v5247_v40  ;;  %2636 = vmatmul.mubr.bf16.vlgmr.msra.gmra.mrb[36].mxu1 %v5247_v40 }
 0x74f   :  { %2645 = vmatpush1.bf16.msra.mxu0 %v4891_v58  ;;  %2676 = vmatprep.mubr.bf16.mxu0 %v2561_v0  ;;  %v6053_v0 = vld [vmem:[#allocation16_spill] sm:$0xff] }
 0x750   :  { %2646 = vmatprep.subr.bf16.mxu0 %v4894_v32  ;;  %2793 = vmatpush1.bf16.msra.mxu1 %v5253_v9 }
 0x751   :  { %2794 = vmatprep.subr.bf16.mxu1 %v5256_v42 }
 0x753   :  { %2647 = vmatpush1.bf16.msra.mxu0 %v4899_v57 }
 0x754   :  { %2648 = vmatprep.subr.bf16.mxu0 %v4902_v60  ;;  %2795 = vmatpush1.bf16.msra.mxu1 %v5261_v46 }
 0x755   :  { %2796 = vmatprep.subr.bf16.mxu1 %v5264_v44 }
 0x757   :  { %2649 = vmatpush1.bf16.msra.mxu0 %v4907_v23 }
 0x758   :  { %2650 = vmatprep.subr.bf16.mxu0 %v4910_v54  ;;  %2797 = vmatpush1.bf16.msra.mxu1 %v5269_v29 }
 0x759   :  { %2798 = vmatprep.subr.bf16.mxu1 %v4722_v51  ;;  %v6025_v51 = vld [vmem:[#allocation19_spill] sm:$0xff] }
 0x75b   :  { %2651 = vmatpush1.bf16.msra.mxu0 %v4915_v56 }
 0x75c   :  { %2652 = vmatprep.subr.bf16.mxu0 %v4918_v62  ;;  %2799 = vmatpush1.bf16.msra.mxu1 %v4727_v5  ;;  %v6026_v5 = vld [vmem:[#allocation20_spill] sm:$0xff] }
 0x75d   :  { %2800 = vmatprep.subr.bf16.mxu1 %v4730_v17  ;;  %v6027_v17 = vld [vmem:[#allocation47_spill] sm:$0xff] }
 0x75f   :  { %2653 = vmatpush1.bf16.msra.mxu0 %v4923_v27 }
 0x760   :  { %2654 = vmatprep.subr.bf16.mxu0 %v4926_v34  ;;  %2801 = vmatpush1.bf16.msra.mxu1 %v4735_v53  ;;  %v6028_v53 = vld [vmem:[#allocation49_spill] sm:$0xff] }
 0x761   :  { %2802 = vmatprep.subr.bf16.mxu1 %v4738_v47  ;;  %v6029_v47 = vld [vmem:[#allocation21_spill] sm:$0xff] }
 0x763   :  { %2655 = vmatpush1.bf16.msra.mxu0 %v4931_v48 }
 0x764   :  { %2656 = vmatprep.subr.bf16.mxu0 %v4934_v6  ;;  %2803 = vmatpush1.bf16.msra.mxu1 %v4743_v8  ;;  %v6030_v8 = vld [vmem:[#allocation22_spill] sm:$0xff] }
 0x765   :  { %2804 = vmatprep.subr.bf16.mxu1 %v4746_v15  ;;  %v6031_v15 = vld [vmem:[#allocation51_spill] sm:$0xff] }
 0x767   :  { %2657 = vmatpush1.bf16.msra.mxu0 %v4939_v30 }
 0x768   :  { %2658 = vmatprep.subr.bf16.mxu0 %v4942_v14  ;;  %2805 = vmatpush1.bf16.msra.mxu1 %v4751_v7  ;;  %v6032_v7 = vld [vmem:[#allocation53_spill] sm:$0xff] }
 0x769   :  { %2806 = vmatprep.subr.bf16.mxu1 %v4754_v3  ;;  %v6033_v3 = vld [vmem:[#allocation13_spill] sm:$0xff] }
 0x76b   :  { %2659 = vmatpush1.bf16.msra.mxu0 %v4947_v28 }
 0x76c   :  { %2660 = vmatprep.subr.bf16.mxu0 %v4950_v10  ;;  %2807 = vmatpush1.bf16.msra.mxu1 %v4759_v33  ;;  %v6034_v33 = vld [vmem:[#allocation18_spill] sm:$0xff] }
 0x76d   :  { %2808 = vmatprep.subr.bf16.mxu1 %v4762_v1  ;;  %v6035_v1 = vld [vmem:[#allocation55_spill] sm:$0xff] }
 0x76f   :  { %2661 = vmatpush1.bf16.msra.mxu0 %v5966_v45 }
 0x770   :  { %2662 = vmatprep.subr.bf16.mxu0 %v5967_v22  ;;  %2809 = vmatpush1.bf16.msra.mxu1 %v4767_v41  ;;  %v6036_v41 = vld [vmem:[#allocation57_spill] sm:$0xff] }
 0x771   :  { %2810 = vmatprep.subr.bf16.mxu1 %v4770_v11  ;;  %v6037_v11 = vld [vmem:[#allocation14_spill] sm:$0xff] }
 0x773   :  { %2663 = vmatpush1.bf16.msra.mxu0 %v5968_v63 }
 0x774   :  { %2664 = vmatprep.subr.bf16.mxu0 %v5969_v61  ;;  %2811 = vmatpush1.bf16.msra.mxu1 %v4775_v16  ;;  %v6038_v16 = vld [vmem:[#allocation15_spill] sm:$0xff] }
 0x775   :  { %2812 = vmatprep.subr.bf16.mxu1 %v4778_v19  ;;  %v6039_v19 = vld [vmem:[#allocation59_spill] sm:$0xff] }
 0x777   :  { %2665 = vmatpush1.bf16.msra.mxu0 %v5970_v18 }
 0x778   :  { %2666 = vmatprep.subr.bf16.mxu0 %v5971_v49  ;;  %2813 = vmatpush1.bf16.msra.mxu1 %v6025_v51  ;;  %v6054_v51 = vld [vmem:[#allocation26_spill] sm:$0xff] }
 0x779   :  { %2814 = vmatprep.subr.bf16.mxu1 %v6026_v5  ;;  %v6055_v5 = vld [vmem:[#allocation28_spill] sm:$0xff] }
 0x77b   :  { %2667 = vmatpush1.bf16.msra.mxu0 %v6027_v17 }
 0x77c   :  { %2668 = vmatprep.subr.bf16.mxu0 %v6028_v53  ;;  %2815 = vmatpush1.bf16.msra.mxu1 %v6029_v47  ;;  %v6056_v47 = vld [vmem:[#allocation30_spill] sm:$0xff] }
 0x77d   :  { %2816 = vmatprep.subr.bf16.mxu1 %v6030_v8  ;;  %v6058_v8 = vld [vmem:[#allocation34_spill] sm:$0xff] }
 0x77f   :  { %2669 = vmatpush1.bf16.msra.mxu0 %v6031_v15 }
 0x780   :  { %2670 = vmatprep.subr.bf16.mxu0 %v6032_v7  ;;  %2817 = vmatpush1.bf16.msra.mxu1 %v6033_v3  ;;  %v6059_v3 = vld [vmem:[#allocation36_spill] sm:$0xff] }
 0x781   :  { %2818 = vmatprep.subr.bf16.mxu1 %v6034_v33  ;;  %v6060_v33 = vld [vmem:[#allocation38_spill] sm:$0xff] }
 0x783   :  { %2671 = vmatpush1.bf16.msra.mxu0 %v6035_v1 }
 0x784   :  { %2672 = vmatprep.subr.bf16.mxu0 %v6036_v41  ;;  %2819 = vmatpush1.bf16.msra.mxu1 %v6037_v11  ;;  %v6061_v11 = vld [vmem:[#allocation40_spill] sm:$0xff] }
 0x785   :  { %2820 = vmatprep.subr.bf16.mxu1 %v6038_v16  ;;  %v6062_v16 = vld [vmem:[#allocation42_spill] sm:$0xff] }
 0x787   :  { %2673 = vmatpush1.bf16.msra.mxu0 %v6039_v19 }
 0x788   :  { %2674 = vmatprep.subr.bf16.mxu0 %v6040_v13  ;;  %2821 = vmatpush1.bf16.msra.mxu1 %v6041_v21  ;;  %v6063_v21 = vld [vmem:[#allocation44_spill] sm:$0xff] }
 0x789   :  { %2822 = vmatprep.subr.bf16.mxu1 %v6042_v43  ;;  %v6064_v43 = vld [vmem:[#allocation46_spill] sm:$0xff] }
 0x78b   :  { %2675 = vmatpush1.bf16.msra.mxu0 %v6043_v37 }
 0x78c   :  { %2833 = vmatprep.subr.bf16.mxu0 %v6044_v4  ;;  %2823 = vmatpush1.bf16.msra.mxu1 %v6045_v38  ;;  %v6065_v4 = vld [vmem:[#allocation48_spill] sm:$0xff]  ;;  %v6066_v38 = vld [vmem:[#allocation50_spill] sm:$0xff] }
 0x78d   :  { %2874 = vmatprep.subr.bf16.mxu1 %v6046_v35  ;;  %v6067_v35 = vld [vmem:[#allocation52_spill] sm:$0xff] }
 0x78e   :  { %2677 = vmatmul.mubr.bf16.vlgmr.msra.gmra.mrb[40].mxu0 %v5247_v40  ;;  %v6057_v40 = vld [vmem:[#allocation32_spill] sm:$0xff] }
 0x78f   :  { %2834 = vmatpush1.bf16.msra.mxu0 %v6047_v39  ;;  %v6068_v39 = vld [vmem:[#allocation54_spill] sm:$0xff] }
 0x790   :  { %2835 = vmatprep.subr.bf16.mxu0 %v6048_v50  ;;  %v6069_v50 = vld [vmem:[#allocation56_spill] sm:$0xff] }
 0x793   :  { %2836 = vmatpush1.bf16.msra.mxu0 %v6049_v12 }
 0x794   :  { %2837 = vmatprep.subr.bf16.mxu0 %v6050_v26 }
 0x797   :  { %2838 = vmatpush1.bf16.msra.mxu0 %v6051_v24 }
 0x798   :  { %2839 = vmatprep.subr.bf16.mxu0 %v6052_v2 }
 0x79b   :  { %2840 = vmatpush1.bf16.msra.mxu0 %v6053_v0 }
 0x79c   :  { %2841 = vmatprep.subr.bf16.mxu0 %v6054_v51 }
 0x79f   :  { %2842 = vmatpush1.bf16.msra.mxu0 %v6055_v5 }
 0x7a0   :  { %2843 = vmatprep.subr.bf16.mxu0 %v6056_v47 }
 0x7a3   :  { %2844 = vmatpush1.bf16.msra.mxu0 %v6057_v40 }
 0x7a4   :  { %2845 = vmatprep.subr.bf16.mxu0 %v6058_v8 }
 0x7a7   :  { %2846 = vmatpush1.bf16.msra.mxu0 %v6059_v3  ;;  %v6070_v3 = vld [vmem:[#allocation58_spill] sm:$0xff] }
 0x7a8   :  { %2847 = vmatprep.subr.bf16.mxu0 %v6060_v33  ;;  %v6071_v33 = vld [vmem:[#allocation60_spill] sm:$0xff] }
 0x7ab   :  { %2848 = vmatpush1.bf16.msra.mxu0 %v6061_v11  ;;  %v6072_v11 = vld [vmem:[#allocation62_spill] sm:$0xff] }
 0x7ac   :  { %2849 = vmatprep.subr.bf16.mxu0 %v6062_v16  ;;  %v6073_v16 = vld [vmem:[#allocation64_spill] sm:$0xff] }
 0x7af   :  { %2850 = vmatpush1.bf16.msra.mxu0 %v6063_v21  ;;  %v6074_v21 = vld [vmem:[#allocation66_spill] sm:$0xff] }
 0x7b0   :  { %2851 = vmatprep.subr.bf16.mxu0 %v6064_v43  ;;  %v6075_v43 = vld [vmem:[#allocation68_spill] sm:$0xff] }
 0x7b3   :  { %2852 = vmatpush1.bf16.msra.mxu0 %v6065_v4  ;;  %v6076_v4 = vld [vmem:[#allocation70_spill] sm:$0xff] }
 0x7b4   :  { %2853 = vmatprep.subr.bf16.mxu0 %v6066_v38  ;;  %v6077_v38 = vld [vmem:[#allocation72_spill] sm:$0xff] }
 0x7b7   :  { %2854 = vmatpush1.bf16.msra.mxu0 %v6067_v35  ;;  %v3903_v35 = vld [vmem:[#allocation8 + $0x4] ss:$24 sps:$4 sm:$0xff]  }
 0x7b8   :  { %2855 = vmatprep.subr.bf16.mxu0 %v6068_v39 }
 0x7bb   :  { %2856 = vmatpush1.bf16.msra.mxu0 %v6069_v50 }
 0x7bc   :  { %2857 = vmatprep.subr.bf16.mxu0 %v6070_v3 }
 0x7bf   :  { %2858 = vmatpush1.bf16.msra.mxu0 %v6071_v33 }
 0x7c0   :  { %2859 = vmatprep.subr.bf16.mxu0 %v6072_v11 }
 0x7c3   :  { %2860 = vmatpush1.bf16.msra.mxu0 %v6073_v16 }
 0x7c4   :  { %2861 = vmatprep.subr.bf16.mxu0 %v6074_v21 }
 0x7c7   :  { %2862 = vmatpush1.bf16.msra.mxu0 %v6075_v43 }
 0x7c8   :  { %2863 = vmatprep.subr.bf16.mxu0 %v6076_v4 }
 0x7cb   :  { %2864 = vmatpush1.bf16.msra.mxu0 %v6077_v38 }
 0x7cc   :  { %3022 = vmatprep.subr.bf16.mxu0 %v3903_v35 }
 0x821   :  { %v2596_v39 = vpop.f32.mrb[36].mxu0  ;;  %v2637_v50 = vpop.f32.mrb[36].mxu1 }
 0x822   :  { %v2598_v8 = vpop.f32.mrb[37].mxu0  ;;  %v2639_v3 = vpop.f32.mrb[37].mxu1 }
 0x823   :  { %v2695_v40 = vcombine.low %v2596_v39, %v2598_v8  ;;  %v2696_v33 = vcombine.low %v2637_v50, %v2639_v3  ;;  %v2600_v47 = vpop.f32.mrb[38].mxu0  ;;  %v2641_v11 = vpop.f32.mrb[38].mxu1  ;;  %v2687_v3 = vld [vmem:[#allocation2 + $0x5] ss:$8 sm:$0x30] }
 0x824   :  { %v2601_v5 = vpop.f32.mrb[39].mxu0  ;;  %v2642_v16 = vpop.f32.mrb[39].mxu1  ;;  %v2686_v11 = vld [vmem:[#allocation2 + $0x5] ss:$8 sm:$0xf] }
 0x825   :  { %v2704_v21 = vrot.slane %v2695_v40, %v4549_v55  ;;  %v2711_v43 = vrot.slane %v2696_v33, %v4549_v55  ;;  %v2688_v33 = vor.u32 %v2687_v3, %v2686_v11 }
 0x827   :  { %v2719_v51 = vcombine.low %v2704_v21, %v2711_v43 }
 0x829   :  { %v2726_v5 = vrot.slane %v2719_v51, %v4549_v55 }
 0x861   :  { %v2678_v4 = vpop.f32.mrb[40].mxu0 }
 0x862   :  { %v2743_v38 = vadd.f32 %v2678_v4, %v5877_v52  ;;  %v2680_v0 = vpop.f32.mrb[41].mxu0 }
 0x863   :  { %v2697_v35 = vcombine.low %v2678_v4, %v2680_v0  ;;  %v2744_v2 = vadd.f32 %v2680_v0, %v4546_v59  ;;  %v2682_v24 = vpop.f32.mrb[42].mxu0 }
 0x864   :  { %v2683_v26 = vpop.f32.mrb[43].mxu0 }
 0x865   :  { %v2718_v8 = vrot.slane %v2697_v35, %v4549_v55  ;;  %v2747_v47 = vcombine.low %v2743_v38, %v2744_v2  ;;  %v2765_v38 = vrot.slane %v2688_v33, 4 }
 0x867   :  { %v2733_v40 = vrot.slane %v2718_v8, %v4549_v55  ;;  %v2754_v24 = vrot.slane %v2747_v47, %v4549_v55 }
 0x869   :  { %v2734_v16 = vcombine.low %v2726_v5, %v2733_v40  ;;  %v2761_v26 = vrot.slane %v2754_v24, %v4549_v55  ;;  %v6090_v24 = vld [vmem:[#allocation42_spill] sm:$0xff] }
 0x86b   :  { %v2736_v21 = vadd.f32 %v2734_v16, %v2688_v33 }
 0x86d   :  { %v3454_v43 = vmul.f32 -1.442695, %v2736_v21  ;;  %v6085_v21 = vld [vmem:[#allocation32_spill] sm:$0xff] }
 0x86f   :  { %3784 = vpow2.f32 %v3454_v43  ;;  %v6086_v43 = vld [vmem:[#allocation34_spill] sm:$0xff] }
 0x879   :  { %v3785_v39 = vpop.eup %3784 }
 0x87a   :  { %v2740_v4 = vadd.f32 1.0, %v3785_v39  ;;  %v6087_v39 = vld [vmem:[#allocation36_spill] sm:$0xff] }
 0x87c   :  { %3786 = vrcp.f32 %v2740_v4  ;;  %v6089_v4 = vld [vmem:[#allocation40_spill] sm:$0xff] }
 0x886   :  { %v3787_v0 = vpop.eup %3786 }
 0x887   :  { %v2763_v2 = vmul.f32 %v3787_v0, %v2761_v26  ;;  %v2770_v51 = vrot.slane %v3787_v0, 2  ;;  %v6091_v26 = vld [vmem:[#allocation44_spill] sm:$0xff]  ;;  %v6092_v0 = vld [vmem:[#allocation46_spill] sm:$0xff] }
 0x889   :  { %v2767_v50 = vadd.f32 %v2765_v38, %v2763_v2  ;;  %v2772_v35 = vsub.f32 1.0, %v2770_v51  ;;  %v2774_v5 = vmul.f32 %v2770_v51, %v5238_v31  ;;  %v3926_v31 = vld [vmem:[#allocation8 + $0x2a4] ss:$24 sps:$4 sm:$0xff]   ;;  %v6093_v2 = vld [vmem:[#allocation48_spill] sm:$0xff] }
 0x88a   :  { %v6094_v38 = vld [vmem:[#allocation50_spill] sm:$0xff] }
 0x88b   :  { %3788 = vtanh.f32 %v2767_v50  ;;  %v6095_v50 = vld [vmem:[#allocation52_spill] sm:$0xff]  ;;  %v6096_v51 = vld [vmem:[#allocation54_spill] sm:$0xff] }
 0x895   :  { %v3789_v8 = vpop.eup %3788 }
 0x896   :  { %v2773_v3 = vmul.f32 %v3789_v8, %v2772_v35  ;;  %v6097_v35 = vld [vmem:[#allocation56_spill] sm:$0xff]  ;;  %v6098_v8 = vld [vmem:[#allocation58_spill] sm:$0xff] }
 0x898   :  { %v5367_v40 = vadd.f32 %v2774_v5, %v2773_v3  ;;  %v6099_v3 = vld [vmem:[#allocation60_spill] sm:$0xff]  ;;  %v6100_v5 = vld [vmem:[#allocation62_spill] sm:$0xff] }
 0x89a   :  { %2777 = vst.msk [vmem:[#allocation9 + $0x5] ss:$8 sm:$0x3] %vm4562_vm0, %v5367_v40  ;;  %v2787_v47 = vrot.slane %v5367_v40, %v5820_v25  ;;  %v2783_v11 = vrot.slane %v5367_v40, %v5819_v36 }
 0x89c   :  { %v2791_v33 = vpack.c.bf16 %v2787_v47, %v2787_v47  ;;  %v5376_v16 = vpack.c.bf16 %v2783_v11, %v2783_v11  ;;  %v6101_v47 = vld [vmem:[#allocation64_spill] sm:$0xff]  ;;  %v6102_v11 = vld [vmem:[#allocation66_spill] sm:$0xff] }
 0x89e   :  { %2824 = vmatprep.mubr.bf16.mxu1 %v2791_v33  ;;  %2865 = vmatprep.mubr.bf16.mxu0 %v2791_v33 }
 0x89f   :  { %2825 = vmatmul.mubr.bf16.vlgmr.msra.gmra.mrb[40].mxu1 %v5376_v16  ;;  %2866 = vmatmul.mubr.bf16.vlgmr.msra.gmra.mrb[44].mxu0 %v5376_v16 }
 0x8a0   :  { %2875 = vmatpush1.bf16.msra.mxu1 %v4891_v58  ;;  %2906 = vmatprep.mubr.bf16.mxu1 %v2791_v33  ;;  %v3904_v58 = vld [vmem:[#allocation8 + $0x94] ss:$24 sps:$4 sm:$0xff]  }
 0x8a1   :  { %2876 = vmatprep.subr.bf16.mxu1 %v4894_v32  ;;  %3023 = vmatpush1.bf16.msra.mxu0 %v5253_v9  ;;  %v3905_v32 = vld [vmem:[#allocation8 + $0x90] ss:$24 sps:$4 sm:$0xff]   ;;  %v3927_v9 = vld [vmem:[#allocation8 + $0x2a0] ss:$24 sps:$4 sm:$0xff]  }
 0x8a2   :  { %3024 = vmatprep.subr.bf16.mxu0 %v5256_v42  ;;  %v3928_v42 = vld [vmem:[#allocation8 + $0x2d4] ss:$24 sps:$4 sm:$0xff]  }
 0x8a3   :  { %v6103_v33 = vld [vmem:[#allocation68_spill] sm:$0xff] }
 0x8a4   :  { %2877 = vmatpush1.bf16.msra.mxu1 %v4899_v57  ;;  %v3906_v57 = vld [vmem:[#allocation8 + $0xc4] ss:$24 sps:$4 sm:$0xff]  }
 0x8a5   :  { %2878 = vmatprep.subr.bf16.mxu1 %v4902_v60  ;;  %3025 = vmatpush1.bf16.msra.mxu0 %v5261_v46  ;;  %v3907_v60 = vld [vmem:[#allocation8 + $0xc0] ss:$24 sps:$4 sm:$0xff]   ;;  %v3929_v46 = vld [vmem:[#allocation8 + $0xc] ss:$24 sps:$4 sm:$0xff]  }
 0x8a6   :  { %3026 = vmatprep.subr.bf16.mxu0 %v5264_v44  ;;  %v3930_v44 = vld [vmem:[#allocation8 + $0x2d0] ss:$24 sps:$4 sm:$0xff]  }
 0x8a8   :  { %2879 = vmatpush1.bf16.msra.mxu1 %v4907_v23  ;;  %v3908_v23 = vld [vmem:[#allocation8 + $0xf4] ss:$24 sps:$4 sm:$0xff]  }
 0x8a9   :  { %2880 = vmatprep.subr.bf16.mxu1 %v4910_v54  ;;  %3027 = vmatpush1.bf16.msra.mxu0 %v5269_v29  ;;  %v3909_v54 = vld [vmem:[#allocation8 + $0xf0] ss:$24 sps:$4 sm:$0xff]   ;;  %v3931_v29 = vld [vmem:[#allocation8 + $0x14] ss:$24 sps:$4 sm:$0xff]  }
 0x8aa   :  { %3028 = vmatprep.subr.bf16.mxu0 %v3904_v58  ;;  %v6105_v58 = vld [vmem:[#allocation72_spill] sm:$0xff] }
 0x8ac   :  { %2881 = vmatpush1.bf16.msra.mxu1 %v4915_v56  ;;  %v3910_v56 = vld [vmem:[#allocation8 + $0x124] ss:$24 sps:$4 sm:$0xff]  }
 0x8ad   :  { %2882 = vmatprep.subr.bf16.mxu1 %v4918_v62  ;;  %3029 = vmatpush1.bf16.msra.mxu0 %v3905_v32  ;;  %v3911_v62 = vld [vmem:[#allocation8 + $0x120] ss:$24 sps:$4 sm:$0xff]  }
 0x8ae   :  { %3030 = vmatprep.subr.bf16.mxu0 %v3906_v57 }
 0x8b0   :  { %2883 = vmatpush1.bf16.msra.mxu1 %v4923_v27  ;;  %v3912_v27 = vld [vmem:[#allocation8 + $0x154] ss:$24 sps:$4 sm:$0xff]  }
 0x8b1   :  { %2884 = vmatprep.subr.bf16.mxu1 %v4926_v34  ;;  %3031 = vmatpush1.bf16.msra.mxu0 %v3907_v60  ;;  %v3913_v34 = vld [vmem:[#allocation8 + $0x150] ss:$24 sps:$4 sm:$0xff]  }
 0x8b2   :  { %3032 = vmatprep.subr.bf16.mxu0 %v3908_v23 }
 0x8b4   :  { %2885 = vmatpush1.bf16.msra.mxu1 %v4931_v48  ;;  %v3914_v48 = vld [vmem:[#allocation8 + $0x184] ss:$24 sps:$4 sm:$0xff]  }
 0x8b5   :  { %2886 = vmatprep.subr.bf16.mxu1 %v4934_v6  ;;  %3033 = vmatpush1.bf16.msra.mxu0 %v3909_v54  ;;  %v3915_v6 = vld [vmem:[#allocation8 + $0x180] ss:$24 sps:$4 sm:$0xff]  }
 0x8b6   :  { %3034 = vmatprep.subr.bf16.mxu0 %v3910_v56 }
 0x8b8   :  { %2887 = vmatpush1.bf16.msra.mxu1 %v4939_v30  ;;  %v3916_v30 = vld [vmem:[#allocation8 + $0x1b4] ss:$24 sps:$4 sm:$0xff]  }
 0x8b9   :  { %2888 = vmatprep.subr.bf16.mxu1 %v4942_v14  ;;  %3035 = vmatpush1.bf16.msra.mxu0 %v3911_v62  ;;  %v3917_v14 = vld [vmem:[#allocation8 + $0x1b0] ss:$24 sps:$4 sm:$0xff]  }
 0x8ba   :  { %3036 = vmatprep.subr.bf16.mxu0 %v3912_v27 }
 0x8bc   :  { %2889 = vmatpush1.bf16.msra.mxu1 %v4947_v28  ;;  %v3918_v28 = vld [vmem:[#allocation8 + $0x1e4] ss:$24 sps:$4 sm:$0xff]  }
 0x8bd   :  { %2890 = vmatprep.subr.bf16.mxu1 %v4950_v10  ;;  %3037 = vmatpush1.bf16.msra.mxu0 %v3913_v34  ;;  %v3919_v10 = vld [vmem:[#allocation8 + $0x1e0] ss:$24 sps:$4 sm:$0xff]  }
 0x8be   :  { %3038 = vmatprep.subr.bf16.mxu0 %v3914_v48 }
 0x8c0   :  { %2891 = vmatpush1.bf16.msra.mxu1 %v5966_v45  ;;  %v3920_v45 = vld [vmem:[#allocation8 + $0x214] ss:$24 sps:$4 sm:$0xff]  }
 0x8c1   :  { %2892 = vmatprep.subr.bf16.mxu1 %v5967_v22  ;;  %3039 = vmatpush1.bf16.msra.mxu0 %v3915_v6  ;;  %v3921_v22 = vld [vmem:[#allocation8 + $0x210] ss:$24 sps:$4 sm:$0xff]  }
 0x8c2   :  { %3040 = vmatprep.subr.bf16.mxu0 %v3916_v30 }
 0x8c4   :  { %2893 = vmatpush1.bf16.msra.mxu1 %v5968_v63  ;;  %v3922_v63 = vld [vmem:[#allocation8 + $0x244] ss:$24 sps:$4 sm:$0xff]  }
 0x8c5   :  { %2894 = vmatprep.subr.bf16.mxu1 %v5969_v61  ;;  %3041 = vmatpush1.bf16.msra.mxu0 %v3917_v14  ;;  %v3923_v61 = vld [vmem:[#allocation8 + $0x240] ss:$24 sps:$4 sm:$0xff]  }
 0x8c6   :  { %3042 = vmatprep.subr.bf16.mxu0 %v3918_v28 }
 0x8c8   :  { %2895 = vmatpush1.bf16.msra.mxu1 %v5970_v18  ;;  %v3924_v18 = vld [vmem:[#allocation8 + $0x274] ss:$24 sps:$4 sm:$0xff]  }
 0x8c9   :  { %2896 = vmatprep.subr.bf16.mxu1 %v5971_v49  ;;  %3043 = vmatpush1.bf16.msra.mxu0 %v3919_v10  ;;  %v3925_v49 = vld [vmem:[#allocation8 + $0x270] ss:$24 sps:$4 sm:$0xff]  }
 0x8ca   :  { %3044 = vmatprep.subr.bf16.mxu0 %v3920_v45 }
 0x8cc   :  { %2897 = vmatpush1.bf16.msra.mxu1 %v6027_v17  ;;  %v3932_v17 = vld [vmem:[#allocation8 + $0x8] ss:$24 sps:$4 sm:$0xff]  }
 0x8cd   :  { %2898 = vmatprep.subr.bf16.mxu1 %v6028_v53  ;;  %3045 = vmatpush1.bf16.msra.mxu0 %v3921_v22  ;;  %v3933_v53 = vld [vmem:[#allocation8 + $0x3c] ss:$24 sps:$4 sm:$0xff]  }
 0x8ce   :  { %3046 = vmatprep.subr.bf16.mxu0 %v3922_v63 }
 0x8d0   :  { %2899 = vmatpush1.bf16.msra.mxu1 %v6031_v15  ;;  %v6078_v15 = vld [vmem:[#allocation67_spill] sm:$0xff] }
 0x8d1   :  { %2900 = vmatprep.subr.bf16.mxu1 %v6032_v7  ;;  %3047 = vmatpush1.bf16.msra.mxu0 %v3923_v61  ;;  %v6079_v7 = vld [vmem:[#allocation69_spill] sm:$0xff] }
 0x8d2   :  { %3048 = vmatprep.subr.bf16.mxu0 %v3924_v18 }
 0x8d4   :  { %2901 = vmatpush1.bf16.msra.mxu1 %v6035_v1  ;;  %v6080_v1 = vld [vmem:[#allocation71_spill] sm:$0xff] }
 0x8d5   :  { %2902 = vmatprep.subr.bf16.mxu1 %v6036_v41  ;;  %3049 = vmatpush1.bf16.msra.mxu0 %v3925_v49  ;;  %v6081_v41 = vld [vmem:[#allocation16_spill] sm:$0xff] }
 0x8d6   :  { %3050 = vmatprep.subr.bf16.mxu0 %v3926_v31 }
 0x8d8   :  { %2903 = vmatpush1.bf16.msra.mxu1 %v6039_v19  ;;  %v6082_v19 = vld [vmem:[#allocation26_spill] sm:$0xff] }
 0x8d9   :  { %2904 = vmatprep.subr.bf16.mxu1 %v6040_v13  ;;  %3051 = vmatpush1.bf16.msra.mxu0 %v3927_v9  ;;  %v6083_v13 = vld [vmem:[#allocation28_spill] sm:$0xff] }
 0x8da   :  { %3052 = vmatprep.subr.bf16.mxu0 %v3928_v42  ;;  %v2917_v9 = vld [vmem:[#allocation2 + $0x6] ss:$8 sm:$0x30] }
 0x8dc   :  { %2905 = vmatpush1.bf16.msra.mxu1 %v6043_v37  ;;  %v6084_v37 = vld [vmem:[#allocation30_spill] sm:$0xff] }
 0x8dd   :  { %3063 = vmatprep.subr.bf16.mxu1 %v3929_v46  ;;  %3053 = vmatpush1.bf16.msra.mxu0 %v3930_v44  ;;  %v2916_v44 = vld [vmem:[#allocation2 + $0x6] ss:$8 sm:$0xf] }
 0x8de   :  { %3104 = vmatprep.subr.bf16.mxu0 %v3931_v29  ;;  %v2918_v29 = vor.u32 %v2917_v9, %v2916_v44 }
 0x8df   :  { %2907 = vmatmul.mubr.bf16.vlgmr.msra.gmra.mrb[44].mxu1 %v5376_v16  ;;  %v6104_v16 = vld [vmem:[#allocation70_spill] sm:$0xff] }
 0x8e0   :  { %3064 = vmatpush1.bf16.msra.mxu1 %v3932_v17 }
 0x8e1   :  { %3065 = vmatprep.subr.bf16.mxu1 %v3933_v53 }
 0x8e4   :  { %3066 = vmatpush1.bf16.msra.mxu1 %v6049_v12  ;;  %v6088_v12 = vld [vmem:[#allocation38_spill] sm:$0xff] }
 0x8e5   :  { %3067 = vmatprep.subr.bf16.mxu1 %v6078_v15 }
 0x8e8   :  { %3068 = vmatpush1.bf16.msra.mxu1 %v6079_v7 }
 0x8e9   :  { %3069 = vmatprep.subr.bf16.mxu1 %v6080_v1 }
 0x8ec   :  { %3070 = vmatpush1.bf16.msra.mxu1 %v6081_v41 }
 0x8ed   :  { %3071 = vmatprep.subr.bf16.mxu1 %v6082_v19 }
 0x8f0   :  { %3072 = vmatpush1.bf16.msra.mxu1 %v6083_v13 }
 0x8f1   :  { %3073 = vmatprep.subr.bf16.mxu1 %v6084_v37 }
 0x8f4   :  { %3074 = vmatpush1.bf16.msra.mxu1 %v6085_v21  ;;  %v2995_v21 = vrot.slane %v2918_v29, 4 }
 0x8f5   :  { %3075 = vmatprep.subr.bf16.mxu1 %v6086_v43 }
 0x8f8   :  { %3076 = vmatpush1.bf16.msra.mxu1 %v6087_v39 }
 0x8f9   :  { %3077 = vmatprep.subr.bf16.mxu1 %v6088_v12 }
 0x8fc   :  { %3078 = vmatpush1.bf16.msra.mxu1 %v6089_v4 }
 0x8fd   :  { %3079 = vmatprep.subr.bf16.mxu1 %v6090_v24 }
 0x900   :  { %3080 = vmatpush1.bf16.msra.mxu1 %v6091_v26 }
 0x901   :  { %3081 = vmatprep.subr.bf16.mxu1 %v6092_v0 }
 0x904   :  { %3082 = vmatpush1.bf16.msra.mxu1 %v6093_v2 }
 0x905   :  { %3083 = vmatprep.subr.bf16.mxu1 %v6094_v38 }
 0x908   :  { %3084 = vmatpush1.bf16.msra.mxu1 %v6095_v50 }
 0x909   :  { %3085 = vmatprep.subr.bf16.mxu1 %v6096_v51 }
 0x90c   :  { %3086 = vmatpush1.bf16.msra.mxu1 %v6097_v35  ;;  %v3935_v35 = vld [vmem:[#allocation8 + $0x44] ss:$24 sps:$4 sm:$0xff]  }
 0x90d   :  { %3087 = vmatprep.subr.bf16.mxu1 %v6098_v8  ;;  %v3936_v8 = vld [vmem:[#allocation8 + $0x40] ss:$24 sps:$4 sm:$0xff]  }
 0x910   :  { %3088 = vmatpush1.bf16.msra.mxu1 %v6099_v3  ;;  %v3938_v3 = vld [vmem:[#allocation8 + $0x70] ss:$24 sps:$4 sm:$0xff]  }
 0x911   :  { %3089 = vmatprep.subr.bf16.mxu1 %v6100_v5  ;;  %v3940_v5 = vld [vmem:[#allocation8 + $0xa0] ss:$24 sps:$4 sm:$0xff]  }
 0x914   :  { %3090 = vmatpush1.bf16.msra.mxu1 %v6101_v47  ;;  %v3941_v47 = vld [vmem:[#allocation8 + $0xd4] ss:$24 sps:$4 sm:$0xff]  }
 0x915   :  { %3091 = vmatprep.subr.bf16.mxu1 %v6102_v11  ;;  %v3942_v11 = vld [vmem:[#allocation8 + $0xd0] ss:$24 sps:$4 sm:$0xff]  }
 0x918   :  { %3092 = vmatpush1.bf16.msra.mxu1 %v6103_v33  ;;  %v3943_v33 = vld [vmem:[#allocation8 + $0x104] ss:$24 sps:$4 sm:$0xff]  }
 0x919   :  { %3093 = vmatprep.subr.bf16.mxu1 %v6104_v16  ;;  %v3944_v16 = vld [vmem:[#allocation8 + $0x100] ss:$24 sps:$4 sm:$0xff]  }
 0x91c   :  { %3094 = vmatpush1.bf16.msra.mxu1 %v6105_v58  ;;  %v3945_v58 = vld [vmem:[#allocation8 + $0x134] ss:$24 sps:$4 sm:$0xff]  }
 0x972   :  { %v2826_v32 = vpop.f32.mrb[40].mxu1  ;;  %v2867_v57 = vpop.f32.mrb[44].mxu0 }
 0x973   :  { %v2828_v60 = vpop.f32.mrb[41].mxu1  ;;  %v2869_v23 = vpop.f32.mrb[45].mxu0 }
 0x974   :  { %v2925_v54 = vcombine.low %v2826_v32, %v2828_v60  ;;  %v2926_v56 = vcombine.low %v2867_v57, %v2869_v23  ;;  %v2830_v62 = vpop.f32.mrb[42].mxu1  ;;  %v2871_v27 = vpop.f32.mrb[46].mxu0  ;;  %v3946_v32 = vld [vmem:[#allocation8 + $0x130] ss:$24 sps:$4 sm:$0xff]   ;;  %v3947_v57 = vld [vmem:[#allocation8 + $0x164] ss:$24 sps:$4 sm:$0xff]  }
 0x975   :  { %v2831_v34 = vpop.f32.mrb[43].mxu1  ;;  %v2872_v48 = vpop.f32.mrb[47].mxu0  ;;  %v3948_v60 = vld [vmem:[#allocation8 + $0x160] ss:$24 sps:$4 sm:$0xff]   ;;  %v3949_v23 = vld [vmem:[#allocation8 + $0x194] ss:$24 sps:$4 sm:$0xff]  }
 0x976   :  { %v2934_v6 = vrot.slane %v2925_v54, %v4549_v55  ;;  %v2941_v30 = vrot.slane %v2926_v56, %v4549_v55  ;;  %v3950_v54 = vld [vmem:[#allocation8 + $0x190] ss:$24 sps:$4 sm:$0xff]   ;;  %v3951_v56 = vld [vmem:[#allocation8 + $0x1c4] ss:$24 sps:$4 sm:$0xff]   ;;  %v3952_v62 = vld [vmem:[#allocation8 + $0x1c0] ss:$24 sps:$4 sm:$0xff]  }
 0x977   :  { %v3953_v27 = vld [vmem:[#allocation8 + $0x1f4] ss:$24 sps:$4 sm:$0xff]   ;;  %v3954_v34 = vld [vmem:[#allocation8 + $0x1f0] ss:$24 sps:$4 sm:$0xff]   ;;  %v3955_v48 = vld [vmem:[#allocation8 + $0x224] ss:$24 sps:$4 sm:$0xff]  }
 0x978   :  { %v2949_v14 = vcombine.low %v2934_v6, %v2941_v30  ;;  %v3956_v6 = vld [vmem:[#allocation8 + $0x220] ss:$24 sps:$4 sm:$0xff]   ;;  %v3957_v30 = vld [vmem:[#allocation8 + $0x254] ss:$24 sps:$4 sm:$0xff]  }
 0x97a   :  { %v2956_v42 = vrot.slane %v2949_v14, %v4549_v55  ;;  %v3958_v14 = vld [vmem:[#allocation8 + $0x250] ss:$24 sps:$4 sm:$0xff]  }
 0x9b2   :  { %v2908_v28 = vpop.f32.mrb[44].mxu1 }
 0x9b3   :  { %v2973_v10 = vadd.f32 %v2908_v28, %v5877_v52  ;;  %v2910_v45 = vpop.f32.mrb[45].mxu1 }
 0x9b4   :  { %v2927_v22 = vcombine.low %v2908_v28, %v2910_v45  ;;  %v2974_v63 = vadd.f32 %v2910_v45, %v4546_v59  ;;  %v2912_v61 = vpop.f32.mrb[46].mxu1  ;;  %v3959_v28 = vld [vmem:[#allocation8 + $0x284] ss:$24 sps:$4 sm:$0xff]   ;;  %v3961_v45 = vld [vmem:[#allocation8 + $0x2b4] ss:$24 sps:$4 sm:$0xff]  }
 0x9b5   :  { %v2913_v18 = vpop.f32.mrb[47].mxu1  ;;  %v3964_v61 = vld [vmem:[#allocation8 + $0x2e0] ss:$24 sps:$4 sm:$0xff]  }
 0x9b6   :  { %v2948_v49 = vrot.slane %v2927_v22, %v4549_v55  ;;  %v2977_v31 = vcombine.low %v2973_v10, %v2974_v63  ;;  %v3960_v10 = vld [vmem:[#allocation8 + $0x280] ss:$24 sps:$4 sm:$0xff]   ;;  %v3962_v22 = vld [vmem:[#allocation8 + $0x2b0] ss:$24 sps:$4 sm:$0xff]   ;;  %v3963_v63 = vld [vmem:[#allocation8 + $0x2e4] ss:$24 sps:$4 sm:$0xff]  }
 0x9b8   :  { %v2963_v46 = vrot.slane %v2948_v49, %v4549_v55  ;;  %v2984_v41 = vrot.slane %v2977_v31, %v4549_v55 }
 0x9ba   :  { %v2964_v17 = vcombine.low %v2956_v42, %v2963_v46  ;;  %v2991_v19 = vrot.slane %v2984_v41, %v4549_v55 }
 0x9bc   :  { %v2966_v53 = vadd.f32 %v2964_v17, %v2918_v29 }
 0x9be   :  { %v3455_v15 = vmul.f32 -1.442695, %v2966_v53 }
 0x9c0   :  { %3790 = vpow2.f32 %v3455_v15 }
 0x9ca   :  { %v3791_v7 = vpop.eup %3790 }
 0x9cb   :  { %v2970_v1 = vadd.f32 1.0, %v3791_v7 }
 0x9cd   :  { %3792 = vrcp.f32 %v2970_v1 }
 0x9d7   :  { %v3793_v13 = vpop.eup %3792 }
 0x9d8   :  { %v2993_v37 = vmul.f32 %v3793_v13, %v2991_v19  ;;  %v3000_v39 = vrot.slane %v3793_v13, 2 }
 0x9da   :  { %v2997_v43 = vadd.f32 %v2995_v21, %v2993_v37  ;;  %v3002_v12 = vsub.f32 1.0, %v3000_v39  ;;  %v3004_v26 = vmul.f32 %v3000_v39, %v5367_v40  ;;  %v3934_v40 = vld [vmem:[#allocation8 + $0x10] ss:$24 sps:$4 sm:$0xff]  }
 0x9dc   :  { %3794 = vtanh.f32 %v2997_v43 }
 0x9e6   :  { %v3795_v4 = vpop.eup %3794 }
 0x9e7   :  { %v3003_v24 = vmul.f32 %v3795_v4, %v3002_v12 }
 0x9e9   :  { %v5456_v0 = vadd.f32 %v3004_v26, %v3003_v24  ;;  %v3147_v24 = vld [vmem:[#allocation2 + $0x7] ss:$8 sm:$0x30] }
 0x9eb   :  { %3007 = vst.msk [vmem:[#allocation9 + $0x6] ss:$8 sm:$0x3] %vm4562_vm0, %v5456_v0  ;;  %v3017_v2 = vrot.slane %v5456_v0, %v5820_v25  ;;  %v3013_v38 = vrot.slane %v5456_v0, %v5819_v36  ;;  %v3937_v25 = vld [vmem:[#allocation8 + $0x74] ss:$24 sps:$4 sm:$0xff]  }
 0x9ec   :  { %v3939_v36 = vld [vmem:[#allocation8 + $0xa4] ss:$24 sps:$4 sm:$0xff]  }
 0x9ed   :  { %v3021_v50 = vpack.c.bf16 %v3017_v2, %v3017_v2  ;;  %v5465_v51 = vpack.c.bf16 %v3013_v38, %v3013_v38  ;;  %v3146_v38 = vld [vmem:[#allocation2 + $0x7] ss:$8 sm:$0xf] }
 0x9ef   :  { %3054 = vmatprep.mubr.bf16.mxu0 %v3021_v50  ;;  %3095 = vmatprep.mubr.bf16.mxu1 %v3021_v50 }
 0x9f0   :  { %3055 = vmatmul.mubr.bf16.vlgmr.msra.gmra.mrb[48].mxu0 %v5465_v51  ;;  %3096 = vmatmul.mubr.bf16.vlgmr.msra.gmra.mrb[48].mxu1 %v5465_v51 }
 0x9f1   :  { %3105 = vmatpush1.bf16.msra.mxu0 %v3934_v40  ;;  %3136 = vmatprep.mubr.bf16.mxu0 %v3021_v50  ;;  %v3148_v50 = vor.u32 %v3147_v24, %v3146_v38 }
 0x9f2   :  { %3106 = vmatprep.subr.bf16.mxu0 %v3935_v35 }
 0x9f5   :  { %3107 = vmatpush1.bf16.msra.mxu0 %v3936_v8 }
 0x9f6   :  { %3108 = vmatprep.subr.bf16.mxu0 %v3937_v25 }
 0x9f9   :  { %3109 = vmatpush1.bf16.msra.mxu0 %v3938_v3 }
 0x9fa   :  { %3110 = vmatprep.subr.bf16.mxu0 %v3939_v36 }
 0x9fd   :  { %3111 = vmatpush1.bf16.msra.mxu0 %v3940_v5  ;;  %v3225_v5 = vrot.slane %v3148_v50, 4 }
 0x9fe   :  { %3112 = vmatprep.subr.bf16.mxu0 %v3941_v47 }
 0xa01   :  { %3113 = vmatpush1.bf16.msra.mxu0 %v3942_v11 }
 0xa02   :  { %3114 = vmatprep.subr.bf16.mxu0 %v3943_v33 }
 0xa05   :  { %3115 = vmatpush1.bf16.msra.mxu0 %v3944_v16 }
 0xa06   :  { %3116 = vmatprep.subr.bf16.mxu0 %v3945_v58 }
 0xa09   :  { %3117 = vmatpush1.bf16.msra.mxu0 %v3946_v32 }
 0xa0a   :  { %3118 = vmatprep.subr.bf16.mxu0 %v3947_v57 }
 0xa0d   :  { %3119 = vmatpush1.bf16.msra.mxu0 %v3948_v60 }
 0xa0e   :  { %3120 = vmatprep.subr.bf16.mxu0 %v3949_v23 }
 0xa11   :  { %3121 = vmatpush1.bf16.msra.mxu0 %v3950_v54 }
 0xa12   :  { %3122 = vmatprep.subr.bf16.mxu0 %v3951_v56 }
 0xa15   :  { %3123 = vmatpush1.bf16.msra.mxu0 %v3952_v62 }
 0xa16   :  { %3124 = vmatprep.subr.bf16.mxu0 %v3953_v27 }
 0xa19   :  { %3125 = vmatpush1.bf16.msra.mxu0 %v3954_v34 }
 0xa1a   :  { %3126 = vmatprep.subr.bf16.mxu0 %v3955_v48 }
 0xa1d   :  { %3127 = vmatpush1.bf16.msra.mxu0 %v3956_v6 }
 0xa1e   :  { %3128 = vmatprep.subr.bf16.mxu0 %v3957_v30 }
 0xa21   :  { %3129 = vmatpush1.bf16.msra.mxu0 %v3958_v14 }
 0xa22   :  { %3130 = vmatprep.subr.bf16.mxu0 %v3959_v28 }
 0xa25   :  { %3131 = vmatpush1.bf16.msra.mxu0 %v3960_v10 }
 0xa26   :  { %3132 = vmatprep.subr.bf16.mxu0 %v3961_v45 }
 0xa29   :  { %3133 = vmatpush1.bf16.msra.mxu0 %v3962_v22 }
 0xa2a   :  { %3134 = vmatprep.subr.bf16.mxu0 %v3963_v63 }
 0xa2d   :  { %3135 = vmatpush1.bf16.msra.mxu0 %v3964_v61 }
 0xa30   :  { %3137 = vmatmul.mubr.bf16.vlgmr.msra.gmra.mrb[52].mxu0 %v5465_v51 }
 0xac3   :  { %v3056_v18 = vpop.f32.mrb[48].mxu0  ;;  %v3097_v49 = vpop.f32.mrb[48].mxu1 }
 0xac4   :  { %v3058_v31 = vpop.f32.mrb[49].mxu0  ;;  %v3099_v9 = vpop.f32.mrb[49].mxu1 }
 0xac5   :  { %v3155_v42 = vcombine.low %v3056_v18, %v3058_v31  ;;  %v3156_v46 = vcombine.low %v3097_v49, %v3099_v9  ;;  %v3060_v44 = vpop.f32.mrb[50].mxu0  ;;  %v3101_v29 = vpop.f32.mrb[50].mxu1 }
 0xac6   :  { %v3061_v17 = vpop.f32.mrb[51].mxu0  ;;  %v3102_v53 = vpop.f32.mrb[51].mxu1 }
 0xac7   :  { %v3164_v15 = vrot.slane %v3155_v42, %v4549_v55  ;;  %v3171_v7 = vrot.slane %v3156_v46, %v4549_v55 }
 0xac9   :  { %v3179_v1 = vcombine.low %v3164_v15, %v3171_v7 }
 0xacb   :  { %v3186_v26 = vrot.slane %v3179_v1, %v4549_v55 }
 0xb03   :  { %v3138_v41 = vpop.f32.mrb[52].mxu0 }
 0xb04   :  { %v3203_v19 = vadd.f32 %v3138_v41, %v5877_v52  ;;  %v3140_v13 = vpop.f32.mrb[53].mxu0 }
 0xb05   :  { %v3157_v37 = vcombine.low %v3138_v41, %v3140_v13  ;;  %v3204_v21 = vadd.f32 %v3140_v13, %v4546_v59  ;;  %v3142_v43 = vpop.f32.mrb[54].mxu0 }
 0xb06   :  { %v3143_v39 = vpop.f32.mrb[55].mxu0 }
 0xb07   :  { %v3178_v12 = vrot.slane %v3157_v37, %v4549_v55  ;;  %v3207_v4 = vcombine.low %v3203_v19, %v3204_v21 }
 0xb09   :  { %v3193_v2 = vrot.slane %v3178_v12, %v4549_v55  ;;  %v3214_v59 = vrot.slane %v3207_v4, %v4549_v55 }
 0xb0b   :  { %v3194_v51 = vcombine.low %v3186_v26, %v3193_v2  ;;  %v3221_v25 = vrot.slane %v3214_v59, %v4549_v55 }
 0xb0d   :  { %v3196_v40 = vadd.f32 %v3194_v51, %v3148_v50 }
 0xb0f   :  { %v3456_v35 = vmul.f32 -1.442695, %v3196_v40 }
 0xb11   :  { %3796 = vpow2.f32 %v3456_v35 }
 0xb1b   :  { %v3797_v52 = vpop.eup %3796 }
 0xb1c   :  { %v3200_v8 = vadd.f32 1.0, %v3797_v52 }
 0xb1e   :  { %3798 = vrcp.f32 %v3200_v8 }
 0xb28   :  { %v3799_v3 = vpop.eup %3798 }
 0xb29   :  { %v3223_v36 = vmul.f32 %v3799_v3, %v3221_v25  ;;  %v3230_v11 = vrot.slane %v3799_v3, 2 }
 0xb2b   :  { %v3227_v47 = vadd.f32 %v3225_v5, %v3223_v36  ;;  %v3232_v33 = vsub.f32 1.0, %v3230_v11  ;;  %v3234_v32 = vmul.f32 %v3230_v11, %v5456_v0 }
 0xb2d   :  { %3800 = vtanh.f32 %v3227_v47 }
 0xb37   :  { %v3801_v16 = vpop.eup %3800 }
 0xb38   :  { %v3233_v58 = vmul.f32 %v3801_v16, %v3232_v33 }
 0xb3a   :  { %v3235_v57 = vadd.f32 %v3234_v32, %v3233_v58 }
 0xb3c   :  { %3237 = vst.msk [vmem:[#allocation9 + $0x7] ss:$8 sm:$0x3] %vm4562_vm0, %v3235_v57 }
 0xb3d   :  { %4042 = shalt.err (!%p4039_p0)
}
 0xb3e   :  { %s4043_s16 = scalar_lea.hbm %s5500_s6, 256 }
 0xb3f   :  { %p4044_p1 = scmp.ne.s32.totalorder %s5500_s6, %s4043_s16  ;;  %p4047_p2 = scmp.lt.u32.totalorder %s4043_s16, %s5500_s6 }
 0xb41   :  { %p4049_p3 = pnand %p4047_p2, %p4044_p1 }
 0xb43   :  { %4052 = shalt.err (!%p4049_p3)
}
 0xb44   :  { %3248 = dma.vmem_to_hbm [thread:$0]  %s3246_s12, 256, %s5500_s6, [#allocation5]  }
 0xb45   :  { %4057 = dma.done.wait [#allocation5], 256  }
 0xb46   :  { %4058 = vsyncadd [#allocation5], 4294967040 }
 0xb47   :  { %3252 = vsyncpa [#allocation4], 1 }
 0xb48   :  { %3253 = vsyncpa [#allocation7], 1 }
 0xb49   :  { %3254 = vsyncpa [#allocation5], 1 }

</bundles_post_ra>
